<compile_context>
chip_gen: v7x
topology: tpu7x:2x2x1
jax: 0.10.0
libtpu: 0.0.40
codegen_flags: <defaults>
</compile_context>

<pallas_src>
import functools

import jax
import jax.numpy as jnp
from jax.experimental import pallas as pl
from jax.experimental.pallas import tpu as pltpu

NUM_IN = 1024        # DenseNet-121: base_model.features.norm5.bias.shape[0]
_HEAD_OUT = 7        # appear(4) + grade(3)
_HEAD_PAD = 128      # lane-dense fused head output width
_POOL_LANES = 128    # width of the all-ones MXU pooling matrix / accumulator lanes
_MiB = 1024 * 1024


# --------------------------------------------------------------------------- kernel
def _head_kernel(feat_ref, ones_ref, w_ref, b_ref, out_ref, acc_ref, *, inv_scale):
    """ReLU -> MXU spatial-sum accumulate -> fused (appear|grade) head matmul + bias.

    feat_ref : (tn*C, t_hw)     backbone features, native dtype; C on sublanes, HW on lanes
    ones_ref : (t_hw, 128)      all-ones, feat dtype; turns the HW pool into an MXU matmul
    w_ref    : (C, 128) bf16    fused [wa | wg | 0-pad]
    b_ref    : (1, 128) f32     fused [ba | bg | 0-pad]
    out_ref  : (tn, 128) f32    lane-dense fused head output
    acc_ref  : (tn*C, 128) f32  spatial-sum accumulator (all 128 lanes carry the same sum)
    inv_scale: python float     1 / (H*W * 128): mean-pool scale + lane-replication collapse
    """
    hw_step = pl.program_id(1)

    @pl.when(hw_step == 0)
    def _():
        acc_ref[...] = jnp.zeros_like(acc_ref)

    # ReLU on the packed native-dtype vregs (bf16: 16x128 elems per VALU op), then contract
    # the HW axis on the otherwise-idle MXU instead of per-vreg cross-lane XLU reduces.
    f = jnp.maximum(feat_ref[...], 0)
    acc_ref[...] += jnp.dot(f, ones_ref[...], preferred_element_type=jnp.float32)

    @pl.when(hw_step == pl.num_programs(1) - 1)
    def _():
        tn = out_ref.shape[0]
        c = acc_ref.shape[0] // tn
        # Collapse the replicated lanes once per batch tile (all lanes are equal, so the
        # sum/128 only differs by a few f32 ulps); this XLU reduce is off the HW stream loop.
        acc3 = acc_ref[...].reshape(tn, c, _POOL_LANES)      # free major-dim split
        pooled = jnp.sum(acc3, axis=-1) * inv_scale           # (tn, C) f32 mean-pool
        out_ref[...] = (
            jnp.dot(pooled, w_ref[...].astype(jnp.float32),
                    preferred_element_type=jnp.float32)
            + b_ref[...]
        )
    # TODO(synk): dropout_prob > 0 not implemented (default module config p=0 -> no-op).


# --------------------------------------------------------------------------- tiling helpers
def _round_up(x, m):
    return (x + m - 1) // m * m


def _vmem_budgets():
    """Generation-aware (vmem_limit_bytes, total residency budget, per-feature-buffer cap)."""
    cap = 64 * _MiB                      # conservative default (v7x physical per TensorCore)
    try:
        cap = int(pltpu.get_tpu_info().vmem_capacity_bytes)
    except Exception:                    # query unavailable -> stay conservative
        pass
    if cap >= 100 * _MiB:                # v5e / v6e: 128 MiB physical VMEM
        return 64 * _MiB, 56 * _MiB, 16 * _MiB
    return 48 * _MiB, 40 * _MiB, 10 * _MiB   # v7x: 64 MiB physical per TC


def _footprint_bytes(tn, t_hw, feat_itemsize):
    """Whole-kernel VMEM residency: double-buffered tiles + scratch + weights + outputs."""
    lanes = _round_up(t_hw, 128)
    feat = 2 * tn * NUM_IN * lanes * feat_itemsize          # 2x: BlockSpec double buffer
    acc = tn * NUM_IN * _POOL_LANES * 4                     # f32 MXU-pool accumulator
    ones = 2 * _round_up(t_hw, 8) * _POOL_LANES * feat_itemsize
    w = 2 * NUM_IN * _HEAD_PAD * 2                          # bf16 fused head weight
    b = 2 * 8 * _HEAD_PAD * 4
    out = 2 * _round_up(tn, 8) * _HEAD_PAD * 4
    return feat + acc + ones + w + b + out


def _batch_tile_candidates(n):
    """Divisors of N keeping the (tn, 128) out block legal (tn % 8 == 0 or tn == N); when
    N >= 16, prefer tn <= N/2 so the 'parallel' batch axis has >= 2 steps for megacore."""
    cands = [t for t in range(8, n + 1, 8) if n % t == 0]
    if n >= 16:
        halved = [t for t in cands if t <= n // 2]
        if halved:
            cands = halved
    if not cands:
        cands = [n]
    return sorted(set(cands), reverse=True)


def _hw_tile_candidates(hw):
    """(t_hw, padded_total_hw) candidates, largest first: full HW (single step, no padding),
    then multiple-of-128 divisors of round_up(HW, 128) (tail zero-padded in the wrapper)."""
    hw_pad = _round_up(hw, 128)
    cands = [(hw, hw)]
    k = hw_pad // 128
    for d in range(k, 0, -1):
        if k % d == 0 and d * 128 < hw:
            cands.append((d * 128, hw_pad))
    return cands


def _pick_tiles(n, hw, feat_itemsize, total_budget, feat_buf_cap):
    """Largest (tn, t_hw) whose true double-buffered residency fits the generation budget;
    tn and t_hw shrink jointly (no fallback that clamps tn upward past the budget)."""
    for tn in _batch_tile_candidates(n):
        for t_hw, hw_total in _hw_tile_candidates(hw):
            feat_buf = tn * NUM_IN * _round_up(t_hw, 128) * feat_itemsize
            if feat_buf > feat_buf_cap:
                continue
            if _footprint_bytes(tn, t_hw, feat_itemsize) <= total_budget:
                return tn, t_hw, hw_total
    # Smallest legal tiles (tn<=8-ish, t_hw<=128) always fit the budgets above in practice.
    tn = _batch_tile_candidates(n)[-1]
    t_hw, hw_total = _hw_tile_candidates(hw)[-1]
    return tn, t_hw, hw_total


# --------------------------------------------------------------------------- pallas_call wrapper
def _head_pallas(feat2d, ones_mat, w_fused, b_fused, *, tn, t_hw, inv_scale, itemsize,
                 vmem_limit):
    rows, hw_total = feat2d.shape
    n = rows // NUM_IN
    grid = (n // tn, hw_total // t_hw)                      # reduction (HW) axis last

    flops = (2 * rows * _round_up(hw_total, 128) * _POOL_LANES   # MXU spatial-sum
             + 2 * rows * _HEAD_PAD                              # fused head matmul
             + rows * hw_total)                                  # ReLU
    bytes_accessed = (rows * hw_total * itemsize                 # feature-map stream
                      + ones_mat.size * itemsize
                      + w_fused.size * 2 + b_fused.size * 4
                      + n * _HEAD_PAD * 4)

    kernel = functools.partial(_head_kernel, inv_scale=inv_scale)
    return pl.pallas_call(
        kernel,
        out_shape=jax.ShapeDtypeStruct((n, _HEAD_PAD), jnp.float32),
        grid_spec=pltpu.PrefetchScalarGridSpec(
            num_scalar_prefetch=0,
            grid=grid,
            in_specs=[
                pl.BlockSpec((tn * NUM_IN, t_hw), lambda i, j: (i, j)),       # features
                pl.BlockSpec((t_hw, _POOL_LANES), lambda i, j: (0, 0)),       # ones (once)
                pl.BlockSpec((NUM_IN, _HEAD_PAD), lambda i, j: (0, 0)),       # fused W (once)
                pl.BlockSpec((1, _HEAD_PAD), lambda i, j: (0, 0)),            # fused b (once)
            ],
            out_specs=pl.BlockSpec((tn, _HEAD_PAD), lambda i, j: (i, 0)),
            scratch_shapes=[pltpu.VMEM((tn * NUM_IN, _POOL_LANES), jnp.float32)],
        ),
        compiler_params=pltpu.CompilerParams(
            dimension_semantics=("parallel", "arbitrary"),
            vmem_limit_bytes=vmem_limit,
        ),
        cost_estimate=pl.CostEstimate(flops=flops, transcendentals=0,
                                      bytes_accessed=bytes_accessed),
    )(feat2d, ones_mat, w_fused, b_fused)


# --------------------------------------------------------------------------- params / forward
def init_params(key, num_in=NUM_IN):
    """Deterministic init matching torch.nn.Linear default (U(-1/sqrt(in), 1/sqrt(in)))."""
    k1, k2, k3, k4 = jax.random.split(key, 4)
    bound = 1.0 / jnp.sqrt(jnp.float32(num_in))
    # stored as (in, out) so the kernel can do pooled @ W directly
    wa = jax.random.uniform(k1, (num_in, 4), jnp.float32, -bound, bound)
    ba = jax.random.uniform(k2, (1, 4), jnp.float32, -bound, bound)
    wg = jax.random.uniform(k3, (num_in, 3), jnp.float32, -bound, bound)
    bg = jax.random.uniform(k4, (1, 3), jnp.float32, -bound, bound)
    return {"wa": wa, "ba": ba, "wg": wg, "bg": bg}


def fuse_head_params(params):
    """Fuse the two heads into one lane-dense (C, 128) weight/bias.  HW-independent (the mean
    scale is applied in-kernel), so compute this once per parameter set and reuse it."""
    w = jnp.concatenate([params["wa"], params["wg"]], axis=1).astype(jnp.float32)
    w = jnp.pad(w, ((0, 0), (0, _HEAD_PAD - _HEAD_OUT))).astype(jnp.bfloat16)
    b = jnp.concatenate([params["ba"], params["bg"]], axis=1).astype(jnp.float32)
    b = jnp.pad(b, ((0, 0), (0, _HEAD_PAD - _HEAD_OUT)))
    return {"w": w, "b": b}


def network_forward(feat_nchw, params, out_type="both", fused=None):
    """feat_nchw: DenseNet-121 backbone feature map (N, C=1024, H, W), NCHW, any float dtype."""
    if out_type not in ("both", "appear", "grade"):
        raise ValueError("output type must be one of 'appear', 'grade', or 'both'")

    n, c, h, w = feat_nchw.shape
    assert c == NUM_IN, f"DenseNet-121 feature channels must be {NUM_IN}, got {c}"
    hw = h * w
    if fused is None:
        fused = fuse_head_params(params)      # prefer hoisting this out of the call path

    itemsize = jnp.dtype(feat_nchw.dtype).itemsize
    vmem_limit, total_budget, feat_buf_cap = _vmem_budgets()
    tn, t_hw, hw_total = _pick_tiles(n, hw, itemsize, total_budget, feat_buf_cap)

    # Free contiguous reshape (no transpose, no cast): (N, C, H, W) -> (N*C, H*W).
    feat2d = feat_nchw.reshape(n * NUM_IN, hw)
    if hw_total != hw:
        # Rare large-HW path: zero-pad HW so multiple-of-128 tiles divide it.  ReLU(0) = 0,
        # so padding does not perturb the pooled sum (the mean scale uses the true H*W).
        feat2d = jnp.pad(feat2d, ((0, 0), (0, hw_total - hw)))

    ones_mat = jnp.ones((t_hw, _POOL_LANES), feat_nchw.dtype)

    out = _head_pallas(feat2d, ones_mat, fused["w"], fused["b"],
                       tn=tn, t_hw=t_hw, inv_scale=1.0 / (hw * _POOL_LANES),
                       itemsize=itemsize, vmem_limit=vmem_limit)   # (N, 128) f32

    # Both heads are computed regardless of out_type: the 1024x7 matmul is noise next to
    # streaming the feature map from HBM.
    appear = out[:, :4]
    grade = out[:, 4:_HEAD_OUT]
    if out_type == "both":
        return appear, grade
    if out_type == "appear":
        return appear, None
    return None, grade


# --------------------------------------------------------------------------- reference & demo
def _reference_forward(feat_nchw, params):
    f = jnp.maximum(feat_nchw.astype(jnp.float32), 0.0)
    pooled = jnp.mean(f, axis=(2, 3))                         # (N, C)
    appear = pooled @ params["wa"] + params["ba"]
    grade = pooled @ params["wg"] + params["bg"]
    return appear, grade


if __name__ == "__main__":
    key = jax.random.PRNGKey(0)
    kf, kp = jax.random.split(key)

    # Small deterministic stand-in for the DenseNet-121 backbone feature map:
    # batch=2, channels=NUM_IN=1024 (fixed by norm5 / the fc heads), spatial 4x4.
    # Streamed in bf16 (backbone native precision) -> half the HBM bytes of f32.
    feat = jax.random.normal(kf, (2, NUM_IN, 4, 4), dtype=jnp.float32).astype(jnp.bfloat16)
    params = init_params(kp)
    fused = fuse_head_params(params)          # hoisted out of the per-call path

    appear, grade = network_forward(feat, params, out_type="both", fused=fused)
    jax.block_until_ready((appear, grade))

    ref_a, ref_g = _reference_forward(feat, params)
    assert appear.shape == (2, 4) and grade.shape == (2, 3)
    # Tolerance covers the bf16-stored fused head weights (reference keeps f32 weights).
    assert jnp.allclose(appear, ref_a, atol=2e-3, rtol=2e-3)
    assert jnp.allclose(grade, ref_g, atol=2e-3, rtol=2e-3)

    # exercise the other out_type branches
    a_only, none_g = network_forward(feat, params, out_type="appear", fused=fused)
    none_a, g_only = network_forward(feat, params, out_type="grade", fused=fused)
    jax.block_until_ready((a_only, g_only))
    assert none_g is None and none_a is None
    assert jnp.allclose(a_only, ref_a, atol=2e-3, rtol=2e-3)
    assert jnp.allclose(g_only, ref_g, atol=2e-3, rtol=2e-3)

    print("KERNEL_OK")
</pallas_src>

<mosaic_0001>
module attributes {stable_mosaic.version = 11 : i64} {
  func.func @_head_kernel(%arg0: i32, %arg1: i32, %arg2: memref<2048x16xbf16, #tpu.memory_space<vmem>>, %arg3: memref<16x128xbf16, #tpu.memory_space<vmem>>, %arg4: memref<1024x128xbf16, #tpu.memory_space<vmem>>, %arg5: memref<1x128xf32, #tpu.memory_space<vmem>>, %arg6: memref<2x128xf32, #tpu.memory_space<vmem>>, %arg7: memref<2048x128xf32, #tpu.memory_space<vmem>>) attributes {dimension_semantics = [#tpu.dimension_semantics<parallel>, #tpu.dimension_semantics<arbitrary>], iteration_bounds = array<i64: 1, 1>, scalar_prefetch = 0 : i64, scratch_operands = 1 : i64, tpu.core_type = #tpu.core_type<tc>, window_params = [{transform_indices = @transform_0, window_bounds = array<i64: 2048, 16>}, {pipeline_mode = #tpu.pipeline_mode<synchronous>, transform_indices = @transform_1, window_bounds = array<i64: 16, 128>}, {pipeline_mode = #tpu.pipeline_mode<synchronous>, transform_indices = @transform_2, window_bounds = array<i64: 1024, 128>}, {pipeline_mode = #tpu.pipeline_mode<synchronous>, transform_indices = @transform_3, window_bounds = array<i64: 1, 128>}, {transform_indices = @transform_4, window_bounds = array<i64: 2, 128>}]} {
    %c0_i32 = arith.constant 0 : i32
    %0 = arith.cmpi eq, %arg1, %c0_i32 : i32
    %1 = arith.extui %0 : i1 to i32
    %c0_i32_0 = arith.constant 0 : i32
    %2 = arith.cmpi ne, %1, %c0_i32_0 : i32
    scf.if %2 {
      %cst_11 = arith.constant 0.000000e+00 : f32
      %14 = vector.broadcast %cst_11 : f32 to vector<2048x128xf32>
      %c0_12 = arith.constant 0 : index
      %c0_13 = arith.constant 0 : index
      %15 = vector.load %arg7[%c0_12, %c0_13] : memref<2048x128xf32, #tpu.memory_space<vmem>>, vector<2048x128xf32>
      tpu.vector_store %arg7[%c0_12, %c0_13], %14 {strides = array<i32>} : memref<2048x128xf32, #tpu.memory_space<vmem>>, vector<2048x128xf32>,
    } else {
    }
    %c0 = arith.constant 0 : index
    %c0_1 = arith.constant 0 : index
    %3 = vector.load %arg2[%c0, %c0_1] : memref<2048x16xbf16, #tpu.memory_space<vmem>>, vector<2048x16xbf16>
    %cst = arith.constant 0.000000e+00 : bf16
    %4 = vector.broadcast %cst : bf16 to vector<2048x16xbf16>
    %5 = arith.maximumf %3, %4 : vector<2048x16xbf16>
    %c0_2 = arith.constant 0 : index
    %c0_3 = arith.constant 0 : index
    %6 = vector.load %arg7[%c0_2, %c0_3] : memref<2048x128xf32, #tpu.memory_space<vmem>>, vector<2048x128xf32>
    %c0_4 = arith.constant 0 : index
    %c0_5 = arith.constant 0 : index
    %7 = vector.load %arg3[%c0_4, %c0_5] : memref<16x128xbf16, #tpu.memory_space<vmem>>, vector<16x128xbf16>
    %cst_6 = arith.constant dense<0.000000e+00> : vector<2048x128xf32>
    %8 = tpu.matmul %5, %7, %cst_6 {dimension_numbers = #tpu.dot_dimension_numbers<[1], [0], [0], [1], [0, 0, 1, 1], [], []>} : vector<2048x16xbf16>, vector<16x128xbf16>, vector<2048x128xf32> -> vector<2048x128xf32>
    %9 = arith.addf %6, %8 : vector<2048x128xf32>
    %c0_7 = arith.constant 0 : index
    %c0_8 = arith.constant 0 : index
    %10 = vector.load %arg7[%c0_7, %c0_8] : memref<2048x128xf32, #tpu.memory_space<vmem>>, vector<2048x128xf32>
    tpu.vector_store %arg7[%c0_7, %c0_8], %9 {strides = array<i32>} : memref<2048x128xf32, #tpu.memory_space<vmem>>, vector<2048x128xf32>,
    %c0_i32_9 = arith.constant 0 : i32
    %11 = arith.cmpi eq, %arg1, %c0_i32_9 : i32
    %12 = arith.extui %11 : i1 to i32
    %c0_i32_10 = arith.constant 0 : i32
    %13 = arith.cmpi ne, %12, %c0_i32_10 : i32
    scf.if %13 {
      %c0_11 = arith.constant 0 : index
      %c0_12 = arith.constant 0 : index
      %14 = vector.load %arg7[%c0_11, %c0_12] : memref<2048x128xf32, #tpu.memory_space<vmem>>, vector<2048x128xf32>
      %15 = vector.shape_cast %14 : vector<2048x128xf32> to vector<2x1024x128xf32>
      %cst_13 = arith.constant dense<0.000000e+00> : vector<2x1024xf32>
      %16 = vector.multi_reduction <add>, %15, %cst_13 [2] : vector<2x1024x128xf32> to vector<2x1024xf32>
      %cst_14 = arith.constant 4.8828125E-4 : f32
      %17 = vector.broadcast %cst_14 : f32 to vector<2x1024xf32>
      %18 = arith.mulf %16, %17 : vector<2x1024xf32>
      %c0_15 = arith.constant 0 : index
      %c0_16 = arith.constant 0 : index
      %19 = vector.load %arg4[%c0_15, %c0_16] : memref<1024x128xbf16, #tpu.memory_space<vmem>>, vector<1024x128xbf16>
      %20 = arith.extf %19 : vector<1024x128xbf16> to vector<1024x128xf32>
      %cst_17 = arith.constant dense<0.000000e+00> : vector<2x128xf32>
      %21 = tpu.matmul %18, %20, %cst_17 {dimension_numbers = #tpu.dot_dimension_numbers<[1], [0], [0], [1], [0, 0, 1, 1], [], []>} : vector<2x1024xf32>, vector<1024x128xf32>, vector<2x128xf32> -> vector<2x128xf32>
      %c0_18 = arith.constant 0 : index
      %c0_19 = arith.constant 0 : index
      %22 = vector.load %arg5[%c0_18, %c0_19] : memref<1x128xf32, #tpu.memory_space<vmem>>, vector<1x128xf32>
      %23 = vector.broadcast %22 : vector<1x128xf32> to vector<2x128xf32>
      %24 = arith.addf %21, %23 : vector<2x128xf32>
      %c0_20 = arith.constant 0 : index
      %c0_21 = arith.constant 0 : index
      %25 = vector.load %arg6[%c0_20, %c0_21] : memref<2x128xf32, #tpu.memory_space<vmem>>, vector<2x128xf32>
      tpu.vector_store %arg6[%c0_20, %c0_21], %24 {strides = array<i32>} : memref<2x128xf32, #tpu.memory_space<vmem>>, vector<2x128xf32>,
    } else {
    }
    return
  }
  func.func @transform_0(%arg0: i32, %arg1: i32) -> (i32, i32) {
    %c0_i32 = arith.constant 0 : i32
    return %arg0, %arg1 : i32, i32
  }
  func.func @transform_1(%arg0: i32, %arg1: i32) -> (i32, i32) {
    %c0_i32 = arith.constant 0 : i32
    %c0_i32_0 = arith.constant 0 : i32
    %c0_i32_1 = arith.constant 0 : i32
    return %c0_i32, %c0_i32_0 : i32, i32
  }
  func.func @transform_2(%arg0: i32, %arg1: i32) -> (i32, i32) {
    %c0_i32 = arith.constant 0 : i32
    %c0_i32_0 = arith.constant 0 : i32
    %c0_i32_1 = arith.constant 0 : i32
    return %c0_i32, %c0_i32_0 : i32, i32
  }
  func.func @transform_3(%arg0: i32, %arg1: i32) -> (i32, i32) {
    %c0_i32 = arith.constant 0 : i32
    %c0_i32_0 = arith.constant 0 : i32
    %c0_i32_1 = arith.constant 0 : i32
    return %c0_i32, %c0_i32_0 : i32, i32
  }
  func.func @transform_4(%arg0: i32, %arg1: i32) -> (i32, i32) {
    %c0_i32 = arith.constant 0 : i32
    %c0_i32_0 = arith.constant 0 : i32
    return %arg0, %c0_i32 : i32, i32
  }
}

</mosaic_0001>

<bundles_post_ra>
// kernel: tpu_custom_call.1
= control target key start
LH: loop header
LB: loop body
LE: loop exit
PB: predicated region body
PF: predicated region fallthrough
CT: control target
= control target key end

     0   :  { %vm1695_vm0 = vcmask 130048   ;;  %v10960_v3 = vmov 0   ;;  %s10955_s0 = inlined_call_operand.vmem [shape: bf16[2048,16], index: 0, kind: input, shape index: {}]   ;;  %s10956_s1 = inlined_call_operand.vmem [shape: bf16[16,128], index: 1, kind: input, shape index: {}]   ;;  %s10957_s2 = inlined_call_operand.vmem [shape: bf16[1024,128], index: 2, kind: input, shape index: {}]   ;;  %s10958_s3 = inlined_call_operand.vmem [shape: f32[1,128], index: 3, kind: input, shape index: {}]   ;;  %s10959_s4 = inlined_call_operand.hbm [shape: f32[2,128], index: 4, kind: output, shape index: {}]  }
   0x1   :  { %v8039_v0 = vld [vmem:[%s10956_s1] sm:$0xff]   ;;  %v281_v6 = vld [vmem:[%s10955_s0 + $0x8] sm:$0xf]  ;;  %v282_v7 = vld [vmem:[%s10955_s0 + $0xc] sm:$0xf] }
   0x2   :  { %v279_v1 = vld [vmem:[%s10955_s0] sm:$0xf]  ;;  %v280_v2 = vld [vmem:[%s10955_s0 + $0x4] sm:$0xf]  ;;  %7649 = vmatprep.subr.bf16.mxu0 %v8039_v0  ;;  %8035 = vmatprep.subr.bf16.mxu1 %v8039_v0  ;;  %v435_v8 = vld [vmem:[%s10955_s0 + $0x270] sm:$0xf]  ;;  %v537_v9 = vmax.bf16 %v10960_v3, %v281_v6  ;;  %v538_v10 = vmax.bf16 %v10960_v3, %v282_v7 }
   0x3   :  { %v535_v4 = vmax.bf16 %v10960_v3, %v279_v1  ;;  %v536_v5 = vmax.bf16 %v10960_v3, %v280_v2  ;;  %7650 = vmatpush3.bf16.msra.mxu0 %v8039_v0  ;;  %8036 = vmatpush3.bf16.msra.mxu1 %v8039_v0  ;;  %v436_v11 = vld [vmem:[%s10955_s0 + $0x274] sm:$0xf]  ;;  %v691_v12 = vmax.bf16 %v10960_v3, %v435_v8  ;;  %v437_v13 = vld [vmem:[%s10955_s0 + $0x278] sm:$0xf]  ;;  %v438_v14 = vld [vmem:[%s10955_s0 + $0x27c] sm:$0xf] }
   0x4   :  { %v692_v16 = vmax.bf16 %v10960_v3, %v436_v11  ;;  %v693_v17 = vmax.bf16 %v10960_v3, %v437_v13  ;;  %v694_v18 = vmax.bf16 %v10960_v3, %v438_v14  ;;  %v283_v19 = vld [vmem:[%s10955_s0 + $0x10] sm:$0xf]  ;;  %v284_v20 = vld [vmem:[%s10955_s0 + $0x14] sm:$0xf]  ;;  %v285_v21 = vld [vmem:[%s10955_s0 + $0x18] sm:$0xf]  ;;  %v6804_v22 = vcombine.low %v537_v9, %v538_v10 }
   0x5   :  { %v6803_v15 = vcombine.low %v535_v4, %v536_v5  ;;  %v539_v23 = vmax.bf16 %v10960_v3, %v283_v19  ;;  %v540_v24 = vmax.bf16 %v10960_v3, %v284_v20  ;;  %v286_v25 = vld [vmem:[%s10955_s0 + $0x1c] sm:$0xf]  ;;  %v439_v26 = vld [vmem:[%s10955_s0 + $0x280] sm:$0xf]  ;;  %v440_v27 = vld [vmem:[%s10955_s0 + $0x284] sm:$0xf]  ;;  %v541_v35 = vmax.bf16 %v10960_v3, %v285_v21 }
   0x6   :  { %v6881_v28 = vcombine.low %v691_v12, %v692_v16  ;;  %v6882_v29 = vcombine.low %v693_v17, %v694_v18  ;;  %v695_v30 = vmax.bf16 %v10960_v3, %v439_v26  ;;  %v441_v31 = vld [vmem:[%s10955_s0 + $0x288] sm:$0xf]  ;;  %v442_v32 = vld [vmem:[%s10955_s0 + $0x28c] sm:$0xf]  ;;  %v287_v33 = vld [vmem:[%s10955_s0 + $0x20] sm:$0xf]  ;;  %v542_v36 = vmax.bf16 %v10960_v3, %v286_v25 }
   0x7   :  { %7651 = vmatprep.mubr.msk.bf16.mxu0 %vm1695_vm0, %v6803_v15  ;;  %v6805_v34 = vcombine.low %v539_v23, %v540_v24  ;;  %v696_v37 = vmax.bf16 %v10960_v3, %v440_v27  ;;  %v288_v38 = vld [vmem:[%s10955_s0 + $0x24] sm:$0xf]  ;;  %v543_v39 = vmax.bf16 %v10960_v3, %v287_v33  ;;  %v443_v41 = vld [vmem:[%s10955_s0 + $0x290] sm:$0xf]  ;;  %v444_v42 = vld [vmem:[%s10955_s0 + $0x294] sm:$0xf]  ;;  %v697_v44 = vmax.bf16 %v10960_v3, %v441_v31 }
   0x8   :  { %7652 = vmatmul.mubr.msk.bf16.vlgmr.msra.gmra.mrb[0].mxu0 %vm1695_vm0, %v6804_v22  ;;  %7807 = vmatprep.mubr.msk.bf16.mxu1 %vm1695_vm0, %v6881_v28  ;;  %v544_v40 = vmax.bf16 %v10960_v3, %v288_v38  ;;  %v698_v45 = vmax.bf16 %v10960_v3, %v442_v32  ;;  %v699_v46 = vmax.bf16 %v10960_v3, %v443_v41  ;;  %v289_v50 = vld [vmem:[%s10955_s0 + $0x28] sm:$0xf]  ;;  %v290_v51 = vld [vmem:[%s10955_s0 + $0x2c] sm:$0xf]  ;;  %v291_v53 = vld [vmem:[%s10955_s0 + $0x30] sm:$0xf] }
   0x9   :  { %7808 = vmatmul.mubr.msk.bf16.vlgmr.msra.gmra.mrb[0].mxu1 %vm1695_vm0, %v6882_v29  ;;  %7655 = vmatprep.mubr.msk.bf16.mxu0 %vm1695_vm0, %v6805_v34  ;;  %v6883_v43 = vcombine.low %v695_v30, %v696_v37  ;;  %v700_v47 = vmax.bf16 %v10960_v3, %v444_v42  ;;  %v6806_v48 = vcombine.low %v541_v35, %v542_v36  ;;  %v292_v54 = vld [vmem:[%s10955_s0 + $0x34] sm:$0xf]  ;;  %v445_v56 = vld [vmem:[%s10955_s0 + $0x298] sm:$0xf]  ;;  %v446_v57 = vld [vmem:[%s10955_s0 + $0x29c] sm:$0xf] }
   0xa   :  { %v6807_v49 = vcombine.low %v543_v39, %v544_v40  ;;  %v6884_v52 = vcombine.low %v697_v44, %v698_v45  ;;  %v545_v58 = vmax.bf16 %v10960_v3, %v289_v50  ;;  %v546_v59 = vmax.bf16 %v10960_v3, %v290_v51  ;;  %v447_v60 = vld [vmem:[%s10955_s0 + $0x2a0] sm:$0xf]  ;;  %v448_v61 = vld [vmem:[%s10955_s0 + $0x2a4] sm:$0xf]  ;;  %v293_v7 = vld [vmem:[%s10955_s0 + $0x38] sm:$0xf] }
   0xb   :  { %7811 = vmatprep.mubr.msk.bf16.mxu1 %vm1695_vm0, %v6883_v43  ;;  %v6885_v55 = vcombine.low %v699_v46, %v700_v47  ;;  %v547_v62 = vmax.bf16 %v10960_v3, %v291_v53  ;;  %v548_v63 = vmax.bf16 %v10960_v3, %v292_v54  ;;  %v701_v0 = vmax.bf16 %v10960_v3, %v445_v56  ;;  %v294_v8 = vld [vmem:[%s10955_s0 + $0x3c] sm:$0xf]  ;;  %v295_v10 = vld [vmem:[%s10955_s0 + $0x40] sm:$0xf]  ;;  %v296_v11 = vld [vmem:[%s10955_s0 + $0x44] sm:$0xf] }
   0xc   :  { %v702_v1 = vmax.bf16 %v10960_v3, %v446_v57  ;;  %v703_v2 = vmax.bf16 %v10960_v3, %v447_v60  ;;  %v704_v4 = vmax.bf16 %v10960_v3, %v448_v61  ;;  %v6808_v5 = vcombine.low %v545_v58, %v546_v59  ;;  %v449_v13 = vld [vmem:[%s10955_s0 + $0x2a8] sm:$0xf]  ;;  %v450_v14 = vld [vmem:[%s10955_s0 + $0x2ac] sm:$0xf]  ;;  %v451_v17 = vld [vmem:[%s10955_s0 + $0x2b0] sm:$0xf] }
   0xd   :  { %v6809_v6 = vcombine.low %v547_v62, %v548_v63  ;;  %v549_v15 = vmax.bf16 %v10960_v3, %v293_v7  ;;  %v550_v16 = vmax.bf16 %v10960_v3, %v294_v8  ;;  %v452_v18 = vld [vmem:[%s10955_s0 + $0x2b4] sm:$0xf]  ;;  %v551_v19 = vmax.bf16 %v10960_v3, %v295_v10  ;;  %v297_v27 = vld [vmem:[%s10955_s0 + $0x48] sm:$0xf]  ;;  %v298_v28 = vld [vmem:[%s10955_s0 + $0x4c] sm:$0xf] }
   0xe   :  { %v6886_v9 = vcombine.low %v701_v0, %v702_v1  ;;  %v6887_v12 = vcombine.low %v703_v2, %v704_v4  ;;  %v552_v20 = vmax.bf16 %v10960_v3, %v296_v11  ;;  %v705_v21 = vmax.bf16 %v10960_v3, %v449_v13  ;;  %v299_v30 = vld [vmem:[%s10955_s0 + $0x50] sm:$0xf]  ;;  %v300_v31 = vld [vmem:[%s10955_s0 + $0x54] sm:$0xf]  ;;  %v453_v33 = vld [vmem:[%s10955_s0 + $0x2b8] sm:$0xf] }
   0xf   :  { %v706_v22 = vmax.bf16 %v10960_v3, %v450_v14  ;;  %v707_v23 = vmax.bf16 %v10960_v3, %v451_v17  ;;  %v708_v24 = vmax.bf16 %v10960_v3, %v452_v18  ;;  %v6810_v25 = vcombine.low %v549_v15, %v550_v16  ;;  %v454_v34 = vld [vmem:[%s10955_s0 + $0x2bc] sm:$0xf]  ;;  %v455_v37 = vld [vmem:[%s10955_s0 + $0x2c0] sm:$0xf]  ;;  %v456_v38 = vld [vmem:[%s10955_s0 + $0x2c4] sm:$0xf] }
  0x10   :  { %7656 = vmatmul.mubr.msk.bf16.gmra.mrb[4].mxu0 %vm1695_vm0, %v6806_v48  ;;  %v6811_v26 = vcombine.low %v551_v19, %v552_v20  ;;  %v553_v35 = vmax.bf16 %v10960_v3, %v297_v27  ;;  %v554_v36 = vmax.bf16 %v10960_v3, %v298_v28  ;;  %v555_v39 = vmax.bf16 %v10960_v3, %v299_v30  ;;  %v301_v47 = vld [vmem:[%s10955_s0 + $0x58] sm:$0xf]  ;;  %v302_v48 = vld [vmem:[%s10955_s0 + $0x5c] sm:$0xf]  ;;  %v303_v50 = vld [vmem:[%s10955_s0 + $0x60] sm:$0xf] }
  0x11   :  { %7659 = vmatprep.mubr.msk.bf16.mxu0 %vm1695_vm0, %v6807_v49  ;;  %7812 = vmatmul.mubr.msk.bf16.gmra.mrb[4].mxu1 %vm1695_vm0, %v6884_v52  ;;  %v6888_v29 = vcombine.low %v705_v21, %v706_v22  ;;  %v6889_v32 = vcombine.low %v707_v23, %v708_v24  ;;  %v556_v40 = vmax.bf16 %v10960_v3, %v300_v31  ;;  %v304_v51 = vld [vmem:[%s10955_s0 + $0x64] sm:$0xf]  ;;  %v457_v53 = vld [vmem:[%s10955_s0 + $0x2c8] sm:$0xf]  ;;  %v458_v54 = vld [vmem:[%s10955_s0 + $0x2cc] sm:$0xf] }
  0x12   :  { %7815 = vmatprep.mubr.msk.bf16.mxu1 %vm1695_vm0, %v6885_v55  ;;  %v709_v41 = vmax.bf16 %v10960_v3, %v453_v33  ;;  %v710_v42 = vmax.bf16 %v10960_v3, %v454_v34  ;;  %v711_v43 = vmax.bf16 %v10960_v3, %v455_v37  ;;  %v712_v44 = vmax.bf16 %v10960_v3, %v456_v38  ;;  %v459_v57 = vld [vmem:[%s10955_s0 + $0x2d0] sm:$0xf]  ;;  %v460_v58 = vld [vmem:[%s10955_s0 + $0x2d4] sm:$0xf]  ;;  %v305_v4 = vld [vmem:[%s10955_s0 + $0x68] sm:$0xf] }
  0x13   :  { %v6812_v45 = vcombine.low %v553_v35, %v554_v36  ;;  %v6813_v46 = vcombine.low %v555_v39, %v556_v40  ;;  %v557_v55 = vmax.bf16 %v10960_v3, %v301_v47  ;;  %v558_v56 = vmax.bf16 %v10960_v3, %v302_v48  ;;  %v307_v7 = vld [vmem:[%s10955_s0 + $0x70] sm:$0xf]  ;;  %v308_v8 = vld [vmem:[%s10955_s0 + $0x74] sm:$0xf] }
  0x14   :  { %v6890_v49 = vcombine.low %v709_v41, %v710_v42  ;;  %v6891_v52 = vcombine.low %v711_v43, %v712_v44  ;;  %v559_v59 = vmax.bf16 %v10960_v3, %v303_v50  ;;  %v560_v60 = vmax.bf16 %v10960_v3, %v304_v51 }
  0x15   :  { %v713_v61 = vmax.bf16 %v10960_v3, %v457_v53  ;;  %v714_v62 = vmax.bf16 %v10960_v3, %v458_v54  ;;  %v715_v63 = vmax.bf16 %v10960_v3, %v459_v57  ;;  %v716_v0 = vmax.bf16 %v10960_v3, %v460_v58 }
  0x16   :  { %v6814_v1 = vcombine.low %v557_v55, %v558_v56  ;;  %v6815_v2 = vcombine.low %v559_v59, %v560_v60 }
  0x18   :  { %7660 = vmatmul.mubr.msk.bf16.gmra.mrb[8].mxu0 %vm1695_vm0, %v6808_v5  ;;  %v306_v5 = vld [vmem:[%s10955_s0 + $0x6c] sm:$0xf] }
  0x19   :  { %7663 = vmatprep.mubr.msk.bf16.mxu0 %vm1695_vm0, %v6809_v6  ;;  %7816 = vmatmul.mubr.msk.bf16.gmra.mrb[8].mxu1 %vm1695_vm0, %v6886_v9  ;;  %v6892_v6 = vcombine.low %v713_v61, %v714_v62 }
  0x1a   :  { %7819 = vmatprep.mubr.msk.bf16.mxu1 %vm1695_vm0, %v6887_v12 }
  0x20   :  { %7664 = vmatmul.mubr.msk.bf16.gmra.mrb[12].mxu0 %vm1695_vm0, %v6810_v25 }
  0x21   :  { %7667 = vmatprep.mubr.msk.bf16.mxu0 %vm1695_vm0, %v6811_v26  ;;  %7820 = vmatmul.mubr.msk.bf16.gmra.mrb[12].mxu1 %vm1695_vm0, %v6888_v29 }
  0x22   :  { %7823 = vmatprep.mubr.msk.bf16.mxu1 %vm1695_vm0, %v6889_v32 }
  0x28   :  { %7668 = vmatmul.mubr.msk.bf16.gmra.mrb[16].mxu0 %vm1695_vm0, %v6812_v45 }
  0x29   :  { %7671 = vmatprep.mubr.msk.bf16.mxu0 %vm1695_vm0, %v6813_v46  ;;  %7824 = vmatmul.mubr.msk.bf16.gmra.mrb[16].mxu1 %vm1695_vm0, %v6890_v49 }
  0x2a   :  { %7827 = vmatprep.mubr.msk.bf16.mxu1 %vm1695_vm0, %v6891_v52 }
  0x2b   :  { %9 = vsyncpa [#allocation4], 0  ;;  %v6893_v9 = vcombine.low %v715_v63, %v716_v0  ;;  %v461_v10 = vld [vmem:[%s10955_s0 + $0x2d8] sm:$0xf]  ;;  %v462_v11 = vld [vmem:[%s10955_s0 + $0x2dc] sm:$0xf]  ;;  %v561_v12 = vmax.bf16 %v10960_v3, %v305_v4  ;;  %v562_v13 = vmax.bf16 %v10960_v3, %v306_v5  ;;  %v563_v16 = vmax.bf16 %v10960_v3, %v307_v7 }
  0x2c   :  { %v463_v14 = vld [vmem:[%s10955_s0 + $0x2e0] sm:$0xf]  ;;  %v464_v15 = vld [vmem:[%s10955_s0 + $0x2e4] sm:$0xf]  ;;  %v564_v17 = vmax.bf16 %v10960_v3, %v308_v8  ;;  %v717_v18 = vmax.bf16 %v10960_v3, %v461_v10  ;;  %v718_v19 = vmax.bf16 %v10960_v3, %v462_v11  ;;  %v309_v24 = vld [vmem:[%s10955_s0 + $0x78] sm:$0xf] }
  0x2d   :  { %v719_v20 = vmax.bf16 %v10960_v3, %v463_v14  ;;  %v720_v21 = vmax.bf16 %v10960_v3, %v464_v15  ;;  %v6816_v22 = vcombine.low %v561_v12, %v562_v13  ;;  %v310_v25 = vld [vmem:[%s10955_s0 + $0x7c] sm:$0xf]  ;;  %v311_v27 = vld [vmem:[%s10955_s0 + $0x80] sm:$0xf]  ;;  %v312_v28 = vld [vmem:[%s10955_s0 + $0x84] sm:$0xf]  ;;  %v565_v32 = vmax.bf16 %v10960_v3, %v309_v24 }
  0x2e   :  { %v6817_v23 = vcombine.low %v563_v16, %v564_v17  ;;  %v6894_v26 = vcombine.low %v717_v18, %v718_v19  ;;  %v465_v30 = vld [vmem:[%s10955_s0 + $0x2e8] sm:$0xf]  ;;  %v466_v31 = vld [vmem:[%s10955_s0 + $0x2ec] sm:$0xf]  ;;  %v566_v33 = vmax.bf16 %v10960_v3, %v310_v25  ;;  %v467_v34 = vld [vmem:[%s10955_s0 + $0x2f0] sm:$0xf]  ;;  %v567_v36 = vmax.bf16 %v10960_v3, %v311_v27 }
  0x2f   :  { %v6895_v29 = vcombine.low %v719_v20, %v720_v21  ;;  %v468_v35 = vld [vmem:[%s10955_s0 + $0x2f4] sm:$0xf]  ;;  %v568_v37 = vmax.bf16 %v10960_v3, %v312_v28  ;;  %v721_v38 = vmax.bf16 %v10960_v3, %v465_v30  ;;  %v722_v39 = vmax.bf16 %v10960_v3, %v466_v31  ;;  %v313_v44 = vld [vmem:[%s10955_s0 + $0x88] sm:$0xf]  ;;  %v314_v45 = vld [vmem:[%s10955_s0 + $0x8c] sm:$0xf] }
  0x30   :  { %7672 = vmatmul.mubr.msk.bf16.gmra.mrb[20].mxu0 %vm1695_vm0, %v6814_v1  ;;  %v723_v40 = vmax.bf16 %v10960_v3, %v467_v34  ;;  %v724_v41 = vmax.bf16 %v10960_v3, %v468_v35  ;;  %v6818_v42 = vcombine.low %v565_v32, %v566_v33  ;;  %v315_v47 = vld [vmem:[%s10955_s0 + $0x90] sm:$0xf]  ;;  %v316_v48 = vld [vmem:[%s10955_s0 + $0x94] sm:$0xf]  ;;  %v469_v50 = vld [vmem:[%s10955_s0 + $0x2f8] sm:$0xf]  ;;  %v569_v52 = vmax.bf16 %v10960_v3, %v313_v44 }
  0x31   :  { %7675 = vmatprep.mubr.msk.bf16.mxu0 %vm1695_vm0, %v6815_v2  ;;  %7828 = vmatmul.mubr.msk.bf16.gmra.mrb[20].mxu1 %vm1695_vm0, %v6892_v6  ;;  %v6819_v43 = vcombine.low %v567_v36, %v568_v37  ;;  %v6896_v46 = vcombine.low %v721_v38, %v722_v39  ;;  %v470_v51 = vld [vmem:[%s10955_s0 + $0x2fc] sm:$0xf]  ;;  %v570_v53 = vmax.bf16 %v10960_v3, %v314_v45  ;;  %v471_v54 = vld [vmem:[%s10955_s0 + $0x300] sm:$0xf]  ;;  %v472_v55 = vld [vmem:[%s10955_s0 + $0x304] sm:$0xf] }
  0x32   :  { %7831 = vmatprep.mubr.msk.bf16.mxu1 %vm1695_vm0, %v6893_v9  ;;  %v6897_v49 = vcombine.low %v723_v40, %v724_v41  ;;  %v571_v56 = vmax.bf16 %v10960_v3, %v315_v47  ;;  %v572_v57 = vmax.bf16 %v10960_v3, %v316_v48  ;;  %v725_v58 = vmax.bf16 %v10960_v3, %v469_v50  ;;  %v317_v0 = vld [vmem:[%s10955_s0 + $0x98] sm:$0xf]  ;;  %v318_v1 = vld [vmem:[%s10955_s0 + $0x9c] sm:$0xf]  ;;  %v319_v4 = vld [vmem:[%s10955_s0 + $0xa0] sm:$0xf] }
  0x33   :  { %v726_v59 = vmax.bf16 %v10960_v3, %v470_v51  ;;  %v727_v60 = vmax.bf16 %v10960_v3, %v471_v54  ;;  %v728_v61 = vmax.bf16 %v10960_v3, %v472_v55  ;;  %v6820_v62 = vcombine.low %v569_v52, %v570_v53  ;;  %v320_v5 = vld [vmem:[%s10955_s0 + $0xa4] sm:$0xf]  ;;  %v473_v7 = vld [vmem:[%s10955_s0 + $0x308] sm:$0xf]  ;;  %v474_v8 = vld [vmem:[%s10955_s0 + $0x30c] sm:$0xf] }
  0x34   :  { %v6821_v63 = vcombine.low %v571_v56, %v572_v57  ;;  %v573_v9 = vmax.bf16 %v10960_v3, %v317_v0  ;;  %v574_v10 = vmax.bf16 %v10960_v3, %v318_v1  ;;  %v475_v11 = vld [vmem:[%s10955_s0 + $0x310] sm:$0xf]  ;;  %v476_v12 = vld [vmem:[%s10955_s0 + $0x314] sm:$0xf]  ;;  %v575_v13 = vmax.bf16 %v10960_v3, %v319_v4  ;;  %v321_v21 = vld [vmem:[%s10955_s0 + $0xa8] sm:$0xf] }
  0x35   :  { %v6898_v2 = vcombine.low %v725_v58, %v726_v59  ;;  %v6899_v6 = vcombine.low %v727_v60, %v728_v61  ;;  %v576_v14 = vmax.bf16 %v10960_v3, %v320_v5  ;;  %v729_v15 = vmax.bf16 %v10960_v3, %v473_v7  ;;  %v323_v24 = vld [vmem:[%s10955_s0 + $0xb0] sm:$0xf]  ;;  %v324_v25 = vld [vmem:[%s10955_s0 + $0xb4] sm:$0xf]  ;;  %v477_v27 = vld [vmem:[%s10955_s0 + $0x318] sm:$0xf] }
  0x36   :  { %v730_v16 = vmax.bf16 %v10960_v3, %v474_v8  ;;  %v731_v17 = vmax.bf16 %v10960_v3, %v475_v11  ;;  %v732_v18 = vmax.bf16 %v10960_v3, %v476_v12  ;;  %v6822_v19 = vcombine.low %v573_v9, %v574_v10  ;;  %v478_v28 = vld [vmem:[%s10955_s0 + $0x31c] sm:$0xf]  ;;  %v479_v31 = vld [vmem:[%s10955_s0 + $0x320] sm:$0xf]  ;;  %v480_v32 = vld [vmem:[%s10955_s0 + $0x324] sm:$0xf] }
  0x37   :  { %v6823_v20 = vcombine.low %v575_v13, %v576_v14  ;;  %v579_v33 = vmax.bf16 %v10960_v3, %v323_v24  ;;  %v580_v34 = vmax.bf16 %v10960_v3, %v324_v25  ;;  %v733_v35 = vmax.bf16 %v10960_v3, %v477_v27  ;;  %v325_v41 = vld [vmem:[%s10955_s0 + $0xb8] sm:$0xf]  ;;  %v327_v44 = vld [vmem:[%s10955_s0 + $0xc0] sm:$0xf]  ;;  %v328_v45 = vld [vmem:[%s10955_s0 + $0xc4] sm:$0xf] }
  0x38   :  { %7676 = vmatmul.mubr.msk.bf16.gmra.mrb[24].mxu0 %vm1695_vm0, %v6816_v22  ;;  %v322_v22 = vld [vmem:[%s10955_s0 + $0xac] sm:$0xf]  ;;  %v734_v36 = vmax.bf16 %v10960_v3, %v478_v28  ;;  %v735_v37 = vmax.bf16 %v10960_v3, %v479_v31  ;;  %v736_v38 = vmax.bf16 %v10960_v3, %v480_v32  ;;  %v481_v47 = vld [vmem:[%s10955_s0 + $0x328] sm:$0xf]  ;;  %v483_v51 = vld [vmem:[%s10955_s0 + $0x330] sm:$0xf]  ;;  %v583_v53 = vmax.bf16 %v10960_v3, %v327_v44 }
  0x39   :  { %7679 = vmatprep.mubr.msk.bf16.mxu0 %vm1695_vm0, %v6817_v23  ;;  %7832 = vmatmul.mubr.msk.bf16.gmra.mrb[24].mxu1 %vm1695_vm0, %v6894_v26  ;;  %v6900_v23 = vcombine.low %v729_v15, %v730_v16  ;;  %v6901_v26 = vcombine.low %v731_v17, %v732_v18  ;;  %v578_v30 = vmax.bf16 %v10960_v3, %v322_v22  ;;  %v482_v48 = vld [vmem:[%s10955_s0 + $0x32c] sm:$0xf]  ;;  %v484_v52 = vld [vmem:[%s10955_s0 + $0x334] sm:$0xf]  ;;  %v329_v61 = vld [vmem:[%s10955_s0 + $0xc8] sm:$0xf] }
  0x3a   :  { %7835 = vmatprep.mubr.msk.bf16.mxu1 %vm1695_vm0, %v6895_v29  ;;  %v577_v29 = vmax.bf16 %v10960_v3, %v321_v21  ;;  %v6825_v40 = vcombine.low %v579_v33, %v580_v34  ;;  %v584_v54 = vmax.bf16 %v10960_v3, %v328_v45  ;;  %v737_v55 = vmax.bf16 %v10960_v3, %v481_v47  ;;  %v332_v0 = vld [vmem:[%s10955_s0 + $0xd4] sm:$0xf]  ;;  %v485_v4 = vld [vmem:[%s10955_s0 + $0x338] sm:$0xf]  ;;  %v486_v5 = vld [vmem:[%s10955_s0 + $0x33c] sm:$0xf] }
  0x3b   :  { %v738_v56 = vmax.bf16 %v10960_v3, %v482_v48  ;;  %v739_v57 = vmax.bf16 %v10960_v3, %v483_v51  ;;  %v740_v58 = vmax.bf16 %v10960_v3, %v484_v52  ;;  %v487_v8 = vld [vmem:[%s10955_s0 + $0x340] sm:$0xf]  ;;  %v488_v9 = vld [vmem:[%s10955_s0 + $0x344] sm:$0xf]  ;;  %v588_v11 = vmax.bf16 %v10960_v3, %v332_v0  ;;  %v333_v18 = vld [vmem:[%s10955_s0 + $0xd8] sm:$0xf] }
  0x3c   :  { %v6824_v39 = vcombine.low %v577_v29, %v578_v30  ;;  %v6827_v60 = vcombine.low %v583_v53, %v584_v54  ;;  %v741_v12 = vmax.bf16 %v10960_v3, %v485_v4  ;;  %v742_v13 = vmax.bf16 %v10960_v3, %v486_v5  ;;  %v336_v21 = vld [vmem:[%s10955_s0 + $0xe4] sm:$0xf]  ;;  %v489_v24 = vld [vmem:[%s10955_s0 + $0x348] sm:$0xf]  ;;  %v490_v25 = vld [vmem:[%s10955_s0 + $0x34c] sm:$0xf] }
  0x3d   :  { %v6904_v1 = vcombine.low %v737_v55, %v738_v56  ;;  %v743_v14 = vmax.bf16 %v10960_v3, %v487_v8  ;;  %v744_v15 = vmax.bf16 %v10960_v3, %v488_v9  ;;  %v491_v28 = vld [vmem:[%s10955_s0 + $0x350] sm:$0xf]  ;;  %v492_v29 = vld [vmem:[%s10955_s0 + $0x354] sm:$0xf]  ;;  %v592_v31 = vmax.bf16 %v10960_v3, %v336_v21  ;;  %v493_v44 = vld [vmem:[%s10955_s0 + $0x358] sm:$0xf] }
  0x3e   :  { %v6906_v22 = vcombine.low %v741_v12, %v742_v13  ;;  %v745_v32 = vmax.bf16 %v10960_v3, %v489_v24  ;;  %v746_v33 = vmax.bf16 %v10960_v3, %v490_v25  ;;  %v747_v34 = vmax.bf16 %v10960_v3, %v491_v28  ;;  %v494_v45 = vld [vmem:[%s10955_s0 + $0x35c] sm:$0xf]  ;;  %v495_v48 = vld [vmem:[%s10955_s0 + $0x360] sm:$0xf]  ;;  %v497_v0 = vld [vmem:[%s10955_s0 + $0x368] sm:$0xf] }
  0x3f   :  { %v749_v52 = vmax.bf16 %v10960_v3, %v493_v44  ;;  %v750_v53 = vmax.bf16 %v10960_v3, %v494_v45  ;;  %v751_v54 = vmax.bf16 %v10960_v3, %v495_v48  ;;  %v346_v12 = vld [vmem:[%s10955_s0 + $0x10c] sm:$0xf]  ;;  %v347_v13 = vld [vmem:[%s10955_s0 + $0x110] sm:$0xf]  ;;  %v349_v21 = vld [vmem:[%s10955_s0 + $0x118] sm:$0xf] }
  0x40   :  { %7680 = vmatmul.mubr.msk.bf16.gmra.mrb[28].mxu0 %vm1695_vm0, %v6818_v42  ;;  %v326_v42 = vld [vmem:[%s10955_s0 + $0xbc] sm:$0xf]  ;;  %v351_v25 = vld [vmem:[%s10955_s0 + $0x120] sm:$0xf]  ;;  %v352_v28 = vld [vmem:[%s10955_s0 + $0x124] sm:$0xf] }
  0x41   :  { %7683 = vmatprep.mubr.msk.bf16.mxu0 %vm1695_vm0, %v6819_v43  ;;  %7836 = vmatmul.mubr.msk.bf16.gmra.mrb[28].mxu1 %vm1695_vm0, %v6896_v46  ;;  %v6902_v43 = vcombine.low %v733_v35, %v734_v36  ;;  %v6903_v46 = vcombine.low %v735_v37, %v736_v38  ;;  %v582_v50 = vmax.bf16 %v10960_v3, %v326_v42  ;;  %v337_v38 = vld [vmem:[%s10955_s0 + $0xe8] sm:$0xf]  ;;  %v350_v24 = vld [vmem:[%s10955_s0 + $0x11c] sm:$0xf]  ;;  %v355_v44 = vld [vmem:[%s10955_s0 + $0x130] sm:$0xf] }
  0x42   :  { %7839 = vmatprep.mubr.msk.bf16.mxu1 %vm1695_vm0, %v6897_v49  ;;  %v581_v49 = vmax.bf16 %v10960_v3, %v325_v41  ;;  %v748_v35 = vmax.bf16 %v10960_v3, %v492_v29  ;;  %v340_v41 = vld [vmem:[%s10955_s0 + $0xf4] sm:$0xf]  ;;  %v6908_v42 = vcombine.low %v745_v32, %v746_v33  ;;  %v611_v48 = vmax.bf16 %v10960_v3, %v355_v44  ;;  %s8065_s5 = smov [#allocation3]  }
  0x43   :  { %v596_v51 = vmax.bf16 %v10960_v3, %v340_v41  ;;  %v356_v45 = vld [vmem:[%s10955_s0 + $0x134] sm:$0xf]  ;;  %vm5206_vm1 = vcmask 130112   ;;  %vm5213_vm2 = vcmask 195712   ;;  %vm5220_vm3 = vcmask 261312   ;;  %s6795_s6 = sshll.u32 %s8065_s5, 4  ;;  %s6796_s6 = int_to_ptr.vmem [resolvable:$true] %s6795_s6 }
  0x44   :  { %v6826_v59 = vcombine.low %v581_v49, %v582_v50  ;;  %v496_v49 = vld [vmem:[%s10955_s0 + $0x364] sm:$0xf]  ;;  %vm5227_vm4 = vcmask 326912   ;;  %vm5234_vm5 = vcmask 392512   ;;  %vm5241_vm6 = vcmask 458112   ;;  %s8040_s7 = scalar_lea.vmem %s6796_s6, 32  ;;  %p8045_p1 = scmp.lt.s32.totalorder %s6796_s6, %s6796_s6 }
  0x45   :  { %v752_v55 = vmax.bf16 %v10960_v3, %v496_v49  ;;  %v612_v49 = vmax.bf16 %v10960_v3, %v356_v45  ;;  %vm5248_vm7 = vcmask 523712   ;;  %vm5255_vm8 = vcmask 589312   ;;  %p8041_p0 = scmp.ne.s32.totalorder %s6796_s6, %s8040_s7  ;;  %p8046_p2 = scmp.lt.s32.totalorder %s8040_s7, %s8040_s7 }
  0x46   :  { %vm5262_vm9 = vcmask 654912   ;;  %vm5269_vm10 = vcmask 720512   ;;  %vm5276_vm11 = vcmask 786112   ;;  %vm5283_vm12 = vcmask 851712  }
  0x47   :  { %vm5290_vm13 = vcmask 917312   ;;  %vm5297_vm14 = vcmask 982912   ;;  %vm5304_vm15 = vcmask 1048512   ;;  %p8047_p3 = por %p8046_p2, %p8045_p1 }
  0x48   :  { %7684 = vmatmul.mubr.msk.bf16.gmra.mrb[32].mxu0 %vm1695_vm0, %v6820_v62  ;;  %v330_v62 = vld [vmem:[%s10955_s0 + $0xcc] sm:$0xf] }
  0x49   :  { %7687 = vmatprep.mubr.msk.bf16.mxu0 %vm1695_vm0, %v6821_v63  ;;  %7840 = vmatmul.mubr.msk.bf16.gmra.mrb[32].mxu1 %vm1695_vm0, %v6898_v2  ;;  %v331_v63 = vld [vmem:[%s10955_s0 + $0xd0] sm:$0xf]  ;;  %v6905_v2 = vcombine.low %v739_v57, %v740_v58  ;;  %v586_v7 = vmax.bf16 %v10960_v3, %v330_v62  ;;  %v341_v58 = vld [vmem:[%s10955_s0 + $0xf8] sm:$0xf]  ;;  %v6910_v62 = vcombine.low %v749_v52, %v750_v53  ;;  %p8048_p4 = pnand %p8047_p3, %p8041_p0 }
  0x4a   :  { %7843 = vmatprep.mubr.msk.bf16.mxu1 %vm1695_vm0, %v6899_v6  ;;  %v585_v6 = vmax.bf16 %v10960_v3, %v329_v61  ;;  %v587_v10 = vmax.bf16 %v10960_v3, %v331_v63  ;;  %v344_v61 = vld [vmem:[%s10955_s0 + $0x104] sm:$0xf]  ;;  %v6911_v63 = vcombine.low %v751_v54, %v752_v55  ;;  %v505_v54 = vld [vmem:[%s10955_s0 + $0x388] sm:$0xf]  ;;  %v506_v55 = vld [vmem:[%s10955_s0 + $0x38c] sm:$0xf] }
  0x4c   :  { %v6828_v16 = vcombine.low %v585_v6, %v586_v7  ;;  %v6829_v17 = vcombine.low %v587_v10, %v588_v11  ;;  %v600_v6 = vmax.bf16 %v10960_v3, %v344_v61  ;;  %v753_v7 = vmax.bf16 %v10960_v3, %v497_v0  ;;  %v345_v11 = vld [vmem:[%s10955_s0 + $0x108] sm:$0xf]  ;;  %v357_v61 = vld [vmem:[%s10955_s0 + $0x138] sm:$0xf]  ;;  %v359_v0 = vld [vmem:[%s10955_s0 + $0x140] sm:$0xf] }
  0x50   :  { %7688 = vmatmul.mubr.msk.bf16.gmra.mrb[36].mxu0 %vm1695_vm0, %v6822_v19  ;;  %v334_v19 = vld [vmem:[%s10955_s0 + $0xdc] sm:$0xf] }
  0x51   :  { %7691 = vmatprep.mubr.msk.bf16.mxu0 %vm1695_vm0, %v6823_v20  ;;  %7844 = vmatmul.mubr.msk.bf16.gmra.mrb[36].mxu1 %vm1695_vm0, %v6900_v23  ;;  %v335_v20 = vld [vmem:[%s10955_s0 + $0xe0] sm:$0xf]  ;;  %v6907_v23 = vcombine.low %v743_v14, %v744_v15  ;;  %v590_v27 = vmax.bf16 %v10960_v3, %v334_v19  ;;  %v348_v14 = vld [vmem:[%s10955_s0 + $0x114] sm:$0xf] }
  0x52   :  { %7847 = vmatprep.mubr.msk.bf16.mxu1 %vm1695_vm0, %v6901_v26  ;;  %v589_v26 = vmax.bf16 %v10960_v3, %v333_v18  ;;  %v591_v30 = vmax.bf16 %v10960_v3, %v335_v20  ;;  %v603_v18 = vmax.bf16 %v10960_v3, %v347_v13  ;;  %v604_v19 = vmax.bf16 %v10960_v3, %v348_v14 }
  0x54   :  { %v6830_v36 = vcombine.low %v589_v26, %v590_v27  ;;  %v6831_v37 = vcombine.low %v591_v30, %v592_v31  ;;  %v500_v26 = vld [vmem:[%s10955_s0 + $0x374] sm:$0xf]  ;;  %v501_v30 = vld [vmem:[%s10955_s0 + $0x378] sm:$0xf]  ;;  %v502_v31 = vld [vmem:[%s10955_s0 + $0x37c] sm:$0xf] }
  0x55   :  { %v756_v29 = vmax.bf16 %v10960_v3, %v500_v26  ;;  %v757_v32 = vmax.bf16 %v10960_v3, %v501_v30  ;;  %v758_v33 = vmax.bf16 %v10960_v3, %v502_v31  ;;  %v513_v31 = vld [vmem:[%s10955_s0 + $0x3a8] sm:$0xf] }
  0x58   :  { %7692 = vmatmul.mubr.msk.bf16.gmra.mrb[40].mxu0 %vm1695_vm0, %v6824_v39  ;;  %v338_v39 = vld [vmem:[%s10955_s0 + $0xec] sm:$0xf] }
  0x59   :  { %7695 = vmatprep.mubr.msk.bf16.mxu0 %vm1695_vm0, %v6825_v40  ;;  %7848 = vmatmul.mubr.msk.bf16.gmra.mrb[40].mxu1 %vm1695_vm0, %v6902_v43  ;;  %v339_v40 = vld [vmem:[%s10955_s0 + $0xf0] sm:$0xf]  ;;  %v6909_v43 = vcombine.low %v747_v34, %v748_v35  ;;  %v594_v47 = vmax.bf16 %v10960_v3, %v338_v39  ;;  %v605_v34 = vmax.bf16 %v10960_v3, %v349_v21 }
  0x5a   :  { %7851 = vmatprep.mubr.msk.bf16.mxu1 %vm1695_vm0, %v6903_v46  ;;  %v593_v46 = vmax.bf16 %v10960_v3, %v337_v38  ;;  %v595_v50 = vmax.bf16 %v10960_v3, %v339_v40  ;;  %v606_v35 = vmax.bf16 %v10960_v3, %v350_v24  ;;  %v608_v38 = vmax.bf16 %v10960_v3, %v352_v28  ;;  %v363_v21 = vld [vmem:[%s10955_s0 + $0x150] sm:$0xf]  ;;  %v512_v28 = vld [vmem:[%s10955_s0 + $0x3a4] sm:$0xf] }
  0x5b   :  { %v6914_v39 = vcombine.low %v757_v32, %v758_v33  ;;  %v768_v30 = vmax.bf16 %v10960_v3, %v512_v28  ;;  %v514_v32 = vld [vmem:[%s10955_s0 + $0x3ac] sm:$0xf]  ;;  %v769_v33 = vmax.bf16 %v10960_v3, %v513_v31  ;;  %v379_v28 = vld [vmem:[%s10955_s0 + $0x190] sm:$0xf] }
  0x5c   :  { %v6832_v56 = vcombine.low %v593_v46, %v594_v47  ;;  %v6833_v57 = vcombine.low %v595_v50, %v596_v51  ;;  %v6838_v40 = vcombine.low %v605_v34, %v606_v35  ;;  %v503_v50 = vld [vmem:[%s10955_s0 + $0x380] sm:$0xf]  ;;  %v504_v51 = vld [vmem:[%s10955_s0 + $0x384] sm:$0xf]  ;;  %v770_v34 = vmax.bf16 %v10960_v3, %v514_v32 }
  0x5d   :  { %v759_v52 = vmax.bf16 %v10960_v3, %v503_v50  ;;  %v760_v53 = vmax.bf16 %v10960_v3, %v504_v51  ;;  %v517_v51 = vld [vmem:[%s10955_s0 + $0x3b8] sm:$0xf]  ;;  %v635_v32 = vmax.bf16 %v10960_v3, %v379_v28 }
  0x60   :  { %7696 = vmatmul.mubr.msk.bf16.gmra.mrb[44].mxu0 %vm1695_vm0, %v6826_v59  ;;  %v342_v59 = vld [vmem:[%s10955_s0 + $0xfc] sm:$0xf] }
  0x61   :  { %7699 = vmatprep.mubr.msk.bf16.mxu0 %vm1695_vm0, %v6827_v60  ;;  %7852 = vmatmul.mubr.msk.bf16.gmra.mrb[44].mxu1 %vm1695_vm0, %v6904_v1  ;;  %v343_v60 = vld [vmem:[%s10955_s0 + $0x100] sm:$0xf]  ;;  %v498_v1 = vld [vmem:[%s10955_s0 + $0x36c] sm:$0xf]  ;;  %v598_v4 = vmax.bf16 %v10960_v3, %v342_v59  ;;  %v6915_v59 = vcombine.low %v759_v52, %v760_v53  ;;  %v518_v52 = vld [vmem:[%s10955_s0 + $0x3bc] sm:$0xf]  ;;  %v773_v53 = vmax.bf16 %v10960_v3, %v517_v51 }
  0x62   :  { %7855 = vmatprep.mubr.msk.bf16.mxu1 %vm1695_vm0, %v6905_v2  ;;  %v597_v2 = vmax.bf16 %v10960_v3, %v341_v58  ;;  %v599_v5 = vmax.bf16 %v10960_v3, %v343_v60  ;;  %v754_v8 = vmax.bf16 %v10960_v3, %v498_v1  ;;  %v6841_v60 = vcombine.low %v611_v48, %v612_v49  ;;  %v360_v1 = vld [vmem:[%s10955_s0 + $0x144] sm:$0xf]  ;;  %v516_v48 = vld [vmem:[%s10955_s0 + $0x3b4] sm:$0xf] }
  0x63   :  { %v772_v50 = vmax.bf16 %v10960_v3, %v516_v48  ;;  %v387_v48 = vld [vmem:[%s10955_s0 + $0x1b0] sm:$0xf] }
  0x64   :  { %v6834_v9 = vcombine.low %v597_v2, %v598_v4  ;;  %v6835_v10 = vcombine.low %v599_v5, %v600_v6  ;;  %v6912_v15 = vcombine.low %v753_v7, %v754_v8  ;;  %v613_v2 = vmax.bf16 %v10960_v3, %v357_v61  ;;  %v507_v7 = vld [vmem:[%s10955_s0 + $0x390] sm:$0xf]  ;;  %v508_v8 = vld [vmem:[%s10955_s0 + $0x394] sm:$0xf] }
  0x65   :  { %v615_v5 = vmax.bf16 %v10960_v3, %v359_v0  ;;  %v616_v6 = vmax.bf16 %v10960_v3, %v360_v1  ;;  %v371_v61 = vld [vmem:[%s10955_s0 + $0x170] sm:$0xf] }
  0x66   :  { %v627_v1 = vmax.bf16 %v10960_v3, %v371_v61 }
  0x68   :  { %7700 = vmatmul.mubr.msk.bf16.gmra.mrb[48].mxu0 %vm1695_vm0, %v6828_v16  ;;  %v601_v16 = vmax.bf16 %v10960_v3, %v345_v11  ;;  %v509_v11 = vld [vmem:[%s10955_s0 + $0x398] sm:$0xf] }
  0x69   :  { %7703 = vmatprep.mubr.msk.bf16.mxu0 %vm1695_vm0, %v6829_v17  ;;  %7856 = vmatmul.mubr.msk.bf16.gmra.mrb[48].mxu1 %vm1695_vm0, %v6906_v22  ;;  %v602_v17 = vmax.bf16 %v10960_v3, %v346_v12  ;;  %v499_v22 = vld [vmem:[%s10955_s0 + $0x370] sm:$0xf]  ;;  %v510_v12 = vld [vmem:[%s10955_s0 + $0x39c] sm:$0xf]  ;;  %v765_v13 = vmax.bf16 %v10960_v3, %v509_v11 }
  0x6a   :  { %7859 = vmatprep.mubr.msk.bf16.mxu1 %vm1695_vm0, %v6907_v23  ;;  %v6837_v23 = vcombine.low %v603_v18, %v604_v19  ;;  %v755_v27 = vmax.bf16 %v10960_v3, %v499_v22  ;;  %v766_v14 = vmax.bf16 %v10960_v3, %v510_v12  ;;  %v361_v18 = vld [vmem:[%s10955_s0 + $0x148] sm:$0xf]  ;;  %v362_v19 = vld [vmem:[%s10955_s0 + $0x14c] sm:$0xf]  ;;  %v364_v22 = vld [vmem:[%s10955_s0 + $0x154] sm:$0xf] }
  0x6b   :  { %v6836_v20 = vcombine.low %v601_v16, %v602_v17  ;;  %v6843_v17 = vcombine.low %v615_v5, %v616_v6  ;;  %v618_v24 = vmax.bf16 %v10960_v3, %v362_v19  ;;  %v620_v26 = vmax.bf16 %v10960_v3, %v364_v22  ;;  %v520_v5 = vld [vmem:[%s10955_s0 + $0x3c4] sm:$0xf] }
  0x6c   :  { %v376_v19 = vld [vmem:[%s10955_s0 + $0x184] sm:$0xf] }
  0x70   :  { %7704 = vmatmul.mubr.msk.bf16.gmra.mrb[52].mxu0 %vm1695_vm0, %v6830_v36  ;;  %v6913_v36 = vcombine.low %v755_v27, %v756_v29  ;;  %v511_v27 = vld [vmem:[%s10955_s0 + $0x3a0] sm:$0xf] }
  0x71   :  { %7707 = vmatprep.mubr.msk.bf16.mxu0 %vm1695_vm0, %v6831_v37  ;;  %7860 = vmatmul.mubr.msk.bf16.gmra.mrb[52].mxu1 %vm1695_vm0, %v6908_v42  ;;  %v607_v37 = vmax.bf16 %v10960_v3, %v351_v25  ;;  %v353_v42 = vld [vmem:[%s10955_s0 + $0x128] sm:$0xf]  ;;  %v619_v25 = vmax.bf16 %v10960_v3, %v363_v21  ;;  %v767_v29 = vmax.bf16 %v10960_v3, %v511_v27  ;;  %v378_v27 = vld [vmem:[%s10955_s0 + $0x18c] sm:$0xf] }
  0x72   :  { %7863 = vmatprep.mubr.msk.bf16.mxu1 %vm1695_vm0, %v6909_v43  ;;  %v354_v43 = vld [vmem:[%s10955_s0 + $0x12c] sm:$0xf]  ;;  %v609_v46 = vmax.bf16 %v10960_v3, %v353_v42  ;;  %v368_v42 = vld [vmem:[%s10955_s0 + $0x164] sm:$0xf]  ;;  %v634_v31 = vmax.bf16 %v10960_v3, %v378_v27 }
  0x73   :  { %v6839_v41 = vcombine.low %v607_v37, %v608_v38  ;;  %v610_v47 = vmax.bf16 %v10960_v3, %v354_v43  ;;  %v6845_v37 = vcombine.low %v619_v25, %v620_v26  ;;  %v365_v38 = vld [vmem:[%s10955_s0 + $0x158] sm:$0xf]  ;;  %v377_v26 = vld [vmem:[%s10955_s0 + $0x188] sm:$0xf] }
  0x74   :  { %v621_v43 = vmax.bf16 %v10960_v3, %v365_v38  ;;  %v383_v38 = vld [vmem:[%s10955_s0 + $0x1a0] sm:$0xf] }
  0x75   :  { %v6840_v58 = vcombine.low %v609_v46, %v610_v47  ;;  %v624_v46 = vmax.bf16 %v10960_v3, %v368_v42  ;;  %v515_v47 = vld [vmem:[%s10955_s0 + $0x3b0] sm:$0xf]  ;;  %v639_v42 = vmax.bf16 %v10960_v3, %v383_v38 }
  0x76   :  { %v771_v49 = vmax.bf16 %v10960_v3, %v515_v47  ;;  %v386_v47 = vld [vmem:[%s10955_s0 + $0x1ac] sm:$0xf] }
  0x77   :  { %v642_v51 = vmax.bf16 %v10960_v3, %v386_v47  ;;  %v403_v47 = vld [vmem:[%s10955_s0 + $0x1f0] sm:$0xf] }
  0x78   :  { %7708 = vmatmul.mubr.msk.bf16.gmra.mrb[56].mxu0 %vm1695_vm0, %v6832_v56  ;;  %v761_v56 = vmax.bf16 %v10960_v3, %v505_v54  ;;  %v774_v54 = vmax.bf16 %v10960_v3, %v518_v52  ;;  %v643_v52 = vmax.bf16 %v10960_v3, %v387_v48  ;;  %v404_v48 = vld [vmem:[%s10955_s0 + $0x1f4] sm:$0xf] }
  0x79   :  { %7711 = vmatprep.mubr.msk.bf16.mxu0 %vm1695_vm0, %v6833_v57  ;;  %7864 = vmatmul.mubr.msk.bf16.gmra.mrb[56].mxu1 %vm1695_vm0, %v6910_v62  ;;  %v762_v57 = vmax.bf16 %v10960_v3, %v506_v55  ;;  %v358_v62 = vld [vmem:[%s10955_s0 + $0x13c] sm:$0xf] }
  0x7a   :  { %7867 = vmatprep.mubr.msk.bf16.mxu1 %vm1695_vm0, %v6911_v63  ;;  %v614_v4 = vmax.bf16 %v10960_v3, %v358_v62  ;;  %v372_v62 = vld [vmem:[%s10955_s0 + $0x174] sm:$0xf] }
  0x7b   :  { %v6916_v63 = vcombine.low %v761_v56, %v762_v57  ;;  %v6921_v56 = vcombine.low %v771_v49, %v772_v50  ;;  %v388_v49 = vld [vmem:[%s10955_s0 + $0x1b4] sm:$0xf] }
  0x80   :  { %7712 = vmatmul.mubr.msk.bf16.gmra.mrb[60].mxu0 %vm1695_vm0, %v6834_v9  ;;  %v763_v9 = vmax.bf16 %v10960_v3, %v507_v7  ;;  %v776_v7 = vmax.bf16 %v10960_v3, %v520_v5 }
  0x81   :  { %7715 = vmatprep.mubr.msk.bf16.mxu0 %vm1695_vm0, %v6835_v10  ;;  %7868 = vmatmul.mubr.msk.bf16.gmra.mrb[60].mxu1 %vm1695_vm0, %v6912_v15  ;;  %v764_v10 = vmax.bf16 %v10960_v3, %v508_v8  ;;  %v6842_v15 = vcombine.low %v613_v2, %v614_v4  ;;  %v628_v2 = vmax.bf16 %v10960_v3, %v372_v62  ;;  %v519_v4 = vld [vmem:[%s10955_s0 + $0x3c0] sm:$0xf]  ;;  %v521_v8 = vld [vmem:[%s10955_s0 + $0x3c8] sm:$0xf] }
  0x82   :  { %7871 = vmatprep.mubr.msk.bf16.mxu1 %vm1695_vm0, %v6913_v36  ;;  %v6919_v36 = vcombine.low %v767_v29, %v768_v30  ;;  %v775_v6 = vmax.bf16 %v10960_v3, %v519_v4  ;;  %v380_v29 = vld [vmem:[%s10955_s0 + $0x194] sm:$0xf]  ;;  %v633_v30 = vmax.bf16 %v10960_v3, %v377_v26  ;;  %v398_v26 = vld [vmem:[%s10955_s0 + $0x1dc] sm:$0xf] }
  0x83   :  { %v6917_v16 = vcombine.low %v763_v9, %v764_v10  ;;  %v522_v9 = vld [vmem:[%s10955_s0 + $0x3cc] sm:$0xf]  ;;  %v777_v10 = vmax.bf16 %v10960_v3, %v521_v8 }
  0x84   :  { %v778_v11 = vmax.bf16 %v10960_v3, %v522_v9  ;;  %v394_v8 = vld [vmem:[%s10955_s0 + $0x1cc] sm:$0xf] }
  0x88   :  { %7716 = vmatmul.mubr.msk.bf16.gmra.mrb[64].mxu0 %vm1695_vm0, %v6836_v20  ;;  %v6918_v20 = vcombine.low %v765_v13, %v766_v14  ;;  %v6923_v13 = vcombine.low %v775_v6, %v776_v7  ;;  %v6849_v14 = vcombine.low %v627_v1, %v628_v2  ;;  %v393_v7 = vld [vmem:[%s10955_s0 + $0x1c8] sm:$0xf] }
  0x89   :  { %7719 = vmatprep.mubr.msk.bf16.mxu0 %vm1695_vm0, %v6837_v23  ;;  %7872 = vmatmul.mubr.msk.bf16.gmra.mrb[64].mxu1 %vm1695_vm0, %v6914_v39  ;;  %v617_v23 = vmax.bf16 %v10960_v3, %v361_v18  ;;  %v366_v39 = vld [vmem:[%s10955_s0 + $0x15c] sm:$0xf]  ;;  %v375_v18 = vld [vmem:[%s10955_s0 + $0x180] sm:$0xf] }
  0x8a   :  { %7875 = vmatprep.mubr.msk.bf16.mxu1 %vm1695_vm0, %v6915_v59  ;;  %v622_v44 = vmax.bf16 %v10960_v3, %v366_v39  ;;  %v370_v59 = vld [vmem:[%s10955_s0 + $0x16c] sm:$0xf]  ;;  %v631_v22 = vmax.bf16 %v10960_v3, %v375_v18  ;;  %v384_v39 = vld [vmem:[%s10955_s0 + $0x1a4] sm:$0xf] }
  0x8b   :  { %v6844_v35 = vcombine.low %v617_v23, %v618_v24  ;;  %v626_v0 = vmax.bf16 %v10960_v3, %v370_v59  ;;  %v632_v23 = vmax.bf16 %v10960_v3, %v376_v19  ;;  %v392_v59 = vld [vmem:[%s10955_s0 + $0x1c4] sm:$0xf] }
  0x8c   :  { %v6846_v55 = vcombine.low %v621_v43, %v622_v44  ;;  %v640_v43 = vmax.bf16 %v10960_v3, %v384_v39 }
  0x8d   :  { %v6851_v25 = vcombine.low %v631_v22, %v632_v23 }
  0x90   :  { %7720 = vmatmul.mubr.msk.bf16.gmra.mrb[68].mxu0 %vm1695_vm0, %v6838_v40  ;;  %v6920_v40 = vcombine.low %v769_v33, %v770_v34  ;;  %v636_v33 = vmax.bf16 %v10960_v3, %v380_v29  ;;  %v6852_v34 = vcombine.low %v633_v30, %v634_v31  ;;  %v399_v29 = vld [vmem:[%s10955_s0 + $0x1e0] sm:$0xf]  ;;  %v400_v30 = vld [vmem:[%s10955_s0 + $0x1e4] sm:$0xf] }
  0x91   :  { %7723 = vmatprep.mubr.msk.bf16.mxu0 %vm1695_vm0, %v6839_v41  ;;  %7876 = vmatmul.mubr.msk.bf16.gmra.mrb[68].mxu1 %vm1695_vm0, %v6916_v63  ;;  %v367_v41 = vld [vmem:[%s10955_s0 + $0x160] sm:$0xf] }
  0x92   :  { %7879 = vmatprep.mubr.msk.bf16.mxu1 %vm1695_vm0, %v6917_v16  ;;  %v623_v45 = vmax.bf16 %v10960_v3, %v367_v41  ;;  %v374_v16 = vld [vmem:[%s10955_s0 + $0x17c] sm:$0xf] }
  0x93   :  { %v630_v21 = vmax.bf16 %v10960_v3, %v374_v16  ;;  %v650_v16 = vmax.bf16 %v10960_v3, %v394_v8 }
  0x94   :  { %v6847_v57 = vcombine.low %v623_v45, %v624_v46  ;;  %v6855_v45 = vcombine.low %v639_v42, %v640_v43  ;;  %v385_v46 = vld [vmem:[%s10955_s0 + $0x1a8] sm:$0xf] }
  0x95   :  { %v641_v50 = vmax.bf16 %v10960_v3, %v385_v46  ;;  %v401_v43 = vld [vmem:[%s10955_s0 + $0x1e8] sm:$0xf] }
  0x98   :  { %7724 = vmatmul.mubr.msk.bf16.gmra.mrb[72].mxu0 %vm1695_vm0, %v6840_v58  ;;  %v369_v58 = vld [vmem:[%s10955_s0 + $0x168] sm:$0xf] }
  0x99   :  { %7727 = vmatprep.mubr.msk.bf16.mxu0 %vm1695_vm0, %v6841_v60  ;;  %7880 = vmatmul.mubr.msk.bf16.gmra.mrb[72].mxu1 %vm1695_vm0, %v6918_v20  ;;  %v6922_v60 = vcombine.low %v773_v53, %v774_v54  ;;  %v625_v63 = vmax.bf16 %v10960_v3, %v369_v58  ;;  %v644_v53 = vmax.bf16 %v10960_v3, %v388_v49  ;;  %v391_v58 = vld [vmem:[%s10955_s0 + $0x1c0] sm:$0xf] }
  0x9a   :  { %7883 = vmatprep.mubr.msk.bf16.mxu1 %vm1695_vm0, %v6919_v36  ;;  %v381_v36 = vld [vmem:[%s10955_s0 + $0x198] sm:$0xf]  ;;  %v6856_v54 = vcombine.low %v641_v50, %v642_v51  ;;  %v647_v62 = vmax.bf16 %v10960_v3, %v391_v58  ;;  %v657_v51 = vmax.bf16 %v10960_v3, %v401_v43 }
  0x9b   :  { %v6848_v12 = vcombine.low %v625_v63, %v626_v0  ;;  %v648_v63 = vmax.bf16 %v10960_v3, %v392_v59 }
  0x9d   :  { %v6859_v6 = vcombine.low %v647_v62, %v648_v63  ;;  %v406_v62 = vld [vmem:[%s10955_s0 + $0x1fc] sm:$0xf] }
  0xa0   :  { %7728 = vmatmul.mubr.msk.bf16.gmra.mrb[76].mxu0 %vm1695_vm0, %v6842_v15  ;;  %v373_v15 = vld [vmem:[%s10955_s0 + $0x178] sm:$0xf] }
  0xa1   :  { %7731 = vmatprep.mubr.msk.bf16.mxu0 %vm1695_vm0, %v6843_v17  ;;  %7884 = vmatmul.mubr.msk.bf16.gmra.mrb[76].mxu1 %vm1695_vm0, %v6920_v40  ;;  %v6924_v17 = vcombine.low %v777_v10, %v778_v11  ;;  %v629_v20 = vmax.bf16 %v10960_v3, %v373_v15  ;;  %v637_v40 = vmax.bf16 %v10960_v3, %v381_v36  ;;  %v395_v11 = vld [vmem:[%s10955_s0 + $0x1d0] sm:$0xf] }
  0xa2   :  { %7887 = vmatprep.mubr.msk.bf16.mxu1 %vm1695_vm0, %v6921_v56  ;;  %v389_v56 = vld [vmem:[%s10955_s0 + $0x1b8] sm:$0xf]  ;;  %v649_v15 = vmax.bf16 %v10960_v3, %v393_v7  ;;  %v656_v36 = vmax.bf16 %v10960_v3, %v400_v30  ;;  %v662_v7 = vmax.bf16 %v10960_v3, %v406_v62 }
  0xa3   :  { %v6850_v24 = vcombine.low %v629_v20, %v630_v21 }
  0xa4   :  { %v6860_v21 = vcombine.low %v649_v15, %v650_v16  ;;  %v409_v16 = vld [vmem:[%s10955_s0 + $0x208] sm:$0xf] }
  0xa8   :  { %7732 = vmatmul.mubr.msk.bf16.gmra.mrb[80].mxu0 %vm1695_vm0, %v6844_v35  ;;  %v6853_v35 = vcombine.low %v635_v32, %v636_v33 }
  0xa9   :  { %7735 = vmatprep.mubr.msk.bf16.mxu0 %vm1695_vm0, %v6845_v37  ;;  %7888 = vmatmul.mubr.msk.bf16.gmra.mrb[80].mxu1 %vm1695_vm0, %v6922_v60  ;;  %v382_v37 = vld [vmem:[%s10955_s0 + $0x19c] sm:$0xf]  ;;  %v645_v60 = vmax.bf16 %v10960_v3, %v389_v56 }
  0xaa   :  { %7891 = vmatprep.mubr.msk.bf16.mxu1 %vm1695_vm0, %v6923_v13  ;;  %v638_v41 = vmax.bf16 %v10960_v3, %v382_v37 }
  0xac   :  { %v6854_v44 = vcombine.low %v637_v40, %v638_v41 }
  0xb0   :  { %7736 = vmatmul.mubr.msk.bf16.gmra.mrb[84].mxu0 %vm1695_vm0, %v6846_v55  ;;  %v6857_v55 = vcombine.low %v643_v52, %v644_v53  ;;  %v659_v53 = vmax.bf16 %v10960_v3, %v403_v47 }
  0xb1   :  { %7739 = vmatprep.mubr.msk.bf16.mxu0 %vm1695_vm0, %v6847_v57  ;;  %7892 = vmatmul.mubr.msk.bf16.gmra.mrb[84].mxu1 %vm1695_vm0, %v6924_v17  ;;  %v390_v57 = vld [vmem:[%s10955_s0 + $0x1bc] sm:$0xf]  ;;  %v651_v17 = vmax.bf16 %v10960_v3, %v395_v11 }
  0xb2   :  { %v646_v61 = vmax.bf16 %v10960_v3, %v390_v57 }
  0xb4   :  { %v6858_v2 = vcombine.low %v645_v60, %v646_v61  ;;  %v405_v61 = vld [vmem:[%s10955_s0 + $0x1f8] sm:$0xf] }
  0xb8   :  { %7740 = vmatmul.mubr.msk.bf16.gmra.mrb[88].mxu0 %vm1695_vm0, %v6848_v12  ;;  %v396_v12 = vld [vmem:[%s10955_s0 + $0x1d4] sm:$0xf] }
  0xb9   :  { %7743 = vmatprep.mubr.msk.bf16.mxu0 %vm1695_vm0, %v6849_v14  ;;  %v652_v18 = vmax.bf16 %v10960_v3, %v396_v12 }
  0xc0   :  { %7744 = vmatmul.mubr.msk.bf16.gmra.mrb[92].mxu0 %vm1695_vm0, %v6850_v24  ;;  %v6861_v24 = vcombine.low %v651_v17, %v652_v18  ;;  %v410_v17 = vld [vmem:[%s10955_s0 + $0x20c] sm:$0xf] }
  0xc1   :  { %7747 = vmatprep.mubr.msk.bf16.mxu0 %vm1695_vm0, %v6851_v25  ;;  %v397_v25 = vld [vmem:[%s10955_s0 + $0x1d8] sm:$0xf] }
  0xc2   :  { %v653_v33 = vmax.bf16 %v10960_v3, %v397_v25  ;;  %v666_v25 = vmax.bf16 %v10960_v3, %v410_v17 }
  0xc8   :  { %7748 = vmatmul.mubr.msk.bf16.gmra.mrb[96].mxu0 %vm1695_vm0, %v6852_v34  ;;  %v654_v34 = vmax.bf16 %v10960_v3, %v398_v26 }
  0xc9   :  { %7751 = vmatprep.mubr.msk.bf16.mxu0 %vm1695_vm0, %v6853_v35  ;;  %v655_v35 = vmax.bf16 %v10960_v3, %v399_v29 }
  0xca   :  { %v6862_v39 = vcombine.low %v653_v33, %v654_v34  ;;  %v413_v34 = vld [vmem:[%s10955_s0 + $0x218] sm:$0xf] }
  0xcb   :  { %v6863_v42 = vcombine.low %v655_v35, %v656_v36  ;;  %v414_v35 = vld [vmem:[%s10955_s0 + $0x21c] sm:$0xf]  ;;  %v669_v43 = vmax.bf16 %v10960_v3, %v413_v34 }
  0xd0   :  { %7752 = vmatmul.mubr.msk.bf16.gmra.mrb[100].mxu0 %vm1695_vm0, %v6854_v44  ;;  %v402_v44 = vld [vmem:[%s10955_s0 + $0x1ec] sm:$0xf] }
  0xd1   :  { %7755 = vmatprep.mubr.msk.bf16.mxu0 %vm1695_vm0, %v6855_v45  ;;  %v658_v52 = vmax.bf16 %v10960_v3, %v402_v44  ;;  %v670_v44 = vmax.bf16 %v10960_v3, %v414_v35  ;;  %v425_v35 = vld [vmem:[%s10955_s0 + $0x248] sm:$0xf] }
  0xd3   :  { %v6864_v57 = vcombine.low %v657_v51, %v658_v52 }
  0xd8   :  { %7756 = vmatmul.mubr.msk.bf16.gmra.mrb[104].mxu0 %vm1695_vm0, %v6856_v54  ;;  %v660_v54 = vmax.bf16 %v10960_v3, %v404_v48 }
  0xd9   :  { %7759 = vmatprep.mubr.msk.bf16.mxu0 %vm1695_vm0, %v6857_v55 }
  0xda   :  { %v6865_v60 = vcombine.low %v659_v53, %v660_v54  ;;  %v417_v53 = vld [vmem:[%s10955_s0 + $0x228] sm:$0xf]  ;;  %v418_v54 = vld [vmem:[%s10955_s0 + $0x22c] sm:$0xf] }
  0xdb   :  { %v7653_v0 = vpop.f32.mrb[0].mxu0  ;;  %v673_v62 = vmax.bf16 %v10960_v3, %v417_v53  ;;  %v523_v53 = vld [vmem:[%s10955_s0 + $0x3d0] sm:$0xf] }
  0xdc   :  { %3912 = vadd.xlane.f32.xlu1 %v7653_v0  ;;  %v2114_v1 = vpop.f32.mrb[1].mxu0  ;;  %v7809_v4 = vpop.f32.mrb[0].mxu1 }
  0xdd   :  { %3908 = vadd.xlane.f32.xlu0 %v2114_v1  ;;  %v7654_v5 = vpop.f32.mrb[2].mxu0  ;;  %v2738_v10 = vpop.f32.mrb[1].mxu1  ;;  %v407_v1 = vld [vmem:[%s10955_s0 + $0x200] sm:$0xf] }
  0xde   :  { %v2117_v9 = vpop.f32.mrb[3].mxu0  ;;  %v7810_v13 = vpop.f32.mrb[2].mxu1  ;;  %v663_v8 = vmax.bf16 %v10960_v3, %v407_v1  ;;  %v674_v1 = vmax.bf16 %v10960_v3, %v418_v54  ;;  %v524_v54 = vld [vmem:[%s10955_s0 + $0x3d4] sm:$0xf] }
  0xdf   :  { %v2741_v14 = vpop.f32.mrb[3].mxu1 }
  0xe0   :  { %4224 = vadd.xlane.f32.xlu1 %v7809_v4  ;;  %7760 = vmatmul.mubr.msk.bf16.gmra.mrb[108].mxu0 %vm1695_vm0, %v6858_v2  ;;  %v408_v2 = vld [vmem:[%s10955_s0 + $0x204] sm:$0xf] }
  0xe1   :  { %3910 = vadd.xlane.f32.xlu0 %v2117_v9  ;;  %7763 = vmatprep.mubr.msk.bf16.mxu0 %vm1695_vm0, %v6859_v6  ;;  %v661_v6 = vmax.bf16 %v10960_v3, %v405_v61  ;;  %v664_v9 = vmax.bf16 %v10960_v3, %v408_v2 }
  0xe3   :  { %v7657_v19 = vpop.f32.mrb[4].mxu0  ;;  %v6866_v12 = vcombine.low %v661_v6, %v662_v7  ;;  %v6867_v15 = vcombine.low %v663_v8, %v664_v9  ;;  %v6872_v8 = vcombine.low %v673_v62, %v674_v1  ;;  %v779_v62 = vmax.bf16 %v10960_v3, %v523_v53 }
  0xe4   :  { %4220 = vadd.xlane.f32.xlu1 %v2738_v10  ;;  %v2130_v20 = vpop.f32.mrb[5].mxu0  ;;  %v7813_v22 = vpop.f32.mrb[4].mxu1  ;;  %v780_v1 = vmax.bf16 %v10960_v3, %v524_v54 }
  0xe5   :  { %3920 = vadd.xlane.f32.xlu0 %v7657_v19  ;;  %v7658_v23 = vpop.f32.mrb[6].mxu0  ;;  %v2754_v28 = vpop.f32.mrb[5].mxu1 }
  0xe6   :  { %v2133_v27 = vpop.f32.mrb[7].mxu0  ;;  %v7814_v31 = vpop.f32.mrb[6].mxu1 }
  0xe7   :  { %v2757_v32 = vpop.f32.mrb[7].mxu1 }
  0xe8   :  { %3914 = vadd.xlane.f32.xlu1 %v7654_v5  ;;  %7764 = vmatmul.mubr.msk.bf16.gmra.mrb[112].mxu0 %vm1695_vm0, %v6860_v21  ;;  %v412_v21 = vld [vmem:[%s10955_s0 + $0x214] sm:$0xf] }
  0xe9   :  { %4232 = vadd.xlane.f32.xlu0 %v7813_v22  ;;  %7767 = vmatprep.mubr.msk.bf16.mxu0 %vm1695_vm0, %v6861_v24  ;;  %v665_v24 = vmax.bf16 %v10960_v3, %v409_v16  ;;  %v422_v16 = vld [vmem:[%s10955_s0 + $0x23c] sm:$0xf] }
  0xeb   :  { %v7661_v37 = vpop.f32.mrb[8].mxu0  ;;  %v6868_v30 = vcombine.low %v665_v24, %v666_v25 }
  0xec   :  { %4226 = vadd.xlane.f32.xlu1 %v7810_v13  ;;  %v2146_v38 = vpop.f32.mrb[9].mxu0  ;;  %v7817_v41 = vpop.f32.mrb[8].mxu1 }
  0xed   :  { %3916 = vadd.xlane.f32.xlu0 %v2130_v20  ;;  %v9037_v40 = vpop.f32.mrb[10].mxu0  ;;  %v2770_v46 = vpop.f32.mrb[9].mxu1  ;;  %v411_v20 = vld [vmem:[%s10955_s0 + $0x210] sm:$0xf] }
  0xee   :  { %v9045_v45 = vpop.f32.mrb[11].mxu0  ;;  %v7818_v49 = vpop.f32.mrb[10].mxu1  ;;  %v667_v26 = vmax.bf16 %v10960_v3, %v411_v20  ;;  %v424_v20 = vld [vmem:[%s10955_s0 + $0x244] sm:$0xf] }
  0xef   :  { %v2773_v50 = vpop.f32.mrb[11].mxu1 }
  0xf0   :  { %4222 = vadd.xlane.f32.xlu1 %v2741_v14  ;;  %7768 = vmatmul.mubr.msk.bf16.gmra.mrb[116].mxu0 %vm1695_vm0, %v6862_v39  ;;  %v416_v39 = vld [vmem:[%s10955_s0 + $0x224] sm:$0xf] }
  0xf1   :  { %4234 = vadd.xlane.f32.xlu0 %v7814_v31  ;;  %7771 = vmatprep.mubr.msk.bf16.mxu0 %vm1695_vm0, %v6863_v42  ;;  %v672_v47 = vmax.bf16 %v10960_v3, %v416_v39 }
  0xf3   :  { %v9059_v55 = vpop.f32.mrb[12].mxu0 }
  0xf4   :  { %4228 = vadd.xlane.f32.xlu1 %v2754_v28  ;;  %v9061_v56 = vpop.f32.mrb[13].mxu0  ;;  %v9065_v59 = vpop.f32.mrb[12].mxu1 }
  0xf5   :  { %4230 = vadd.xlane.f32.xlu0 %v2757_v32  ;;  %v9063_v58 = vpop.f32.mrb[14].mxu0  ;;  %v9075_v0 = vpop.f32.mrb[13].mxu1 }
  0xf6   :  { %v9073_v63 = vpop.f32.mrb[15].mxu0  ;;  %v9083_v4 = vpop.f32.mrb[14].mxu1 }
  0xf7   :  { %v9085_v5 = vpop.f32.mrb[15].mxu1 }
  0xf8   :  { %3922 = vadd.xlane.f32.xlu1 %v7658_v23  ;;  %7772 = vmatmul.mubr.msk.bf16.gmra.mrb[120].mxu0 %vm1695_vm0, %v6864_v57  ;;  %v420_v57 = vld [vmem:[%s10955_s0 + $0x234] sm:$0xf] }
  0xf9   :  { %3928 = vadd.xlane.f32.xlu0 %v7661_v37  ;;  %7775 = vmatprep.mubr.msk.bf16.mxu0 %vm1695_vm0, %v6865_v60  ;;  %v676_v6 = vmax.bf16 %v10960_v3, %v420_v57 }
  0xfb   :  { %v9093_v10 = vpop.f32.mrb[16].mxu0 }
  0xfc   :  { %3918 = vadd.xlane.f32.xlu1 %v2133_v27  ;;  %v9095_v11 = vpop.f32.mrb[17].mxu0  ;;  %v9099_v14 = vpop.f32.mrb[16].mxu1  ;;  %v668_v27 = vmax.bf16 %v10960_v3, %v412_v21 }
  0xfd   :  { %3924 = vadd.xlane.f32.xlu0 %v2146_v38  ;;  %v9097_v13 = vpop.f32.mrb[18].mxu0  ;;  %v9109_v19 = vpop.f32.mrb[17].mxu1  ;;  %v415_v38 = vld [vmem:[%s10955_s0 + $0x220] sm:$0xf] }
  0xfe   :  { %v9107_v18 = vpop.f32.mrb[19].mxu0  ;;  %v9117_v22 = vpop.f32.mrb[18].mxu1  ;;  %v6869_v33 = vcombine.low %v667_v26, %v668_v27  ;;  %v678_v26 = vmax.bf16 %v10960_v3, %v422_v16 }
  0xff   :  { %v9119_v23 = vpop.f32.mrb[19].mxu1 }
 0x100   :  { %4240 = vadd.xlane.f32.xlu1 %v7817_v41  ;;  %7776 = vmatmul.mubr.msk.bf16.gmra.mrb[124].mxu0 %vm1695_vm0, %v6866_v12 }
 0x101   :  { %4242 = vadd.xlane.f32.xlu0 %v7818_v49  ;;  %7779 = vmatprep.mubr.msk.bf16.mxu0 %vm1695_vm0, %v6867_v15  ;;  %v6870_v49 = vcombine.low %v669_v43, %v670_v44  ;;  %v421_v15 = vld [vmem:[%s10955_s0 + $0x238] sm:$0xf] }
 0x102   :  { %v677_v25 = vmax.bf16 %v10960_v3, %v421_v15  ;;  %v6925_v15 = vcombine.low %v779_v62, %v780_v1 }
 0x103   :  { %v9127_v28 = vpop.f32.mrb[20].mxu0 }
 0x104   :  { %4236 = vadd.xlane.f32.xlu1 %v2770_v46  ;;  %v9129_v29 = vpop.f32.mrb[21].mxu0  ;;  %v9133_v32 = vpop.f32.mrb[20].mxu1  ;;  %v671_v46 = vmax.bf16 %v10960_v3, %v415_v38  ;;  %v6874_v34 = vcombine.low %v677_v25, %v678_v26  ;;  %7895 = vmatprep.mubr.msk.bf16.mxu1 %vm1695_vm0, %v6925_v15 }
 0x105   :  { %4238 = vadd.xlane.f32.xlu0 %v2773_v50  ;;  %v9131_v31 = vpop.f32.mrb[22].mxu0  ;;  %v9143_v37 = vpop.f32.mrb[21].mxu1 }
 0x106   :  { %v9141_v36 = vpop.f32.mrb[23].mxu0  ;;  %v9151_v41 = vpop.f32.mrb[22].mxu1  ;;  %v6871_v52 = vcombine.low %v671_v46, %v672_v47  ;;  %v428_v47 = vld [vmem:[%s10955_s0 + $0x254] sm:$0xf] }
 0x107   :  { %v9154_v42 = vpop.f32.mrb[23].mxu1 }
 0x108   :  { %3930 = vadd.xlane.f32.xlu1 %v9037_v40  ;;  %7780 = vmatmul.mubr.msk.bf16.gmra.mrb[128].mxu0 %vm1695_vm0, %v6868_v30  ;;  %v680_v30 = vmax.bf16 %v10960_v3, %v424_v20 }
 0x109   :  { %3936 = vadd.xlane.f32.xlu0 %v9059_v55  ;;  %7783 = vmatprep.mubr.msk.bf16.mxu0 %vm1695_vm0, %v6869_v33 }
 0x10b   :  { %v9163_v48 = vpop.f32.mrb[24].mxu0 }
 0x10c   :  { %3926 = vadd.xlane.f32.xlu1 %v9045_v45  ;;  %v9166_v40 = vpop.f32.mrb[25].mxu0  ;;  %v9171_v51 = vpop.f32.mrb[24].mxu1 }
 0x10d   :  { %3932 = vadd.xlane.f32.xlu0 %v9061_v56  ;;  %v9169_v50 = vpop.f32.mrb[26].mxu0  ;;  %v9181_v45 = vpop.f32.mrb[25].mxu1  ;;  %v419_v56 = vld [vmem:[%s10955_s0 + $0x230] sm:$0xf] }
 0x10e   :  { %v9179_v55 = vpop.f32.mrb[27].mxu0  ;;  %v9189_v60 = vpop.f32.mrb[26].mxu1  ;;  %v675_v2 = vmax.bf16 %v10960_v3, %v419_v56 }
 0x10f   :  { %v9192_v61 = vpop.f32.mrb[27].mxu1 }
 0x110   :  { %4248 = vadd.xlane.f32.xlu1 %v9065_v59  ;;  %7784 = vmatmul.mubr.msk.bf16.gmra.mrb[132].mxu0 %vm1695_vm0, %v6870_v49 }
 0x111   :  { %4250 = vadd.xlane.f32.xlu0 %v9083_v4  ;;  %7787 = vmatprep.mubr.msk.bf16.mxu0 %vm1695_vm0, %v6871_v52  ;;  %v6873_v4 = vcombine.low %v675_v2, %v676_v6  ;;  %v525_v2 = vld [vmem:[%s10955_s0 + $0x3d8] sm:$0xf]  ;;  %v526_v6 = vld [vmem:[%s10955_s0 + $0x3dc] sm:$0xf] }
 0x113   :  { %v9201_v7 = vpop.f32.mrb[28].mxu0 }
 0x114   :  { %4244 = vadd.xlane.f32.xlu1 %v9075_v0  ;;  %v9204_v59 = vpop.f32.mrb[29].mxu0  ;;  %v9209_v12 = vpop.f32.mrb[28].mxu1 }
 0x115   :  { %4246 = vadd.xlane.f32.xlu0 %v9085_v5  ;;  %v9207_v9 = vpop.f32.mrb[30].mxu0  ;;  %v9219_v0 = vpop.f32.mrb[29].mxu1  ;;  %v423_v5 = vld [vmem:[%s10955_s0 + $0x240] sm:$0xf] }
 0x116   :  { %v9217_v17 = vpop.f32.mrb[31].mxu0  ;;  %v9227_v21 = vpop.f32.mrb[30].mxu1  ;;  %v679_v27 = vmax.bf16 %v10960_v3, %v423_v5 }
 0x117   :  { %v9230_v24 = vpop.f32.mrb[31].mxu1 }
 0x118   :  { %3938 = vadd.xlane.f32.xlu1 %v9063_v58  ;;  %7788 = vmatmul.mubr.msk.bf16.gmra.mrb[136].mxu0 %vm1695_vm0, %v6872_v8  ;;  %v6875_v43 = vcombine.low %v679_v27, %v680_v30  ;;  %v781_v8 = vmax.bf16 %v10960_v3, %v525_v2  ;;  %v429_v30 = vld [vmem:[%s10955_s0 + $0x258] sm:$0xf]  ;;  %v433_v2 = vld [vmem:[%s10955_s0 + $0x268] sm:$0xf] }
 0x119   :  { %3944 = vadd.xlane.f32.xlu0 %v9093_v10  ;;  %7791 = vmatprep.mubr.msk.bf16.mxu0 %vm1695_vm0, %v6873_v4  ;;  %v426_v10 = vld [vmem:[%s10955_s0 + $0x24c] sm:$0xf]  ;;  %v782_v4 = vmax.bf16 %v10960_v3, %v526_v6 }
 0x11a   :  { %v682_v52 = vmax.bf16 %v10960_v3, %v426_v10  ;;  %v432_v10 = vld [vmem:[%s10955_s0 + $0x264] sm:$0xf]  ;;  %v434_v6 = vld [vmem:[%s10955_s0 + $0x26c] sm:$0xf] }
 0x11b   :  { %v9239_v33 = vpop.f32.mrb[32].mxu0  ;;  %v6926_v5 = vcombine.low %v781_v8, %v782_v4  ;;  %v688_v53 = vmax.bf16 %v10960_v3, %v432_v10  ;;  %v689_v4 = vmax.bf16 %v10960_v3, %v433_v2  ;;  %v690_v15 = vmax.bf16 %v10960_v3, %v434_v6  ;;  %v529_v2 = vld [vmem:[%s10955_s0 + $0x3e8] sm:$0xf]  ;;  %v530_v6 = vld [vmem:[%s10955_s0 + $0x3ec] sm:$0xf] }
 0x11c   :  { %3934 = vadd.xlane.f32.xlu1 %v9073_v63  ;;  %v9242_v58 = vpop.f32.mrb[33].mxu0  ;;  %v9253_v39 = vpop.f32.mrb[32].mxu1  ;;  %v427_v63 = vld [vmem:[%s10955_s0 + $0x250] sm:$0xf] }
 0x11d   :  { %3940 = vadd.xlane.f32.xlu0 %v9095_v11  ;;  %v9251_v38 = vpop.f32.mrb[34].mxu0  ;;  %v9260_v46 = vpop.f32.mrb[33].mxu1  ;;  %v681_v11 = vmax.bf16 %v10960_v3, %v425_v35  ;;  %v683_v57 = vmax.bf16 %v10960_v3, %v427_v63  ;;  %7896 = vmatmul.mubr.msk.bf16.gmra.mrb[88].mxu1 %vm1695_vm0, %v6926_v5 }
 0x11e   :  { %v9258_v44 = vpop.f32.mrb[35].mxu0  ;;  %v9265_v49 = vpop.f32.mrb[34].mxu1 }
 0x11f   :  { %v9276_v56 = vpop.f32.mrb[35].mxu1  ;;  %v6876_v25 = vcombine.low %v681_v11, %v682_v52 }
 0x120   :  { %4256 = vadd.xlane.f32.xlu1 %v9099_v14  ;;  %7792 = vmatmul.mubr.msk.bf16.gmra.mrb[140].mxu0 %vm1695_vm0, %v6874_v34  ;;  %v684_v14 = vmax.bf16 %v10960_v3, %v428_v47  ;;  %v685_v47 = vmax.bf16 %v10960_v3, %v429_v30 }
 0x121   :  { %4254 = vadd.xlane.f32.xlu0 %v9119_v23  ;;  %7795 = vmatprep.mubr.msk.bf16.mxu0 %vm1695_vm0, %v6875_v43 }
 0x122   :  { %v6877_v27 = vcombine.low %v683_v57, %v684_v14 }
 0x123   :  { %v9293_v16 = vpop.f32.mrb[36].mxu0 }
 0x124   :  { %4252 = vadd.xlane.f32.xlu1 %v9109_v19  ;;  %v9296_v20 = vpop.f32.mrb[37].mxu0  ;;  %v9302_v26 = vpop.f32.mrb[36].mxu1  ;;  %v430_v19 = vld [vmem:[%s10955_s0 + $0x25c] sm:$0xf] }
 0x125   :  { %3952 = vadd.xlane.f32.xlu0 %v9127_v28  ;;  %v9300_v23 = vpop.f32.mrb[38].mxu0  ;;  %v9313_v35 = vpop.f32.mrb[37].mxu1  ;;  %v431_v28 = vld [vmem:[%s10955_s0 + $0x260] sm:$0xf]  ;;  %v686_v11 = vmax.bf16 %v10960_v3, %v430_v19 }
 0x126   :  { %v9311_v34 = vpop.f32.mrb[39].mxu0  ;;  %v9321_v43 = vpop.f32.mrb[38].mxu1  ;;  %v687_v52 = vmax.bf16 %v10960_v3, %v431_v28 }
 0x127   :  { %v9324_v63 = vpop.f32.mrb[39].mxu1  ;;  %v6878_v57 = vcombine.low %v685_v47, %v686_v11 }
 0x128   :  { %3946 = vadd.xlane.f32.xlu1 %v9097_v13  ;;  %7796 = vmatmul.mubr.msk.bf16.gmra.mrb[144].mxu0 %vm1695_vm0, %v6876_v25 }
 0x129   :  { %3948 = vadd.xlane.f32.xlu0 %v9129_v29  ;;  %7799 = vmatprep.mubr.msk.bf16.mxu0 %vm1695_vm0, %v6877_v27  ;;  %v6879_v29 = vcombine.low %v687_v52, %v688_v53  ;;  %v6880_v27 = vcombine.low %v689_v4, %v690_v15  ;;  %v785_v4 = vmax.bf16 %v10960_v3, %v529_v2 }
 0x12b   :  { %v9333_v54 = vpop.f32.mrb[40].mxu0 }
 0x12c   :  { %4258 = vadd.xlane.f32.xlu1 %v9117_v22  ;;  %v9336_v13 = vpop.f32.mrb[41].mxu0  ;;  %v9341_v1 = vpop.f32.mrb[40].mxu1 }
 0x12d   :  { %4262 = vadd.xlane.f32.xlu0 %v9154_v42  ;;  %v9339_v62 = vpop.f32.mrb[42].mxu0  ;;  %v9351_v22 = vpop.f32.mrb[41].mxu1 }
 0x12e   :  { %v9349_v14 = vpop.f32.mrb[43].mxu0  ;;  %v9353_v8 = vpop.f32.mrb[42].mxu1 }
 0x12f   :  { %v9356_v42 = vpop.f32.mrb[43].mxu1 }
 0x130   :  { %3942 = vadd.xlane.f32.xlu1 %v9107_v18  ;;  %7800 = vmatmul.mubr.msk.bf16.gmra.mrb[148].mxu0 %vm1695_vm0, %v6878_v57 }
 0x131   :  { %3960 = vadd.xlane.f32.xlu0 %v9163_v48  ;;  %7803 = vmatprep.mubr.msk.bf16.mxu0 %vm1695_vm0, %v6879_v29 }
 0x133   :  { %v9363_v5 = vpop.f32.mrb[44].mxu0 }
 0x134   :  { %4264 = vadd.xlane.f32.xlu1 %v9133_v32  ;;  %v9366_v25 = vpop.f32.mrb[45].mxu0  ;;  %v9371_v30 = vpop.f32.mrb[44].mxu1 }
 0x135   :  { %3956 = vadd.xlane.f32.xlu0 %v9166_v40  ;;  %v9369_v18 = vpop.f32.mrb[46].mxu0  ;;  %v9375_v28 = vpop.f32.mrb[45].mxu1 }
 0x136   :  { %v9373_v19 = vpop.f32.mrb[47].mxu0  ;;  %v9377_v48 = vpop.f32.mrb[46].mxu1 }
 0x137   :  { %v9381_v32 = vpop.f32.mrb[47].mxu1 }
 0x138   :  { %4260 = vadd.xlane.f32.xlu1 %v9143_v37  ;;  %7804 = vmatmul.mubr.msk.bf16.gmra.mrb[152].mxu0 %vm1695_vm0, %v6880_v27 }
 0x139   :  { %4274 = vadd.xlane.f32.xlu0 %v9189_v60  ;;  %v527_v60 = vld [vmem:[%s10955_s0 + $0x3e0] sm:$0xf] }
 0x13a   :  { %v783_v57 = vmax.bf16 %v10960_v3, %v527_v60 }
 0x13b   :  { %v9384_v10 = vpop.f32.mrb[48].mxu0 }
 0x13c   :  { %3954 = vadd.xlane.f32.xlu1 %v9131_v31  ;;  %v9387_v40 = vpop.f32.mrb[49].mxu0  ;;  %v9392_v11 = vpop.f32.mrb[48].mxu1  ;;  %v528_v31 = vld [vmem:[%s10955_s0 + $0x3e4] sm:$0xf] }
 0x13d   :  { %4270 = vadd.xlane.f32.xlu0 %v9192_v61  ;;  %v9390_v47 = vpop.f32.mrb[50].mxu0  ;;  %v9396_v37 = vpop.f32.mrb[49].mxu1  ;;  %v784_v29 = vmax.bf16 %v10960_v3, %v528_v31 }
 0x13e   :  { %v9394_v52 = vpop.f32.mrb[51].mxu0  ;;  %10962 = vst [vmem:[#allocation6_spill] sm:$0xff] %v9396_v37  ;;  %v9398_v53 = vpop.f32.mrb[50].mxu1 }
 0x13f   :  { %v9407_v61 = vpop.f32.mrb[51].mxu1  ;;  %v6927_v15 = vcombine.low %v783_v57, %v784_v29 }
 0x140   :  { %4266 = vadd.xlane.f32.xlu1 %v9151_v41  ;;  %10963 = vst [vmem:[#allocation7_spill] sm:$0xff] %v9407_v61  ;;  %v786_v41 = vmax.bf16 %v10960_v3, %v530_v6 }
 0x141   :  { %3968 = vadd.xlane.f32.xlu0 %v9201_v7  ;;  %7899 = vmatprep.mubr.msk.bf16.mxu1 %vm1695_vm0, %v6927_v15 }
 0x142   :  { %v6928_v60 = vcombine.low %v785_v4, %v786_v41 }
 0x143   :  { %v9420_v27 = vpop.f32.mrb[52].mxu0 }
 0x144   :  { %3950 = vadd.xlane.f32.xlu1 %v9141_v36  ;;  %v9423_v31 = vpop.f32.mrb[53].mxu0  ;;  %v9429_v37 = vpop.f32.mrb[52].mxu1  ;;  %7900 = vmatmul.mubr.msk.bf16.gmra.mrb[92].mxu1 %vm1695_vm0, %v6928_v60 }
 0x145   :  { %3964 = vadd.xlane.f32.xlu0 %v9204_v59  ;;  %v9427_v61 = vpop.f32.mrb[54].mxu0  ;;  %v9434_v57 = vpop.f32.mrb[53].mxu1 }
 0x146   :  { %v9432_v7 = vpop.f32.mrb[55].mxu0  ;;  %v9436_v29 = vpop.f32.mrb[54].mxu1 }
 0x147   :  { %v9439_v36 = vpop.f32.mrb[55].mxu1 }
 0x148   :  { %4272 = vadd.xlane.f32.xlu1 %v9171_v51 }
 0x149   :  { %4282 = vadd.xlane.f32.xlu0 %v9227_v21 }
 0x14b   :  { %v9442_v2 = vpop.f32.mrb[56].mxu0 }
 0x14c   :  { %4268 = vadd.xlane.f32.xlu1 %v9181_v45  ;;  %v9445_v59 = vpop.f32.mrb[57].mxu0  ;;  %v9450_v4 = vpop.f32.mrb[56].mxu1 }
 0x14d   :  { %4278 = vadd.xlane.f32.xlu0 %v9230_v24  ;;  %v9448_v6 = vpop.f32.mrb[58].mxu0  ;;  %v9454_v15 = vpop.f32.mrb[57].mxu1 }
 0x14e   :  { %10964 = vst [vmem:[#allocation8_spill] sm:$0xff] %v9448_v6  ;;  %v9452_v41 = vpop.f32.mrb[59].mxu0  ;;  %v9456_v51 = vpop.f32.mrb[58].mxu1 }
 0x14f   :  { %10965 = vst [vmem:[#allocation9_spill] sm:$0xff] %v9452_v41  ;;  %v9459_v21 = vpop.f32.mrb[59].mxu1 }
 0x150   :  { %3962 = vadd.xlane.f32.xlu1 %v9169_v50 }
 0x151   :  { %3976 = vadd.xlane.f32.xlu0 %v9239_v33 }
 0x153   :  { %v9462_v45 = vpop.f32.mrb[60].mxu0 }
 0x154   :  { %3958 = vadd.xlane.f32.xlu1 %v9179_v55  ;;  %v9465_v24 = vpop.f32.mrb[61].mxu0  ;;  %v9470_v3 = vpop.f32.mrb[60].mxu1 }
 0x155   :  { %10966 = vst [vmem:[#allocation10_spill] sm:$0xff] %v9465_v24  ;;  %3972 = vadd.xlane.f32.xlu0 %v9242_v58  ;;  %v9468_v60 = vpop.f32.mrb[62].mxu0  ;;  %v9474_v6 = vpop.f32.mrb[61].mxu1 }
 0x156   :  { %10967 = vst [vmem:[#allocation11_spill] sm:$0xff] %v9468_v60  ;;  %v9472_v41 = vpop.f32.mrb[63].mxu0  ;;  %10969 = vst [vmem:[#allocation13_spill] sm:$0xff] %v9474_v6  ;;  %v9476_v50 = vpop.f32.mrb[62].mxu1 }
 0x157   :  { %10968 = vst [vmem:[#allocation12_spill] sm:$0xff] %v9472_v41  ;;  %10970 = vst [vmem:[#allocation14_spill] sm:$0xff] %v9476_v50  ;;  %v9479_v33 = vpop.f32.mrb[63].mxu1 }
 0x158   :  { %4280 = vadd.xlane.f32.xlu1 %v9209_v12  ;;  %10971 = vst [vmem:[#allocation15_spill] sm:$0xff] %v9479_v33  ;;  %v531_v12 = vld [vmem:[%s10955_s0 + $0x3f0] sm:$0xf]  ;;  %v5195_v33 = vlaneseq }
 0x159   :  { %4290 = vadd.xlane.f32.xlu0 %v9265_v49 }
 0x15b   :  { %v9482_v55 = vpop.f32.mrb[64].mxu0 }
 0x15c   :  { %10972 = vst [vmem:[#allocation16_spill] sm:$0xff] %v9482_v55  ;;  %4276 = vadd.xlane.f32.xlu1 %v9219_v0  ;;  %v9485_v58 = vpop.f32.mrb[65].mxu0  ;;  %v9492_v6 = vpop.f32.mrb[64].mxu1  ;;  %v532_v0 = vld [vmem:[%s10955_s0 + $0x3f4] sm:$0xf] }
 0x15d   :  { %10973 = vst [vmem:[#allocation17_spill] sm:$0xff] %v9485_v58  ;;  %4286 = vadd.xlane.f32.xlu0 %v9276_v56  ;;  %v9488_v60 = vpop.f32.mrb[66].mxu0  ;;  %10976 = vst [vmem:[#allocation20_spill] sm:$0xff] %v9492_v6  ;;  %v9494_v50 = vpop.f32.mrb[65].mxu1  ;;  %v10979_v56 = vmov 0  }
 0x15e   :  { %10974 = vst [vmem:[#allocation18_spill] sm:$0xff] %v9488_v60  ;;  %v9490_v41 = vpop.f32.mrb[67].mxu0  ;;  %10977 = vst [vmem:[#allocation21_spill] sm:$0xff] %v9494_v50  ;;  %v9503_v49 = vpop.f32.mrb[66].mxu1  ;;  %v787_v60 = vmax.bf16 %v10979_v56, %v531_v12  ;;  %v533_v50 = vld [vmem:[%s10955_s0 + $0x3f8] sm:$0xf] }
 0x15f   :  { %10975 = vst [vmem:[#allocation19_spill] sm:$0xff] %v9490_v41  ;;  %10978 = vst [vmem:[#allocation22_spill] sm:$0xff] %v9503_v49  ;;  %v788_v41 = vmax.bf16 %v10979_v56, %v532_v0  ;;  %v534_v6 = vld [vmem:[%s10955_s0 + $0x3fc] sm:$0xf]  ;;  %v9514_v58 = vpop.f32.mrb[67].mxu1 }
 0x160   :  { %3970 = vadd.xlane.f32.xlu1 %v9207_v9  ;;  %10980 = vst [vmem:[#allocation23_spill] sm:$0xff] %v9514_v58  ;;  %v789_v9 = vmax.bf16 %v10979_v56, %v533_v50  ;;  %v790_v49 = vmax.bf16 %v10979_v56, %v534_v6  ;;  %v9528_v50 = vand.u32 127, %v5195_v33 }
 0x161   :  { %3984 = vadd.xlane.f32.xlu0 %v9293_v16  ;;  %v6929_v12 = vcombine.low %v787_v60, %v788_v41  ;;  %v9533_v41 = vshrl.u32 %v5195_v33, 7 }
 0x162   :  { %v6930_v0 = vcombine.low %v789_v9, %v790_v49  ;;  %v5208_v49 = vadd.s32 4294967280, %v9528_v50 }
 0x163   :  { %v9518_v55 = vpop.f32.mrb[68].mxu0  ;;  %7903 = vmatprep.mubr.msk.bf16.mxu1 %vm1695_vm0, %v6929_v12 }
 0x164   :  { %3966 = vadd.xlane.f32.xlu1 %v9217_v17  ;;  %v9521_v24 = vpop.f32.mrb[69].mxu0  ;;  %7904 = vmatmul.mubr.msk.bf16.gmra.mrb[96].mxu1 %vm1695_vm0, %v6930_v0  ;;  %v5201_v17 = vadd.s32 4294967288, %v9528_v50  ;;  %v9538_v56 = vpop.f32.mrb[68].mxu1  ;;  %vm6491_vm0 = vcmask 1041409  }
 0x165   :  { %4296 = vadd.xlane.f32.xlu0 %v9302_v26  ;;  %v9525_v16 = vpop.f32.mrb[70].mxu0  ;;  %10983 = vst [vmem:[#allocation26_spill] sm:$0xff] %v9538_v56  ;;  %v9542_v12 = vpop.f32.mrb[69].mxu1 }
 0x166   :  { %10981 = vst [vmem:[#allocation24_spill] sm:$0xff] %v9525_v16  ;;  %v9530_v6 = vpop.f32.mrb[71].mxu0  ;;  %10985 = vst [vmem:[#allocation28_spill] sm:$0xff] %v9542_v12  ;;  %v9557_v56 = vsub.s32 %v5201_v17, %v9533_v41 }
 0x167   :  { %10982 = vst [vmem:[#allocation25_spill] sm:$0xff] %v9530_v6 }
 0x168   :  { %4288 = vadd.xlane.f32.xlu1 %v9253_v39  ;;  %v9547_v39 = vpop.f32.mrb[70].mxu1 }
 0x169   :  { %v3913_v60 = vpop.xlane.xlu1 %3912  ;;  %3980 = vadd.xlane.f32.xlu0 %v9296_v20  ;;  %10987 = vst [vmem:[#allocation30_spill] sm:$0xff] %v9547_v39  ;;  %v9551_v20 = vsub.s32 %v9528_v50, %v9533_v41  ;;  %v9566_v16 = vpop.f32.mrb[71].mxu1 }
 0x16a   :  { %v3909_v26 = vpop.xlane.xlu0 %3908  ;;  %10990 = vst [vmem:[#allocation33_spill] sm:$0xff] %v9566_v16 }
 0x16b   :  { %v9540_v9 = vpop.f32.mrb[72].mxu0  ;;  %v4420_v33 = vmul.f32 0.00048828125, %v3909_v26 }
 0x16c   :  { %10984 = vst [vmem:[#allocation27_spill] sm:$0xff] %v9540_v9  ;;  %4284 = vadd.xlane.f32.xlu1 %v9260_v46  ;;  %v9545_v0 = vpop.f32.mrb[73].mxu0  ;;  %v9562_v46 = vsub.s32 %v5208_v49, %v9533_v41 }
 0x16d   :  { %10986 = vst [vmem:[#allocation29_spill] sm:$0xff] %v9545_v0  ;;  %v9553_v6 = vpop.xlane.xlu1 %4224  ;;  %4298 = vadd.xlane.f32.xlu0 %v9321_v43  ;;  %v9559_v9 = vpop.f32.mrb[74].mxu0  ;;  %v4422_v0 = vmul.f32 0.00048828125, %v3913_v60  ;;  %v5215_v43 = vadd.s32 4294967272, %v9528_v50  ;;  %v5200_v17 = vrot.slane %v4420_v33, %v9551_v20 }
 0x16e   :  { %10988 = vst [vmem:[#allocation31_spill] sm:$0xff] %v9553_v6  ;;  %v3911_v12 = vpop.xlane.xlu0 %3910  ;;  %v9564_v39 = vpop.f32.mrb[75].mxu0 }
 0x16f   :  { %10989 = vst [vmem:[#allocation32_spill] sm:$0xff] %v9564_v39  ;;  %v4421_v58 = vmul.f32 0.00048828125, %v3911_v12  ;;  %v5212_v60 = vrot.slane %v4422_v0, %v9562_v46  ;;  %v9578_v12 = vpop.f32.mrb[72].mxu1 }
 0x170   :  { %3978 = vadd.xlane.f32.xlu1 %v9251_v38  ;;  %10992 = vst [vmem:[#allocation35_spill] sm:$0xff] %v9578_v12  ;;  %v9583_v39 = vpop.f32.mrb[73].mxu1 }
 0x171   :  { %v5205_v26 = vrot.slane %v4421_v58, %v9557_v56  ;;  %v9572_v6 = vpop.xlane.xlu1 %4220  ;;  %4294 = vadd.xlane.f32.xlu0 %v9324_v63  ;;  %10994 = vst [vmem:[#allocation37_spill] sm:$0xff] %v9583_v39  ;;  %v9587_v58 = vsub.s32 %v5215_v43, %v9533_v41  ;;  %v9592_v0 = vpop.f32.mrb[74].mxu1 }
 0x172   :  { %10991 = vst [vmem:[#allocation34_spill] sm:$0xff] %v9572_v6  ;;  %v9576_v49 = vpop.xlane.xlu0 %3920  ;;  %10996 = vst [vmem:[#allocation39_spill] sm:$0xff] %v9592_v0 }
 0x173   :  { %v5207_v16 = vsel %vm5206_vm1, %v5205_v26, %v5200_v17  ;;  %v9581_v38 = vpop.f32.mrb[76].mxu0  ;;  %v5222_v17 = vadd.s32 4294967264, %v9528_v50 }
 0x174   :  { %10993 = vst [vmem:[#allocation36_spill] sm:$0xff] %v9581_v38  ;;  %3974 = vadd.xlane.f32.xlu1 %v9258_v44  ;;  %v5214_v63 = vsel %vm5213_vm2, %v5212_v60, %v5207_v16  ;;  %v9590_v33 = vpop.f32.mrb[77].mxu0  ;;  %v9600_v44 = vpop.f32.mrb[75].mxu1 }
 0x175   :  { %10995 = vst [vmem:[#allocation38_spill] sm:$0xff] %v9590_v33  ;;  %v3915_v6 = vpop.xlane.xlu1 %3914  ;;  %3992 = vadd.xlane.f32.xlu0 %v9333_v54  ;;  %v9596_v26 = vpop.f32.mrb[78].mxu0  ;;  %10999 = vst [vmem:[#allocation42_spill] sm:$0xff] %v9600_v44  ;;  %v9608_v54 = vsub.s32 %v5222_v17, %v9533_v41 }
 0x176   :  { %10997 = vst [vmem:[#allocation40_spill] sm:$0xff] %v9596_v26  ;;  %v4423_v12 = vmul.f32 0.00048828125, %v3915_v6  ;;  %v4233_v39 = vpop.xlane.xlu0 %4232  ;;  %v9598_v38 = vpop.f32.mrb[79].mxu0 }
 0x177   :  { %10998 = vst [vmem:[#allocation41_spill] sm:$0xff] %v9598_v38  ;;  %v9611_v0 = vpop.f32.mrb[76].mxu1 }
 0x178   :  { %v5219_v16 = vrot.slane %v4423_v12, %v9587_v58  ;;  %4292 = vadd.xlane.f32.xlu1 %v9313_v35  ;;  %11001 = vst [vmem:[#allocation44_spill] sm:$0xff] %v9611_v0  ;;  %v9615_v44 = vpop.f32.mrb[77].mxu1 }
 0x179   :  { %v9604_v43 = vpop.xlane.xlu1 %4226  ;;  %4304 = vadd.xlane.f32.xlu0 %v9341_v1  ;;  %11003 = vst [vmem:[#allocation46_spill] sm:$0xff] %v9615_v44  ;;  %v9620_v12 = vpop.f32.mrb[78].mxu1 }
 0x17a   :  { %11000 = vst [vmem:[#allocation43_spill] sm:$0xff] %v9604_v43  ;;  %v5221_v60 = vsel %vm5220_vm3, %v5219_v16, %v5214_v63  ;;  %v3917_v6 = vpop.xlane.xlu0 %3916  ;;  %11005 = vst [vmem:[#allocation48_spill] sm:$0xff] %v9620_v12  ;;  %v9631_v0 = vpop.f32.mrb[79].mxu1  ;;  %v4582_v12 = vmul.f32 0.00048828125, %v4233_v39  ;;  %v5236_v39 = vadd.s32 4294967248, %v9528_v50 }
 0x17b   :  { %v4424_v38 = vmul.f32 0.00048828125, %v3917_v6  ;;  %v9613_v26 = vpop.f32.mrb[80].mxu0  ;;  %11007 = vst [vmem:[#allocation50_spill] sm:$0xff] %v9631_v0 }
 0x17c   :  { %11002 = vst [vmem:[#allocation45_spill] sm:$0xff] %v9613_v26  ;;  %3986 = vadd.xlane.f32.xlu1 %v9300_v23  ;;  %v9618_v35 = vpop.f32.mrb[81].mxu0 }
 0x17d   :  { %11004 = vst [vmem:[#allocation47_spill] sm:$0xff] %v9618_v35  ;;  %v5226_v1 = vrot.slane %v4424_v38, %v9608_v54  ;;  %v9623_v17 = vpop.xlane.xlu1 %4222  ;;  %3988 = vadd.xlane.f32.xlu0 %v9336_v13  ;;  %v9626_v63 = vpop.f32.mrb[82].mxu0 }
 0x17e   :  { %11006 = vst [vmem:[#allocation49_spill] sm:$0xff] %v9623_v17  ;;  %v4235_v16 = vpop.xlane.xlu0 %4234  ;;  %v9628_v6 = vpop.f32.mrb[83].mxu0 }
 0x17f   :  { %v5228_v43 = vsel %vm5227_vm4, %v5226_v1, %v5221_v60  ;;  %v9635_v17 = vpop.f32.mrb[80].mxu1  ;;  %v4583_v13 = vmul.f32 0.00048828125, %v4235_v16 }
 0x180   :  { %3982 = vadd.xlane.f32.xlu1 %v9311_v34  ;;  %11008 = vst [vmem:[#allocation51_spill] sm:$0xff] %v9635_v17  ;;  %v9639_v33 = vpop.f32.mrb[81].mxu1  ;;  %v5229_v34 = vadd.s32 4294967256, %v9528_v50  ;;  %v6029_v17 = vrot.slane %v4582_v12, %v9562_v46 }
 0x181   :  { %v4229_v23 = vpop.xlane.xlu1 %4228  ;;  %4300 = vadd.xlane.f32.xlu0 %v9351_v22  ;;  %11010 = vst [vmem:[#allocation53_spill] sm:$0xff] %v9639_v33  ;;  %v9646_v22 = vpop.f32.mrb[82].mxu1  ;;  %v6034_v0 = vrot.slane %v4583_v13, %v9587_v58 }
 0x182   :  { %v4580_v38 = vmul.f32 0.00048828125, %v4229_v23  ;;  %v4231_v44 = vpop.xlane.xlu0 %4230  ;;  %11012 = vst [vmem:[#allocation55_spill] sm:$0xff] %v9646_v22  ;;  %v9667_v12 = vsub.s32 %v5229_v34, %v9533_v41 }
 0x183   :  { %v4581_v35 = vmul.f32 0.00048828125, %v4231_v44  ;;  %v9637_v26 = vpop.f32.mrb[84].mxu0 }
 0x184   :  { %11009 = vst [vmem:[#allocation52_spill] sm:$0xff] %v9637_v26  ;;  %v6020_v60 = vrot.slane %v4580_v38, %v9551_v20  ;;  %3994 = vadd.xlane.f32.xlu1 %v9339_v62  ;;  %v9644_v1 = vpop.f32.mrb[85].mxu0  ;;  %v5243_v38 = vadd.s32 4294967240, %v9528_v50 }
 0x185   :  { %11011 = vst [vmem:[#allocation54_spill] sm:$0xff] %v9644_v1  ;;  %v6024_v23 = vrot.slane %v4581_v35, %v9557_v56  ;;  %v3923_v16 = vpop.xlane.xlu1 %3922  ;;  %4306 = vadd.xlane.f32.xlu0 %v9353_v8  ;;  %v9651_v44 = vpop.f32.mrb[86].mxu0  ;;  %v5250_v1 = vadd.s32 4294967232, %v9528_v50 }
 0x186   :  { %11013 = vst [vmem:[#allocation56_spill] sm:$0xff] %v9651_v44  ;;  %v9655_v62 = vpop.xlane.xlu0 %3928  ;;  %v9657_v33 = vpop.f32.mrb[87].mxu0  ;;  %v9670_v44 = vsub.s32 %v5236_v39, %v9533_v41 }
 0x187   :  { %11014 = vst [vmem:[#allocation57_spill] sm:$0xff] %v9657_v33  ;;  %v6025_v22 = vsel %vm5206_vm1, %v6024_v23, %v6020_v60  ;;  %v9662_v35 = vpop.f32.mrb[83].mxu1  ;;  %v4426_v33 = vmul.f32 0.00048828125, %v9576_v49  ;;  %v9676_v60 = vsub.s32 %v5243_v38, %v9533_v41  ;;  %v4427_v23 = vmul.f32 0.00048828125, %v3923_v16 }
 0x188   :  { %11015 = vst [vmem:[#allocation58_spill] sm:$0xff] %v9662_v35  ;;  %v6030_v8 = vsel %vm5213_vm2, %v6029_v17, %v6025_v22  ;;  %3990 = vadd.xlane.f32.xlu1 %v9349_v14  ;;  %v9678_v14 = vpop.f32.mrb[84].mxu1  ;;  %v9681_v34 = vsub.s32 %v5250_v1, %v9533_v41 }
 0x189   :  { %v3919_v26 = vpop.xlane.xlu1 %3918  ;;  %4302 = vadd.xlane.f32.xlu0 %v9356_v42  ;;  %v6035_v13 = vsel %vm5220_vm3, %v6034_v0, %v6030_v8  ;;  %11016 = vst [vmem:[#allocation59_spill] sm:$0xff] %v9678_v14  ;;  %v9685_v49 = vpop.f32.mrb[85].mxu1  ;;  %v5240_v16 = vrot.slane %v4426_v33, %v9670_v44  ;;  %v5247_v8 = vrot.slane %v4427_v23, %v9676_v60 }
 0x18a   :  { %v4425_v17 = vmul.f32 0.00048828125, %v3919_v26  ;;  %v3925_v22 = vpop.xlane.xlu0 %3924  ;;  %11018 = vst [vmem:[#allocation61_spill] sm:$0xff] %v9685_v49  ;;  %v9691_v26 = vpop.f32.mrb[86].mxu1 }
 0x18b   :  { %v4428_v39 = vmul.f32 0.00048828125, %v3925_v22  ;;  %v9683_v35 = vpop.f32.mrb[88].mxu0  ;;  %11020 = vst [vmem:[#allocation63_spill] sm:$0xff] %v9691_v26  ;;  %v9703_v49 = vpop.f32.mrb[87].mxu1 }
 0x18c   :  { %11017 = vst [vmem:[#allocation60_spill] sm:$0xff] %v9683_v35  ;;  %v5233_v42 = vrot.slane %v4425_v17, %v9667_v12  ;;  %4002 = vadd.xlane.f32.xlu1 %v9369_v18  ;;  %v9689_v0 = vpop.f32.mrb[89].mxu0 }
 0x18d   :  { %11019 = vst [vmem:[#allocation62_spill] sm:$0xff] %v9689_v0  ;;  %v4241_v38 = vpop.xlane.xlu1 %4240  ;;  %4000 = vadd.xlane.f32.xlu0 %v9363_v5  ;;  %v9695_v1 = vpop.f32.mrb[90].mxu0  ;;  %v5254_v26 = vrot.slane %v4428_v39, %v9681_v34 }
 0x18e   :  { %11021 = vst [vmem:[#allocation64_spill] sm:$0xff] %v9695_v1  ;;  %v5235_v22 = vsel %vm5234_vm5, %v5233_v42, %v5228_v43  ;;  %v4243_v17 = vpop.xlane.xlu0 %4242  ;;  %v9699_v14 = vpop.f32.mrb[91].mxu0  ;;  %v4586_v43 = vmul.f32 0.00048828125, %v4241_v38 }
 0x18f   :  { %11022 = vst [vmem:[#allocation65_spill] sm:$0xff] %v9699_v14  ;;  %v5242_v18 = vsel %vm5241_vm6, %v5240_v16, %v5235_v22  ;;  %v4587_v0 = vmul.f32 0.00048828125, %v4243_v17  ;;  %v5257_v16 = vadd.s32 4294967224, %v9528_v50  ;;  %v5271_v17 = vadd.s32 4294967208, %v9528_v50 }
 0x190   :  { %v5249_v33 = vsel %vm5248_vm7, %v5247_v8, %v5242_v18  ;;  %3998 = vadd.xlane.f32.xlu1 %v9373_v19  ;;  %v5264_v19 = vadd.s32 4294967216, %v9528_v50 }
 0x191   :  { %v5256_v5 = vsel %vm5255_vm8, %v5254_v26, %v5249_v33  ;;  %v4237_v1 = vpop.xlane.xlu1 %4236  ;;  %4312 = vadd.xlane.f32.xlu0 %v9371_v30  ;;  %v6054_v33 = vrot.slane %v4587_v0, %v9676_v60 }
 0x192   :  { %v4584_v23 = vmul.f32 0.00048828125, %v4237_v1  ;;  %v4239_v42 = vpop.xlane.xlu0 %4238  ;;  %v6049_v1 = vrot.slane %v4586_v43, %v9670_v44  ;;  %v5278_v43 = vadd.s32 4294967200, %v9528_v50 }
 0x193   :  { %v4585_v14 = vmul.f32 0.00048828125, %v4239_v42  ;;  %v9709_v35 = vpop.f32.mrb[92].mxu0  ;;  %v4430_v42 = vmul.f32 0.00048828125, %v9655_v62 }
 0x194   :  { %v6039_v39 = vrot.slane %v4584_v23, %v9608_v54  ;;  %4010 = vadd.xlane.f32.xlu1 %v9390_v47  ;;  %v9714_v8 = vpop.f32.mrb[93].mxu0 }
 0x195   :  { %v6044_v26 = vrot.slane %v4585_v14, %v9667_v12  ;;  %v3931_v30 = vpop.xlane.xlu1 %3930  ;;  %3996 = vadd.xlane.f32.xlu0 %v9366_v25  ;;  %v9719_v38 = vpop.f32.mrb[94].mxu0  ;;  %v9733_v25 = vsub.s32 %v5257_v16, %v9533_v41 }
 0x196   :  { %11023 = vst [vmem:[#allocation66_spill] sm:$0xff] %v9719_v38  ;;  %v6040_v22 = vsel %vm5227_vm4, %v6039_v39, %v6035_v13  ;;  %v9724_v47 = vpop.xlane.xlu0 %3936  ;;  %v9726_v18 = vpop.f32.mrb[95].mxu0  ;;  %v9737_v13 = vsub.s32 %v5264_v19, %v9533_v41 }
 0x197   :  { %11024 = vst [vmem:[#allocation67_spill] sm:$0xff] %v9726_v18  ;;  %v6045_v23 = vsel %vm5234_vm5, %v6044_v26, %v6040_v22  ;;  %v9743_v26 = vsub.s32 %v5271_v17, %v9533_v41 }
 0x198   :  { %v6050_v14 = vsel %vm5241_vm6, %v6049_v1, %v6045_v23  ;;  %4322 = vadd.xlane.f32.xlu1 %v9398_v53  ;;  %v4431_v1 = vmul.f32 0.00048828125, %v3931_v30  ;;  %v5268_v17 = vrot.slane %v4430_v42, %v9737_v13 }
 0x199   :  { %v3927_v39 = vpop.xlane.xlu1 %3926  ;;  %4308 = vadd.xlane.f32.xlu0 %v9375_v28  ;;  %v6055_v0 = vsel %vm5248_vm7, %v6054_v33, %v6050_v14  ;;  %v9752_v28 = vsub.s32 %v5278_v43, %v9533_v41 }
 0x19a   :  { %v4429_v53 = vmul.f32 0.00048828125, %v3927_v39  ;;  %v3933_v22 = vpop.xlane.xlu0 %3932  ;;  %v5275_v14 = vrot.slane %v4431_v1, %v9743_v26 }
 0x19b   :  { %v4432_v16 = vmul.f32 0.00048828125, %v3933_v22  ;;  %v9745_v23 = vpop.f32.mrb[96].mxu0 }
 0x19c   :  { %11025 = vst [vmem:[#allocation68_spill] sm:$0xff] %v9745_v23  ;;  %v5261_v19 = vrot.slane %v4429_v53, %v9733_v25  ;;  %4006 = vadd.xlane.f32.xlu1 %v9394_v52  ;;  %v9749_v62 = vpop.f32.mrb[97].mxu0 }
 0x19d   :  { %v4249_v30 = vpop.xlane.xlu1 %4248  ;;  %4314 = vadd.xlane.f32.xlu0 %v9377_v48  ;;  %v9756_v33 = vpop.f32.mrb[98].mxu0  ;;  %v5282_v43 = vrot.slane %v4432_v16, %v9752_v28 }
 0x19e   :  { %11026 = vst [vmem:[#allocation69_spill] sm:$0xff] %v9756_v33  ;;  %v5263_v39 = vsel %vm5262_vm9, %v5261_v19, %v5256_v5  ;;  %v4251_v53 = vpop.xlane.xlu0 %4250  ;;  %v9760_v52 = vpop.f32.mrb[99].mxu0  ;;  %v4590_v1 = vmul.f32 0.00048828125, %v4249_v30 }
 0x19f   :  { %v5270_v22 = vsel %vm5269_vm10, %v5268_v17, %v5263_v39  ;;  %v4591_v19 = vmul.f32 0.00048828125, %v4251_v53 }
 0x1a0   :  { %v5277_v42 = vsel %vm5276_vm11, %v5275_v14, %v5270_v22  ;;  %4016 = vadd.xlane.f32.xlu1 %v9420_v27 }
 0x1a1   :  { %v5284_v48 = vsel %vm5283_vm12, %v5282_v43, %v5277_v42  ;;  %v4245_v23 = vpop.xlane.xlu1 %4244  ;;  %4310 = vadd.xlane.f32.xlu0 %v9381_v32  ;;  %v5285_v32 = vadd.s32 4294967192, %v9528_v50  ;;  %v6074_v22 = vrot.slane %v4591_v19, %v9743_v26  ;;  %v4434_v42 = vmul.f32 0.00048828125, %v9724_v47 }
 0x1a2   :  { %v4588_v33 = vmul.f32 0.00048828125, %v4245_v23  ;;  %v4247_v5 = vpop.xlane.xlu0 %4246  ;;  %v6069_v23 = vrot.slane %v4590_v1, %v9737_v13 }
 0x1a3   :  { %v4589_v18 = vmul.f32 0.00048828125, %v4247_v5  ;;  %v9768_v38 = vpop.f32.mrb[100].mxu0  ;;  %v9795_v5 = vsub.s32 %v5285_v32, %v9533_v41 }
 0x1a4   :  { %11027 = vst [vmem:[#allocation70_spill] sm:$0xff] %v9768_v38  ;;  %v6059_v17 = vrot.slane %v4588_v33, %v9681_v34  ;;  %4328 = vadd.xlane.f32.xlu1 %v9429_v37  ;;  %v9772_v16 = vpop.f32.mrb[101].mxu0  ;;  %v5292_v37 = vadd.s32 4294967184, %v9528_v50 }
 0x1a5   :  { %11028 = vst [vmem:[#allocation71_spill] sm:$0xff] %v9772_v16  ;;  %v6064_v27 = vrot.slane %v4589_v18, %v9733_v25  ;;  %v3939_v14 = vpop.xlane.xlu1 %3938  ;;  %4008 = vadd.xlane.f32.xlu0 %v9384_v10  ;;  %v9776_v39 = vpop.f32.mrb[102].mxu0  ;;  %v5299_v10 = vadd.s32 4294967176, %v9528_v50 }
 0x1a6   :  { %11029 = vst [vmem:[#allocation72_spill] sm:$0xff] %v9776_v39  ;;  %v6060_v30 = vsel %vm5255_vm8, %v6059_v17, %v6055_v0  ;;  %v9781_v53 = vpop.xlane.xlu0 %3944  ;;  %v9783_v33 = vpop.f32.mrb[103].mxu0  ;;  %v4435_v17 = vmul.f32 0.00048828125, %v3939_v14 }
 0x1a7   :  { %11030 = vst [vmem:[#allocation73_spill] sm:$0xff] %v9783_v33  ;;  %v6065_v18 = vsel %vm5262_vm9, %v6064_v27, %v6060_v30  ;;  %v9798_v27 = vsub.s32 %v5292_v37, %v9533_v41 }
 0x1a8   :  { %v6070_v43 = vsel %vm5269_vm10, %v6069_v23, %v6065_v18  ;;  %4330 = vadd.xlane.f32.xlu1 %v9436_v29  ;;  %v9803_v29 = vsub.s32 %v5299_v10, %v9533_v41 }
 0x1a9   :  { %v3935_v1 = vpop.xlane.xlu1 %3934  ;;  %4320 = vadd.xlane.f32.xlu0 %v9392_v11  ;;  %v6075_v0 = vsel %vm5276_vm11, %v6074_v22, %v6070_v43  ;;  %v5296_v14 = vrot.slane %v4434_v42, %v9798_v27 }
 0x1aa   :  { %v4433_v19 = vmul.f32 0.00048828125, %v3935_v1  ;;  %v3941_v39 = vpop.xlane.xlu0 %3940  ;;  %v5303_v30 = vrot.slane %v4435_v17, %v9803_v29 }
 0x1ab   :  { %v9800_v50 = vpop.f32.mrb[104].mxu0 }
 0x1ac   :  { %11031 = vst [vmem:[#allocation74_spill] sm:$0xff] %v9800_v50  ;;  %v5289_v47 = vrot.slane %v4433_v19, %v9795_v5  ;;  %4326 = vadd.xlane.f32.xlu1 %v9439_v36  ;;  %v9807_v11 = vpop.f32.mrb[105].mxu0 }
 0x1ad   :  { %11032 = vst [vmem:[#allocation75_spill] sm:$0xff] %v9807_v11  ;;  %v4257_v32 = vpop.xlane.xlu1 %4256  ;;  %4004 = vadd.xlane.f32.xlu0 %v9387_v40  ;;  %v9811_v23 = vpop.f32.mrb[106].mxu0  ;;  %v11036_v40 = vld [vmem:[#allocation6_spill] sm:$0xff]  ;;  %v11057_v11 = vld [vmem:[#allocation12_spill] sm:$0xff] }
 0x1ae   :  { %11033 = vst [vmem:[#allocation76_spill] sm:$0xff] %v9811_v23  ;;  %v5291_v41 = vsel %vm5290_vm13, %v5289_v47, %v5284_v48  ;;  %v4255_v37 = vpop.xlane.xlu0 %4254  ;;  %v9815_v22 = vpop.f32.mrb[107].mxu0  ;;  %v4594_v42 = vmul.f32 0.00048828125, %v4257_v32 }
 0x1af   :  { %11034 = vst [vmem:[#allocation77_spill] sm:$0xff] %v9815_v22  ;;  %v5298_v36 = vsel %vm5297_vm14, %v5296_v14, %v5291_v41  ;;  %v4593_v10 = vmul.f32 0.00048828125, %v4255_v37 }
 0x1b0   :  { %4024 = vadd.xlane.f32.xlu1 %v9442_v2  ;;  %v9820_v18 = vsel %vm5304_vm15, %v5303_v30, %v5298_v36  ;;  %v11039_v30 = vld [vmem:[#allocation7_spill] sm:$0xff]  ;;  %v6089_v32 = vrot.slane %v4594_v42, %v9798_v27 }
 0x1b1   :  { %11035 = vst [vmem:[#allocation78_spill] sm:$0xff] %v9820_v18  ;;  %v4253_v43 = vpop.xlane.xlu1 %4252  ;;  %4316 = vadd.xlane.f32.xlu0 %v11036_v40  ;;  %v6084_v2 = vrot.slane %v4593_v10, %v9795_v5 }
 0x1b2   :  { %v4592_v1 = vmul.f32 0.00048828125, %v4253_v43  ;;  %v9823_v19 = vpop.xlane.xlu0 %3952 }
 0x1b3   :  { %v9825_v17 = vpop.f32.mrb[108].mxu0 }
 0x1b4   :  { %11037 = vst [vmem:[#allocation6_spill] sm:$0xff] %v9825_v17  ;;  %v6079_v48 = vrot.slane %v4592_v1, %v9752_v28  ;;  %4336 = vadd.xlane.f32.xlu1 %v9450_v4  ;;  %v9829_v47 = vpop.f32.mrb[109].mxu0 }
 0x1b5   :  { %11038 = vst [vmem:[#allocation79_spill] sm:$0xff] %v9829_v47  ;;  %v3947_v14 = vpop.xlane.xlu1 %3946  ;;  %4318 = vadd.xlane.f32.xlu0 %v11039_v30  ;;  %v9833_v41 = vpop.f32.mrb[110].mxu0 }
 0x1b6   :  { %11040 = vst [vmem:[#allocation7_spill] sm:$0xff] %v9833_v41  ;;  %v6080_v37 = vsel %vm5283_vm12, %v6079_v48, %v6075_v0  ;;  %v3949_v36 = vpop.xlane.xlu0 %3948  ;;  %v9837_v43 = vpop.f32.mrb[111].mxu0  ;;  %v4436_v41 = vmul.f32 0.00048828125, %v3941_v39  ;;  %v4438_v48 = vmul.f32 0.00048828125, %v9781_v53 }
 0x1b7   :  { %11041 = vst [vmem:[#allocation80_spill] sm:$0xff] %v9837_v43  ;;  %v6085_v40 = vsel %vm5290_vm13, %v6084_v2, %v6080_v37 }
 0x1b8   :  { %4020 = vadd.xlane.f32.xlu1 %v9445_v59  ;;  %v6090_v4 = vsel %vm5297_vm14, %v6089_v32, %v6085_v40  ;;  %v4439_v32 = vmul.f32 0.00048828125, %v3947_v14 }
 0x1b9   :  { %v4259_v1 = vpop.xlane.xlu1 %4258  ;;  %4012 = vadd.xlane.f32.xlu0 %v9423_v31 }
 0x1ba   :  { %v4595_v10 = vmul.f32 0.00048828125, %v4259_v1  ;;  %v4263_v30 = vpop.xlane.xlu0 %4262  ;;  %v4440_v1 = vmul.f32 0.00048828125, %v3949_v36  ;;  %v5323_v14 = vrot.slane %v4439_v32, %v9587_v58 }
 0x1bb   :  { %v9843_v18 = vpop.f32.mrb[112].mxu0 }
 0x1bc   :  { %v6094_v42 = vrot.slane %v4595_v10, %v9803_v29  ;;  %4332 = vadd.xlane.f32.xlu1 %v9454_v15  ;;  %v9847_v0 = vpop.f32.mrb[113].mxu0  ;;  %v5309_v15 = vrot.slane %v4436_v41, %v9551_v20  ;;  %v4597_v41 = vmul.f32 0.00048828125, %v4263_v30 }
 0x1bd   :  { %v3943_v2 = vpop.xlane.xlu1 %3942  ;;  %4324 = vadd.xlane.f32.xlu0 %v9434_v57  ;;  %v9851_v59 = vpop.f32.mrb[114].mxu0  ;;  %v5318_v57 = vrot.slane %v4438_v48, %v9562_v46 }
 0x1be   :  { %v4437_v31 = vmul.f32 0.00048828125, %v3943_v2  ;;  %v9853_v37 = vpop.xlane.xlu0 %3960  ;;  %v9855_v40 = vpop.f32.mrb[115].mxu0  ;;  %v9858_v39 = vsel %vm5304_vm15, %v6094_v42, %v6090_v4  ;;  %v5328_v4 = vrot.slane %v4440_v1, %v9608_v54  ;;  %v6103_v30 = vrot.slane %v4597_v41, %v9557_v56 }
 0x1c0   :  { %v5313_v10 = vrot.slane %v4437_v31, %v9557_v56  ;;  %4338 = vadd.xlane.f32.xlu1 %v9456_v51 }
 0x1c1   :  { %v4265_v53 = vpop.xlane.xlu1 %4264  ;;  %4018 = vadd.xlane.f32.xlu0 %v9427_v61 }
 0x1c2   :  { %v5314_v2 = vsel %vm5206_vm1, %v5313_v10, %v5309_v15  ;;  %v3957_v17 = vpop.xlane.xlu0 %3956  ;;  %v4598_v31 = vmul.f32 0.00048828125, %v4265_v53 }
 0x1c3   :  { %v5319_v36 = vsel %vm5213_vm2, %v5318_v57, %v5314_v2  ;;  %v9869_v42 = vpop.f32.mrb[116].mxu0 }
 0x1c4   :  { %11042 = vst [vmem:[#allocation81_spill] sm:$0xff] %v9869_v42  ;;  %4334 = vadd.xlane.f32.xlu1 %v9459_v21  ;;  %v5324_v51 = vsel %vm5220_vm3, %v5323_v14, %v5319_v36  ;;  %v9873_v48 = vpop.f32.mrb[117].mxu0  ;;  %v7324_v21 = vld [vmem:[%s10957_s2 + $0x40] sm:$0xff]   ;;  %v6108_v53 = vrot.slane %v4598_v31, %v9562_v46 }
 0x1c5   :  { %11043 = vst [vmem:[#allocation82_spill] sm:$0xff] %v9873_v48  ;;  %v4261_v61 = vpop.xlane.xlu1 %4260  ;;  %4014 = vadd.xlane.f32.xlu0 %v9432_v7  ;;  %v5329_v32 = vsel %vm5227_vm4, %v5328_v4, %v5324_v51  ;;  %v9877_v15 = vpop.f32.mrb[118].mxu0  ;;  %7908 = vmatprep.subr.bf16.mxu1 %v7324_v21  ;;  %v7062_v7 = vld [vmem:[%s10957_s2] sm:$0xff]   ;;  %v11046_v4 = vld [vmem:[#allocation8_spill] sm:$0xff] }
 0x1c6   :  { %11044 = vst [vmem:[#allocation83_spill] sm:$0xff] %v9877_v15  ;;  %v4596_v1 = vmul.f32 0.00048828125, %v4261_v61  ;;  %v4275_v10 = vpop.xlane.xlu0 %4274  ;;  %v9879_v57 = vpop.f32.mrb[119].mxu0  ;;  %7910 = vmatpush3.bf16.msra.mxu1 %v7062_v7  ;;  %v11049_v21 = vld [vmem:[#allocation9_spill] sm:$0xff] }
 0x1c7   :  { %11045 = vst [vmem:[#allocation84_spill] sm:$0xff] %v9879_v57  ;;  %v11073_v57 = vld [vmem:[#allocation25_spill] sm:$0xff] }
 0x1c8   :  { %v6099_v14 = vrot.slane %v4596_v1, %v9551_v20  ;;  %4032 = vadd.xlane.f32.xlu1 %v9462_v45 }
 0x1c9   :  { %v3955_v2 = vpop.xlane.xlu1 %3954  ;;  %4026 = vadd.xlane.f32.xlu0 %v11046_v4 }
 0x1ca   :  { %v6104_v36 = vsel %vm5206_vm1, %v6103_v30, %v6099_v14  ;;  %v4271_v51 = vpop.xlane.xlu0 %4270  ;;  %v11052_v14 = vld [vmem:[#allocation10_spill] sm:$0xff] }
 0x1cb   :  { %v6109_v41 = vsel %vm5213_vm2, %v6108_v53, %v6104_v36  ;;  %v9894_v61 = vpop.f32.mrb[120].mxu0  ;;  %v4442_v53 = vmul.f32 0.00048828125, %v9823_v19  ;;  %v4443_v36 = vmul.f32 0.00048828125, %v3955_v2 }
 0x1cc   :  { %11047 = vst [vmem:[#allocation8_spill] sm:$0xff] %v9894_v61  ;;  %4344 = vadd.xlane.f32.xlu1 %v9470_v3  ;;  %v9897_v45 = vpop.f32.mrb[121].mxu0  ;;  %v11053_v3 = vld [vmem:[#allocation11_spill] sm:$0xff]  ;;  %v11055_v61 = vld [vmem:[#allocation13_spill] sm:$0xff] }
 0x1cd   :  { %11048 = vst [vmem:[#allocation85_spill] sm:$0xff] %v9897_v45  ;;  %v4267_v1 = vpop.xlane.xlu1 %4266  ;;  %4022 = vadd.xlane.f32.xlu0 %v11049_v21  ;;  %v9900_v43 = vpop.f32.mrb[122].mxu0  ;;  %v5343_v2 = vrot.slane %v4443_v36, %v9676_v60 }
 0x1ce   :  { %11050 = vst [vmem:[#allocation9_spill] sm:$0xff] %v9900_v43  ;;  %v4599_v31 = vmul.f32 0.00048828125, %v4267_v1  ;;  %v9902_v47 = vpop.xlane.xlu0 %3968  ;;  %v9904_v7 = vpop.f32.mrb[123].mxu0  ;;  %v4444_v43 = vmul.f32 0.00048828125, %v3957_v17 }
 0x1cf   :  { %11051 = vst [vmem:[#allocation86_spill] sm:$0xff] %v9904_v7  ;;  %v4603_v7 = vmul.f32 0.00048828125, %v4275_v10 }
 0x1d0   :  { %v6113_v30 = vrot.slane %v4599_v31, %v9587_v58  ;;  %4028 = vadd.xlane.f32.xlu1 %v11052_v14  ;;  %v5338_v14 = vrot.slane %v4442_v53, %v9670_v44 }
 0x1d1   :  { %v3951_v4 = vpop.xlane.xlu1 %3950  ;;  %4034 = vadd.xlane.f32.xlu0 %v11053_v3 }
 0x1d2   :  { %v6114_v23 = vsel %vm5220_vm3, %v6113_v30, %v6109_v41  ;;  %v4441_v21 = vmul.f32 0.00048828125, %v3951_v4  ;;  %v3965_v50 = vpop.xlane.xlu0 %3964  ;;  %v5348_v4 = vrot.slane %v4444_v43, %v9681_v34 }
 0x1d3   :  { %v9911_v1 = vpop.f32.mrb[124].mxu0 }
 0x1d4   :  { %11054 = vst [vmem:[#allocation10_spill] sm:$0xff] %v9911_v1  ;;  %v5333_v22 = vrot.slane %v4441_v21, %v9667_v12  ;;  %4340 = vadd.xlane.f32.xlu1 %v11055_v61  ;;  %v9915_v31 = vpop.f32.mrb[125].mxu0  ;;  %v11060_v21 = vld [vmem:[#allocation14_spill] sm:$0xff]  ;;  %v4601_v1 = vmul.f32 0.00048828125, %v4271_v51 }
 0x1d5   :  { %11056 = vst [vmem:[#allocation11_spill] sm:$0xff] %v9915_v31  ;;  %v4273_v19 = vpop.xlane.xlu1 %4272  ;;  %4030 = vadd.xlane.f32.xlu0 %v11057_v11  ;;  %v9919_v3 = vpop.f32.mrb[126].mxu0  ;;  %v11061_v31 = vld [vmem:[#allocation16_spill] sm:$0xff] }
 0x1d6   :  { %11058 = vst [vmem:[#allocation13_spill] sm:$0xff] %v9919_v3  ;;  %v5334_v41 = vsel %vm5234_vm5, %v5333_v22, %v5329_v32  ;;  %v9923_v17 = vpop.xlane.xlu0 %4282  ;;  %v9925_v30 = vpop.f32.mrb[127].mxu0  ;;  %v4602_v3 = vmul.f32 0.00048828125, %v4273_v19 }
 0x1d7   :  { %11059 = vst [vmem:[#allocation12_spill] sm:$0xff] %v9925_v30  ;;  %v5339_v61 = vsel %vm5241_vm6, %v5338_v14, %v5334_v41  ;;  %v11062_v30 = vld [vmem:[#allocation15_spill] sm:$0xff]  ;;  %v11063_v41 = vld [vmem:[#allocation17_spill] sm:$0xff]  ;;  %v4607_v42 = vmul.f32 0.00048828125, %v9923_v17 }
 0x1d8   :  { %4346 = vadd.xlane.f32.xlu1 %v11060_v21  ;;  %v5344_v53 = vsel %vm5248_vm7, %v5343_v2, %v5339_v61  ;;  %v6123_v2 = vrot.slane %v4601_v1, %v9667_v12  ;;  %v6128_v19 = vrot.slane %v4602_v3, %v9670_v44  ;;  %v6133_v21 = vrot.slane %v4603_v7, %v9676_v60  ;;  %v7325_v7 = vld [vmem:[%s10957_s2 + $0x48] sm:$0xff]  }
 0x1d9   :  { %v4269_v11 = vpop.xlane.xlu1 %4268  ;;  %4040 = vadd.xlane.f32.xlu0 %v11061_v31  ;;  %v5349_v36 = vsel %vm5255_vm8, %v5348_v4, %v5344_v53  ;;  %v11064_v53 = vld [vmem:[#allocation20_spill] sm:$0xff]  ;;  %7912 = vmatprep.subr.bf16.mxu1 %v7325_v7 }
 0x1da   :  { %v4600_v22 = vmul.f32 0.00048828125, %v4269_v11  ;;  %v4279_v32 = vpop.xlane.xlu0 %4278  ;;  %v4446_v11 = vmul.f32 0.00048828125, %v9853_v37 }
 0x1db   :  { %v9933_v45 = vpop.f32.mrb[128].mxu0  ;;  %v4605_v15 = vmul.f32 0.00048828125, %v4279_v32 }
 0x1dc   :  { %v6118_v43 = vrot.slane %v4600_v22, %v9608_v54  ;;  %4342 = vadd.xlane.f32.xlu1 %v11062_v30  ;;  %v9937_v14 = vpop.f32.mrb[129].mxu0 }
 0x1dd   :  { %v3963_v51 = vpop.xlane.xlu1 %3962  ;;  %4036 = vadd.xlane.f32.xlu0 %v11063_v41  ;;  %v9941_v31 = vpop.f32.mrb[130].mxu0  ;;  %v11065_v41 = vld [vmem:[#allocation18_spill] sm:$0xff]  ;;  %v6143_v32 = vrot.slane %v4605_v15, %v9733_v25 }
 0x1de   :  { %v6119_v4 = vsel %vm5227_vm4, %v6118_v43, %v6114_v23  ;;  %v9945_v10 = vpop.xlane.xlu0 %3976  ;;  %v9947_v61 = vpop.f32.mrb[131].mxu0  ;;  %v4447_v23 = vmul.f32 0.00048828125, %v3963_v51 }
 0x1df   :  { %v6124_v30 = vsel %vm5234_vm5, %v6123_v2, %v6119_v4  ;;  %v7317_v2 = vld [vmem:[%s10957_s2 + $0x8] sm:$0xff]  }
 0x1e0   :  { %4352 = vadd.xlane.f32.xlu1 %v11064_v53  ;;  %v6129_v1 = vsel %vm5241_vm6, %v6128_v19, %v6124_v30  ;;  %v4448_v19 = vmul.f32 0.00048828125, %v3965_v50  ;;  %v11066_v30 = vld [vmem:[#allocation21_spill] sm:$0xff]  ;;  %7914 = vmatpush3.bf16.msra.mxu1 %v7317_v2  ;;  %v11067_v2 = vld [vmem:[#allocation22_spill] sm:$0xff] }
 0x1e1   :  { %v3959_v22 = vpop.xlane.xlu1 %3958  ;;  %4042 = vadd.xlane.f32.xlu0 %v11065_v41  ;;  %v6134_v3 = vsel %vm5248_vm7, %v6133_v21, %v6129_v1  ;;  %v5358_v21 = vrot.slane %v4446_v11, %v9737_v13 }
 0x1e2   :  { %v4445_v43 = vmul.f32 0.00048828125, %v3959_v22  ;;  %v9956_v38 = vpop.xlane.xlu0 %3972  ;;  %v5363_v22 = vrot.slane %v4447_v23, %v9743_v26 }
 0x1e3   :  { %v9964_v4 = vpop.f32.mrb[132].mxu0 }
 0x1e4   :  { %v5353_v37 = vrot.slane %v4445_v43, %v9733_v25  ;;  %4348 = vadd.xlane.f32.xlu1 %v11066_v30  ;;  %v9968_v51 = vpop.f32.mrb[133].mxu0  ;;  %v5368_v43 = vrot.slane %v4448_v19, %v9752_v28 }
 0x1e5   :  { %v4281_v53 = vpop.xlane.xlu1 %4280  ;;  %4048 = vadd.xlane.f32.xlu0 %v9518_v55  ;;  %v9972_v1 = vpop.f32.mrb[134].mxu0 }
 0x1e6   :  { %v5354_v50 = vsel %vm5262_vm9, %v5353_v37, %v5349_v36  ;;  %v9976_v41 = vpop.xlane.xlu0 %4290  ;;  %v9978_v7 = vpop.f32.mrb[135].mxu0  ;;  %v4606_v33 = vmul.f32 0.00048828125, %v4281_v53 }
 0x1e7   :  { %v5359_v30 = vsel %vm5269_vm10, %v5358_v21, %v5354_v50  ;;  %v11068_v21 = vld [vmem:[#allocation19_spill] sm:$0xff] }
 0x1e8   :  { %4354 = vadd.xlane.f32.xlu1 %v11067_v2  ;;  %v5364_v11 = vsel %vm5276_vm11, %v5363_v22, %v5359_v30  ;;  %v11069_v30 = vld [vmem:[#allocation24_spill] sm:$0xff]  ;;  %v6148_v53 = vrot.slane %v4606_v33, %v9737_v13 }
 0x1e9   :  { %v4277_v55 = vpop.xlane.xlu1 %4276  ;;  %4044 = vadd.xlane.f32.xlu0 %v9521_v24  ;;  %v5369_v23 = vsel %vm5283_vm12, %v5368_v43, %v5364_v11  ;;  %v6153_v11 = vrot.slane %v4607_v42, %v9743_v26 }
 0x1ea   :  { %v4604_v36 = vmul.f32 0.00048828125, %v4277_v55  ;;  %v4287_v37 = vpop.xlane.xlu0 %4286 }
 0x1eb   :  { %v9987_v16 = vpop.f32.mrb[136].mxu0 }
 0x1ec   :  { %v6138_v19 = vrot.slane %v4604_v36, %v9681_v34  ;;  %4038 = vadd.xlane.f32.xlu1 %v11068_v21  ;;  %v9991_v50 = vpop.f32.mrb[137].mxu0  ;;  %v11072_v36 = vld [vmem:[#allocation23_spill] sm:$0xff]  ;;  %v4450_v21 = vmul.f32 0.00048828125, %v9902_v47 }
 0x1ed   :  { %v3971_v22 = vpop.xlane.xlu1 %3970  ;;  %4050 = vadd.xlane.f32.xlu0 %v11069_v30  ;;  %v9995_v24 = vpop.f32.mrb[138].mxu0 }
 0x1ee   :  { %11070 = vst [vmem:[#allocation14_spill] sm:$0xff] %v9995_v24  ;;  %v6139_v43 = vsel %vm5255_vm8, %v6138_v19, %v6134_v3  ;;  %v9999_v17 = vpop.xlane.xlu0 %3984  ;;  %v10001_v2 = vpop.f32.mrb[139].mxu0  ;;  %v4451_v3 = vmul.f32 0.00048828125, %v3971_v22 }
 0x1ef   :  { %11071 = vst [vmem:[#allocation16_spill] sm:$0xff] %v10001_v2  ;;  %v6144_v55 = vsel %vm5262_vm9, %v6143_v32, %v6139_v43  ;;  %v11075_v32 = vld [vmem:[#allocation28_spill] sm:$0xff] }
 0x1f0   :  { %4350 = vadd.xlane.f32.xlu1 %v11072_v36  ;;  %v6149_v15 = vsel %vm5269_vm10, %v6148_v53, %v6144_v55  ;;  %v5378_v53 = vrot.slane %v4450_v21, %v9798_v27  ;;  %v11077_v55 = vld [vmem:[#allocation27_spill] sm:$0xff]  ;;  %v5383_v22 = vrot.slane %v4451_v3, %v9803_v29 }
 0x1f1   :  { %v3967_v30 = vpop.xlane.xlu1 %3966  ;;  %4046 = vadd.xlane.f32.xlu0 %v11073_v57  ;;  %v6154_v33 = vsel %vm5276_vm11, %v6153_v11, %v6149_v15  ;;  %v7318_v3 = vld [vmem:[%s10957_s2 + $0x10] sm:$0xff]  }
 0x1f2   :  { %v4449_v19 = vmul.f32 0.00048828125, %v3967_v30  ;;  %v10010_v48 = vpop.xlane.xlu0 %4296 }
 0x1f3   :  { %v10012_v2 = vpop.f32.mrb[140].mxu0 }
 0x1f4   :  { %11074 = vst [vmem:[#allocation15_spill] sm:$0xff] %v10012_v2  ;;  %v5373_v42 = vrot.slane %v4449_v19, %v9795_v5  ;;  %4356 = vadd.xlane.f32.xlu1 %v11075_v32  ;;  %v10016_v43 = vpop.f32.mrb[141].mxu0  ;;  %v10028_v19 = vpop.f32.mrb[88].mxu1  ;;  %v4609_v32 = vmul.f32 0.00048828125, %v4287_v37  ;;  %v4611_v37 = vmul.f32 0.00048828125, %v9976_v41  ;;  %v11088_v2 = vld [vmem:[#allocation32_spill] sm:$0xff] }
 0x1f5   :  { %11076 = vst [vmem:[#allocation17_spill] sm:$0xff] %v10016_v43  ;;  %v4289_v47 = vpop.xlane.xlu1 %4288  ;;  %4056 = vadd.xlane.f32.xlu0 %v11077_v55  ;;  %v10020_v57 = vpop.f32.mrb[142].mxu0  ;;  %11080 = vst [vmem:[#allocation21_spill] sm:$0xff] %v10028_v19  ;;  %v11082_v43 = vld [vmem:[#allocation29_spill] sm:$0xff] }
 0x1f6   :  { %11078 = vst [vmem:[#allocation20_spill] sm:$0xff] %v10020_v57  ;;  %v5374_v11 = vsel %vm5290_vm13, %v5373_v42, %v5369_v23  ;;  %v3981_v36 = vpop.xlane.xlu0 %3980  ;;  %v10024_v15 = vpop.f32.mrb[143].mxu0  ;;  %v7326_v23 = vld [vmem:[%s10957_s2 + $0x50] sm:$0xff]  }
 0x1f7   :  { %11079 = vst [vmem:[#allocation18_spill] sm:$0xff] %v10024_v15  ;;  %v5379_v30 = vsel %vm5297_vm14, %v5378_v53, %v5374_v11  ;;  %v10040_v42 = vpop.f32.mrb[89].mxu1  ;;  %7916 = vmatprep.subr.bf16.mxu1 %v7326_v23  ;;  %v11087_v15 = vld [vmem:[#allocation52_spill] sm:$0xff] }
 0x1f8   :  { %4074 = vadd.xlane.f32.xlu1 %v9626_v63  ;;  %v10031_v21 = vsel %vm5304_vm15, %v5383_v22, %v5379_v30  ;;  %11083 = vst [vmem:[#allocation19_spill] sm:$0xff] %v10040_v42  ;;  %v4610_v63 = vmul.f32 0.00048828125, %v4289_v47  ;;  %v10042_v22 = vpop.f32.mrb[90].mxu1  ;;  %7918 = vmatpush3.bf16.msra.mxu1 %v7318_v3  ;;  %v6163_v47 = vrot.slane %v4609_v32, %v9795_v5 }
 0x1f9   :  { %11081 = vst [vmem:[#allocation22_spill] sm:$0xff] %v10031_v21  ;;  %v4285_v55 = vpop.xlane.xlu1 %4284  ;;  %4052 = vadd.xlane.f32.xlu0 %v11082_v43  ;;  %11084 = vst [vmem:[#allocation24_spill] sm:$0xff] %v10042_v22  ;;  %v10047_v43 = vpop.f32.mrb[91].mxu1 }
 0x1fa   :  { %v4608_v53 = vmul.f32 0.00048828125, %v4285_v55  ;;  %v4299_v11 = vpop.xlane.xlu0 %4298  ;;  %11085 = vst [vmem:[#allocation23_spill] sm:$0xff] %v10047_v43  ;;  %v6168_v41 = vrot.slane %v4610_v63, %v9798_v27  ;;  %v4452_v43 = vmul.f32 0.00048828125, %v9956_v38 }
 0x1fb   :  { %v10045_v30 = vpop.f32.mrb[144].mxu0 }
 0x1fc   :  { %v6158_v21 = vrot.slane %v4608_v53, %v9752_v28  ;;  %4070 = vadd.xlane.f32.xlu1 %v9628_v6  ;;  %v10051_v19 = vpop.f32.mrb[145].mxu0  ;;  %v6173_v53 = vrot.slane %v4611_v37, %v9803_v29  ;;  %v4456_v37 = vmul.f32 0.00048828125, %v3981_v36  ;;  %v5388_v38 = vrot.slane %v4452_v43, %v9551_v20 }
 0x1fd   :  { %v3979_v55 = vpop.xlane.xlu1 %3978  ;;  %4058 = vadd.xlane.f32.xlu0 %v9559_v9  ;;  %v10055_v23 = vpop.f32.mrb[146].mxu0  ;;  %v4454_v9 = vmul.f32 0.00048828125, %v9945_v10  ;;  %v4615_v36 = vmul.f32 0.00048828125, %v4299_v11 }
 0x1fe   :  { %v6159_v22 = vsel %vm5283_vm12, %v6158_v21, %v6154_v33  ;;  %v4295_v3 = vpop.xlane.xlu0 %4294  ;;  %v10059_v42 = vpop.f32.mrb[147].mxu0  ;;  %v4455_v21 = vmul.f32 0.00048828125, %v3979_v55  ;;  %v11091_v55 = vld [vmem:[#allocation36_spill] sm:$0xff] }
 0x1ff   :  { %11086 = vst [vmem:[#allocation25_spill] sm:$0xff] %v10059_v42  ;;  %v6164_v6 = vsel %vm5290_vm13, %v6163_v47, %v6159_v22  ;;  %v4613_v22 = vmul.f32 0.00048828125, %v4295_v3  ;;  %v11090_v47 = vld [vmem:[#allocation54_spill] sm:$0xff] }
 0x200   :  { %4080 = vadd.xlane.f32.xlu1 %v11087_v15  ;;  %v6169_v32 = vsel %vm5297_vm14, %v6168_v41, %v6164_v6  ;;  %v4614_v41 = vmul.f32 0.00048828125, %v10010_v48  ;;  %v5402_v6 = vrot.slane %v4455_v21, %v9587_v58 }
 0x201   :  { %v3975_v57 = vpop.xlane.xlu1 %3974  ;;  %4054 = vadd.xlane.f32.xlu0 %v11088_v2  ;;  %v10069_v33 = vsel %vm5304_vm15, %v6173_v53, %v6169_v32  ;;  %v5397_v2 = vrot.slane %v4454_v9, %v9562_v46  ;;  %v6182_v48 = vrot.slane %v4613_v22, %v9557_v56 }
 0x202   :  { %11089 = vst [vmem:[#allocation28_spill] sm:$0xff] %v10069_v33  ;;  %v4453_v63 = vmul.f32 0.00048828125, %v3975_v57  ;;  %v3993_v42 = vpop.xlane.xlu0 %3992  ;;  %v6187_v21 = vrot.slane %v4614_v41, %v9562_v46  ;;  %v4458_v41 = vmul.f32 0.00048828125, %v9999_v17 }
 0x203   :  { %v10071_v24 = vpop.f32.mrb[148].mxu0 }
 0x204   :  { %v5392_v15 = vrot.slane %v4453_v63, %v9557_v56  ;;  %4076 = vadd.xlane.f32.xlu1 %v11090_v47  ;;  %v10076_v10 = vpop.f32.mrb[149].mxu0  ;;  %v5407_v47 = vrot.slane %v4456_v37, %v9608_v54 }
 0x205   :  { %v4293_v53 = vpop.xlane.xlu1 %4292  ;;  %4064 = vadd.xlane.f32.xlu0 %v11091_v55  ;;  %v10081_v57 = vpop.f32.mrb[150].mxu0  ;;  %v11093_v55 = vld [vmem:[#allocation56_spill] sm:$0xff] }
 0x206   :  { %11092 = vst [vmem:[#allocation27_spill] sm:$0xff] %v10081_v57  ;;  %v5393_v43 = vsel %vm5206_vm1, %v5392_v15, %v5388_v38  ;;  %v4612_v3 = vmul.f32 0.00048828125, %v4293_v53  ;;  %v4305_v32 = vpop.xlane.xlu0 %4304  ;;  %v10085_v63 = vpop.f32.mrb[151].mxu0  ;;  %v11094_v38 = vld [vmem:[#allocation38_spill] sm:$0xff]  ;;  %v6192_v53 = vrot.slane %v4615_v36, %v9587_v58 }
 0x207   :  { %v5398_v9 = vsel %vm5213_vm2, %v5397_v2, %v5393_v43 }
 0x208   :  { %v6178_v33 = vrot.slane %v4612_v3, %v9551_v20  ;;  %4082 = vadd.xlane.f32.xlu1 %v11093_v55  ;;  %v5403_v11 = vsel %vm5220_vm3, %v5402_v6, %v5398_v9  ;;  %v11095_v3 = vld [vmem:[#allocation57_spill] sm:$0xff] }
 0x209   :  { %v3987_v57 = vpop.xlane.xlu1 %3986  ;;  %4060 = vadd.xlane.f32.xlu0 %v11094_v38  ;;  %v5408_v15 = vsel %vm5227_vm4, %v5407_v47, %v5403_v11  ;;  %v11097_v38 = vld [vmem:[#allocation40_spill] sm:$0xff] }
 0x20a   :  { %v6183_v37 = vsel %vm5206_vm1, %v6182_v48, %v6178_v33  ;;  %v3989_v2 = vpop.xlane.xlu0 %3988  ;;  %v4459_v36 = vmul.f32 0.00048828125, %v3987_v57 }
 0x20b   :  { %v6188_v22 = vsel %vm5213_vm2, %v6187_v21, %v6183_v37  ;;  %v10099_v43 = vpop.f32.mrb[152].mxu0  ;;  %v4460_v21 = vmul.f32 0.00048828125, %v3989_v2 }
 0x20c   :  { %4078 = vadd.xlane.f32.xlu1 %v11095_v3  ;;  %v6193_v6 = vsel %vm5220_vm3, %v6192_v53, %v6188_v22  ;;  %v10103_v9 = vpop.f32.mrb[153].mxu0  ;;  %v5417_v53 = vrot.slane %v4458_v41, %v9670_v44  ;;  %v7327_v41 = vld [vmem:[%s10957_s2 + $0x58] sm:$0xff]  }
 0x20d   :  { %11096 = vst [vmem:[#allocation29_spill] sm:$0xff] %v10103_v9  ;;  %v3983_v55 = vpop.xlane.xlu1 %3982  ;;  %4066 = vadd.xlane.f32.xlu0 %v11097_v38  ;;  %v10107_v47 = vpop.f32.mrb[154].mxu0  ;;  %v11100_v9 = vld [vmem:[#allocation41_spill] sm:$0xff]  ;;  %v5422_v38 = vrot.slane %v4459_v36, %v9676_v60  ;;  %7920 = vmatprep.subr.bf16.mxu1 %v7327_v41 }
 0x20e   :  { %11098 = vst [vmem:[#allocation52_spill] sm:$0xff] %v10107_v47  ;;  %v4457_v33 = vmul.f32 0.00048828125, %v3983_v55  ;;  %v4301_v48 = vpop.xlane.xlu0 %4300  ;;  %v10109_v11 = vpop.f32.mrb[155].mxu0 }
 0x20f   :  { %11099 = vst [vmem:[#allocation32_spill] sm:$0xff] %v10109_v11  ;;  %v4616_v37 = vmul.f32 0.00048828125, %v4301_v48  ;;  %v5427_v11 = vrot.slane %v4460_v21, %v9681_v34  ;;  %v11101_v48 = vld [vmem:[#allocation60_spill] sm:$0xff] }
 0x210   :  { %v5412_v3 = vrot.slane %v4457_v33, %v9667_v12  ;;  %4390 = vadd.xlane.f32.xlu1 %v9703_v49 }
 0x211   :  { %v6197_v17 = vrot.slane %v4616_v37, %v9608_v54  ;;  %v3995_v22 = vpop.xlane.xlu1 %3994  ;;  %4062 = vadd.xlane.f32.xlu0 %v11100_v9  ;;  %v7319_v9 = vld [vmem:[%s10957_s2 + $0x18] sm:$0xff]  }
 0x212   :  { %v5413_v57 = vsel %vm5234_vm5, %v5412_v3, %v5408_v15  ;;  %v4307_v55 = vpop.xlane.xlu0 %4306  ;;  %v4462_v15 = vmul.f32 0.00048828125, %v3993_v42  ;;  %v11102_v37 = vld [vmem:[#allocation45_spill] sm:$0xff]  ;;  %v4463_v3 = vmul.f32 0.00048828125, %v3995_v22  ;;  %7922 = vmatpush3.bf16.msra.mxu1 %v7319_v9 }
 0x213   :  { %v5418_v2 = vsel %vm5241_vm6, %v5417_v53, %v5413_v57  ;;  %v6198_v33 = vsel %vm5227_vm4, %v6197_v17, %v6193_v6  ;;  %v4618_v6 = vmul.f32 0.00048828125, %v4305_v32 }
 0x214   :  { %4088 = vadd.xlane.f32.xlu1 %v11101_v48  ;;  %v5423_v49 = vsel %vm5248_vm7, %v5422_v38, %v5418_v2  ;;  %v4619_v38 = vmul.f32 0.00048828125, %v4307_v55  ;;  %v11103_v48 = vld [vmem:[#allocation62_spill] sm:$0xff]  ;;  %v5437_v42 = vrot.slane %v4462_v15, %v9737_v13  ;;  %v5442_v55 = vrot.slane %v4463_v3, %v9743_v26 }
 0x215   :  { %v5428_v36 = vsel %vm5255_vm8, %v5427_v11, %v5423_v49  ;;  %v3991_v21 = vpop.xlane.xlu1 %3990  ;;  %4072 = vadd.xlane.f32.xlu0 %v11102_v37  ;;  %v11105_v37 = vld [vmem:[#allocation47_spill] sm:$0xff]  ;;  %v6207_v22 = vrot.slane %v4618_v6, %v9670_v44 }
 0x216   :  { %v4461_v53 = vmul.f32 0.00048828125, %v3991_v21  ;;  %v4303_v17 = vpop.xlane.xlu0 %4302 }
 0x217   :  { %v4617_v57 = vmul.f32 0.00048828125, %v4303_v17  ;;  %v10133_v47 = vpop.f32.mrb[92].mxu1 }
 0x218   :  { %v5432_v2 = vrot.slane %v4461_v53, %v9733_v25  ;;  %4084 = vadd.xlane.f32.xlu1 %v11103_v48  ;;  %11104 = vst [vmem:[#allocation54_spill] sm:$0xff] %v10133_v47  ;;  %v10138_v32 = vpop.f32.mrb[93].mxu1  ;;  %v6212_v53 = vrot.slane %v4619_v38, %v9676_v60  ;;  %v11108_v47 = vld [vmem:[#allocation61_spill] sm:$0xff] }
 0x219   :  { %v6202_v11 = vrot.slane %v4617_v57, %v9667_v12  ;;  %v4003_v49 = vpop.xlane.xlu1 %4002  ;;  %4068 = vadd.xlane.f32.xlu0 %v11105_v37  ;;  %v10143_v21 = vpop.f32.mrb[94].mxu1  ;;  %v11107_v37 = vld [vmem:[#allocation64_spill] sm:$0xff] }
 0x21a   :  { %v5433_v41 = vsel %vm5262_vm9, %v5432_v2, %v5428_v36  ;;  %v4001_v9 = vpop.xlane.xlu0 %4000  ;;  %11106 = vst [vmem:[#allocation36_spill] sm:$0xff] %v10143_v21  ;;  %v10148_v57 = vpop.f32.mrb[95].mxu1  ;;  %v11109_v21 = vld [vmem:[#allocation65_spill] sm:$0xff] }
 0x21b   :  { %v5438_v15 = vsel %vm5269_vm10, %v5437_v42, %v5433_v41  ;;  %v6203_v17 = vsel %vm5234_vm5, %v6202_v11, %v6198_v33  ;;  %v4466_v11 = vmul.f32 0.00048828125, %v4001_v9 }
 0x21c   :  { %v6208_v48 = vsel %vm5241_vm6, %v6207_v22, %v6203_v17  ;;  %4090 = vadd.xlane.f32.xlu1 %v11107_v37  ;;  %v5443_v6 = vsel %vm5276_vm11, %v5442_v55, %v5438_v15  ;;  %v4467_v22 = vmul.f32 0.00048828125, %v4003_v49 }
 0x21d   :  { %v3999_v3 = vpop.xlane.xlu1 %3998  ;;  %4388 = vadd.xlane.f32.xlu0 %v11108_v47  ;;  %v6213_v36 = vsel %vm5248_vm7, %v6212_v53, %v6208_v48 }
 0x21e   :  { %v4313_v2 = vpop.xlane.xlu0 %4312  ;;  %v4465_v33 = vmul.f32 0.00048828125, %v3999_v3  ;;  %v5462_v9 = vrot.slane %v4467_v22, %v9803_v29 }
 0x220   :  { %4086 = vadd.xlane.f32.xlu1 %v11109_v21  ;;  %v5452_v47 = vrot.slane %v4465_v33, %v9795_v5  ;;  %v5457_v21 = vrot.slane %v4466_v11, %v9798_v27  ;;  %v4622_v11 = vmul.f32 0.00048828125, %v4313_v2 }
 0x221   :  { %v4011_v38 = vpop.xlane.xlu1 %4010  ;;  %4100 = vadd.xlane.f32.xlu0 %v9749_v62 }
 0x222   :  { %v3997_v42 = vpop.xlane.xlu0 %3996 }
 0x223   :  { %v4464_v41 = vmul.f32 0.00048828125, %v3997_v42 }
 0x224   :  { %4096 = vadd.xlane.f32.xlu1 %v9709_v35 }
 0x225   :  { %v5447_v55 = vrot.slane %v4464_v41, %v9752_v28  ;;  %v10159_v15 = vpop.xlane.xlu1 %4322  ;;  %4136 = vadd.xlane.f32.xlu0 %v9843_v18 }
 0x226   :  { %v4309_v53 = vpop.xlane.xlu0 %4308 }
 0x227   :  { %v5448_v62 = vsel %vm5283_vm12, %v5447_v55, %v5443_v6  ;;  %v4620_v17 = vmul.f32 0.00048828125, %v4309_v53 }
 0x228   :  { %4092 = vadd.xlane.f32.xlu1 %v9714_v8  ;;  %v5453_v35 = vsel %vm5290_vm13, %v5452_v47, %v5448_v62  ;;  %v11110_v8 = vld [vmem:[#allocation66_spill] sm:$0xff] }
 0x229   :  { %v6217_v49 = vrot.slane %v4620_v17, %v9681_v34  ;;  %v4007_v48 = vpop.xlane.xlu1 %4006  ;;  %4132 = vadd.xlane.f32.xlu0 %v9847_v0  ;;  %v5458_v18 = vsel %vm5297_vm14, %v5457_v21, %v5453_v35  ;;  %v7328_v0 = vld [vmem:[%s10957_s2 + $0x60] sm:$0xff]  }
 0x22a   :  { %v4315_v37 = vpop.xlane.xlu0 %4314  ;;  %v5463_v3 = vsel %vm5304_vm15, %v5462_v9, %v5458_v18  ;;  %7924 = vmatprep.subr.bf16.mxu1 %v7328_v0  ;;  %v4469_v18 = vmul.f32 0.00048828125, %v4007_v48 }
 0x22b   :  { %v6218_v6 = vsel %vm5255_vm8, %v6217_v49, %v6213_v36  ;;  %v10175_v33 = vsel %vm6491_vm0, %v9858_v39, %v5463_v3  ;;  %v7320_v36 = vld [vmem:[%s10957_s2 + $0x20] sm:$0xff]   ;;  %v4623_v22 = vmul.f32 0.00048828125, %v4315_v37  ;;  %v11111_v39 = vld [vmem:[#allocation67_spill] sm:$0xff] }
 0x22c   :  { %4098 = vadd.xlane.f32.xlu1 %v11110_v8  ;;  %7926 = vmatpush3.bf16.msra.mxu1 %v7320_v36 }
 0x22d   :  { %v10178_v42 = vpop.xlane.xlu1 %4016  ;;  %4168 = vadd.xlane.f32.xlu0 %v9933_v45  ;;  %v6227_v45 = vrot.slane %v4622_v11, %v9737_v13  ;;  %v6232_v21 = vrot.slane %v4623_v22, %v9743_v26 }
 0x22e   :  { %v4311_v41 = vpop.xlane.xlu0 %4310 }
 0x22f   :  { %v4621_v55 = vmul.f32 0.00048828125, %v4311_v41 }
 0x230   :  { %4094 = vadd.xlane.f32.xlu1 %v11111_v39 }
 0x231   :  { %v6222_v47 = vrot.slane %v4621_v55, %v9733_v25  ;;  %v10189_v53 = vpop.xlane.xlu1 %4328  ;;  %4170 = vadd.xlane.f32.xlu0 %v9941_v31 }
 0x232   :  { %v4009_v2 = vpop.xlane.xlu0 %4008 }
 0x233   :  { %v6223_v62 = vsel %vm5262_vm9, %v6222_v47, %v6218_v6  ;;  %v4470_v6 = vmul.f32 0.00048828125, %v4009_v2 }
 0x234   :  { %v6228_v17 = vsel %vm5269_vm10, %v6227_v45, %v6223_v62  ;;  %4102 = vadd.xlane.f32.xlu1 %v9760_v52  ;;  %v4471_v52 = vmul.f32 0.00048828125, %v4011_v38 }
 0x235   :  { %v4331_v9 = vpop.xlane.xlu1 %4330  ;;  %4166 = vadd.xlane.f32.xlu0 %v9947_v61  ;;  %v6233_v35 = vsel %vm5276_vm11, %v6232_v21, %v6228_v17  ;;  %v4627_v21 = vmul.f32 0.00048828125, %v10159_v15  ;;  %v7321_v15 = vld [vmem:[%s10957_s2 + $0x28] sm:$0xff]  }
 0x236   :  { %v4321_v49 = vpop.xlane.xlu0 %4320  ;;  %v5481_v22 = vrot.slane %v4471_v52, %v9587_v58 }
 0x237   :  { %v10200_v31 = vpop.f32.mrb[96].mxu1 }
 0x238   :  { %4134 = vadd.xlane.f32.xlu1 %v9855_v40  ;;  %v10203_v3 = vpop.f32.mrb[97].mxu1  ;;  %v5471_v40 = vrot.slane %v4469_v18, %v9557_v56 }
 0x239   :  { %v4327_v37 = vpop.xlane.xlu1 %4326  ;;  %4176 = vadd.xlane.f32.xlu0 %v9964_v4  ;;  %v10205_v11 = vpop.f32.mrb[98].mxu1  ;;  %v5476_v4 = vrot.slane %v4470_v6, %v9562_v46 }
 0x23a   :  { %v4005_v8 = vpop.xlane.xlu0 %4004  ;;  %v10207_v61 = vpop.f32.mrb[99].mxu1  ;;  %v4629_v52 = vmul.f32 0.00048828125, %v4327_v37 }
 0x23b   :  { %v4468_v41 = vmul.f32 0.00048828125, %v4005_v8 }
 0x23c   :  { %4164 = vadd.xlane.f32.xlu1 %v9937_v14  ;;  %v6261_v37 = vrot.slane %v4629_v52, %v9557_v56 }
 0x23d   :  { %v5467_v0 = vrot.slane %v4468_v41, %v9551_v20  ;;  %v10212_v48 = vpop.xlane.xlu1 %4024  ;;  %4172 = vadd.xlane.f32.xlu0 %v9968_v51  ;;  %v4626_v51 = vmul.f32 0.00048828125, %v4321_v49 }
 0x23e   :  { %v4317_v36 = vpop.xlane.xlu0 %4316 }
 0x23f   :  { %v5472_v38 = vsel %vm5206_vm1, %v5471_v40, %v5467_v0  ;;  %v4624_v55 = vmul.f32 0.00048828125, %v4317_v36 }
 0x240   :  { %v5477_v39 = vsel %vm5213_vm2, %v5476_v4, %v5472_v38  ;;  %4200 = vadd.xlane.f32.xlu1 %v10045_v30  ;;  %v6247_v30 = vrot.slane %v4626_v51, %v9798_v27  ;;  %v4630_v4 = vmul.f32 0.00048828125, %v10189_v53 }
 0x241   :  { %v6237_v14 = vrot.slane %v4624_v55, %v9752_v28  ;;  %v4337_v47 = vpop.xlane.xlu1 %4336  ;;  %4178 = vadd.xlane.f32.xlu0 %v9972_v1  ;;  %v5482_v45 = vsel %vm5220_vm3, %v5481_v22, %v5477_v39  ;;  %v7329_v1 = vld [vmem:[%s10957_s2 + $0x68] sm:$0xff]   ;;  %v4631_v22 = vmul.f32 0.00048828125, %v4331_v9 }
 0x242   :  { %v4319_v2 = vpop.xlane.xlu0 %4318  ;;  %7928 = vmatprep.subr.bf16.mxu1 %v7329_v1  ;;  %v11112_v39 = vld [vmem:[#allocation59_spill] sm:$0xff] }
 0x243   :  { %v6238_v62 = vsel %vm5283_vm12, %v6237_v14, %v6233_v35  ;;  %v4625_v17 = vmul.f32 0.00048828125, %v4319_v2  ;;  %v6252_v35 = vrot.slane %v4627_v21, %v9803_v29  ;;  %7930 = vmatpush3.bf16.msra.mxu1 %v7321_v15  ;;  %v6271_v53 = vrot.slane %v4631_v22, %v9587_v58 }
 0x244   :  { %4196 = vadd.xlane.f32.xlu1 %v10051_v19 }
 0x245   :  { %v6242_v18 = vrot.slane %v4625_v17, %v9795_v5  ;;  %v4021_v6 = vpop.xlane.xlu1 %4020  ;;  %4174 = vadd.xlane.f32.xlu0 %v9978_v7 }
 0x246   :  { %v4013_v8 = vpop.xlane.xlu0 %4012 }
 0x247   :  { %v6243_v19 = vsel %vm5290_vm13, %v6242_v18, %v6238_v62  ;;  %v4472_v49 = vmul.f32 0.00048828125, %v4013_v8  ;;  %v4634_v62 = vmul.f32 0.00048828125, %v4337_v47 }
 0x248   :  { %4202 = vadd.xlane.f32.xlu1 %v10055_v23  ;;  %v6248_v7 = vsel %vm5297_vm14, %v6247_v30, %v6243_v19  ;;  %v11113_v30 = vld [vmem:[#allocation14_spill] sm:$0xff] }
 0x249   :  { %v5486_v41 = vrot.slane %v4472_v49, %v9608_v54  ;;  %v4333_v40 = vpop.xlane.xlu1 %4332  ;;  %4184 = vadd.xlane.f32.xlu0 %v9987_v16  ;;  %v10242_v0 = vsel %vm5304_vm15, %v6252_v35, %v6248_v7  ;;  %v6266_v16 = vrot.slane %v4630_v4, %v9562_v46  ;;  %v4476_v7 = vmul.f32 0.00048828125, %v4021_v6 }
 0x24a   :  { %v4325_v36 = vpop.xlane.xlu0 %4324  ;;  %v4632_v23 = vmul.f32 0.00048828125, %v4333_v40  ;;  %v11114_v40 = vld [vmem:[#allocation16_spill] sm:$0xff] }
 0x24b   :  { %v5487_v38 = vsel %vm5227_vm4, %v5486_v41, %v5482_v45  ;;  %v4628_v55 = vmul.f32 0.00048828125, %v4325_v36 }
 0x24c   :  { %4392 = vadd.xlane.f32.xlu1 %v11112_v39  ;;  %v6276_v45 = vrot.slane %v4632_v23, %v9608_v54  ;;  %v5506_v23 = vrot.slane %v4476_v7, %v9681_v34 }
 0x24d   :  { %v6257_v14 = vrot.slane %v4628_v55, %v9551_v20  ;;  %v4339_v51 = vpop.xlane.xlu1 %4338  ;;  %4180 = vadd.xlane.f32.xlu0 %v9991_v50  ;;  %v4474_v50 = vmul.f32 0.00048828125, %v10178_v42 }
 0x24e   :  { %v4019_v2 = vpop.xlane.xlu0 %4018  ;;  %v4635_v8 = vmul.f32 0.00048828125, %v4339_v51  ;;  %v11115_v51 = vld [vmem:[#allocation15_spill] sm:$0xff] }
 0x24f   :  { %v6262_v9 = vsel %vm5206_vm1, %v6261_v37, %v6257_v14  ;;  %v4475_v19 = vmul.f32 0.00048828125, %v4019_v2  ;;  %v5496_v42 = vrot.slane %v4474_v50, %v9670_v44  ;;  %v4478_v2 = vmul.f32 0.00048828125, %v10212_v48 }
 0x250   :  { %v6267_v21 = vsel %vm5213_vm2, %v6266_v16, %v6262_v9  ;;  %4138 = vadd.xlane.f32.xlu1 %v9851_v59  ;;  %v6286_v59 = vrot.slane %v4634_v62, %v9670_v44  ;;  %v6291_v4 = vrot.slane %v4635_v8, %v9676_v60 }
 0x251   :  { %v6272_v17 = vsel %vm5220_vm3, %v6271_v53, %v6267_v21  ;;  %v4335_v18 = vpop.xlane.xlu1 %4334  ;;  %4186 = vadd.xlane.f32.xlu0 %v11113_v30  ;;  %v5501_v6 = vrot.slane %v4475_v19, %v9676_v60  ;;  %v11116_v21 = vld [vmem:[#allocation27_spill] sm:$0xff] }
 0x252   :  { %v6277_v1 = vsel %vm5227_vm4, %v6276_v45, %v6272_v17  ;;  %v4633_v15 = vmul.f32 0.00048828125, %v4335_v18  ;;  %v4015_v35 = vpop.xlane.xlu0 %4014  ;;  %v5516_v18 = vrot.slane %v4478_v2, %v9737_v13 }
 0x253   :  { %v4473_v49 = vmul.f32 0.00048828125, %v4015_v35 }
 0x254   :  { %v6281_v52 = vrot.slane %v4633_v15, %v9667_v12  ;;  %4208 = vadd.xlane.f32.xlu1 %v10071_v24  ;;  %v7322_v15 = vld [vmem:[%s10957_s2 + $0x30] sm:$0xff]  }
 0x255   :  { %v5491_v47 = vrot.slane %v4473_v49, %v9667_v12  ;;  %v4033_v41 = vpop.xlane.xlu1 %4032  ;;  %4182 = vadd.xlane.f32.xlu0 %v11114_v40 }
 0x256   :  { %v6282_v36 = vsel %vm5234_vm5, %v6281_v52, %v6277_v1  ;;  %v4027_v22 = vpop.xlane.xlu0 %4026  ;;  %v7330_v1 = vld [vmem:[%s10957_s2 + $0x70] sm:$0xff]  }
 0x257   :  { %v6287_v55 = vsel %vm5241_vm6, %v6286_v59, %v6282_v36  ;;  %v5492_v24 = vsel %vm5234_vm5, %v5491_v47, %v5487_v38  ;;  %v4479_v45 = vmul.f32 0.00048828125, %v4027_v22  ;;  %7932 = vmatprep.subr.bf16.mxu1 %v7330_v1  ;;  %v11118_v52 = vld [vmem:[#allocation20_spill] sm:$0xff]  ;;  %v4482_v59 = vmul.f32 0.00048828125, %v4033_v41 }
 0x258   :  { %v5497_v39 = vsel %vm5241_vm6, %v5496_v42, %v5492_v24  ;;  %4204 = vadd.xlane.f32.xlu1 %v10076_v10  ;;  %v6292_v37 = vsel %vm5248_vm7, %v6291_v4, %v6287_v55  ;;  %v11117_v10 = vld [vmem:[#allocation17_spill] sm:$0xff]  ;;  %7934 = vmatpush3.bf16.msra.mxu1 %v7322_v15  ;;  %v11119_v55 = vld [vmem:[#allocation18_spill] sm:$0xff] }
 0x259   :  { %v4345_v14 = vpop.xlane.xlu1 %4344  ;;  %4192 = vadd.xlane.f32.xlu0 %v11115_v51  ;;  %v5502_v16 = vsel %vm5248_vm7, %v5501_v6, %v5497_v39  ;;  %v5521_v8 = vrot.slane %v4479_v45, %v9743_v26  ;;  %v5536_v24 = vrot.slane %v4482_v59, %v9798_v27 }
 0x25a   :  { %v5507_v53 = vsel %vm5255_vm8, %v5506_v23, %v5502_v16  ;;  %v4023_v9 = vpop.xlane.xlu0 %4022  ;;  %v11120_v16 = vld [vmem:[#allocation29_spill] sm:$0xff] }
 0x25b   :  { %v4477_v38 = vmul.f32 0.00048828125, %v4023_v9  ;;  %v11121_v9 = vld [vmem:[#allocation25_spill] sm:$0xff] }
 0x25c   :  { %4210 = vadd.xlane.f32.xlu1 %v11116_v21 }
 0x25d   :  { %v5511_v62 = vrot.slane %v4477_v38, %v9733_v25  ;;  %v4029_v17 = vpop.xlane.xlu1 %4028  ;;  %4188 = vadd.xlane.f32.xlu0 %v11117_v10 }
 0x25e   :  { %v4480_v30 = vmul.f32 0.00048828125, %v4029_v17  ;;  %v4035_v50 = vpop.xlane.xlu0 %4034  ;;  %v11122_v17 = vld [vmem:[#allocation28_spill] sm:$0xff] }
 0x25f   :  { %v5512_v48 = vsel %vm5262_vm9, %v5511_v62, %v5507_v53  ;;  %v4483_v4 = vmul.f32 0.00048828125, %v4035_v50  ;;  %v4638_v53 = vmul.f32 0.00048828125, %v4345_v14  ;;  %v11124_v14 = vld [vmem:[#allocation33_spill] sm:$0xff] }
 0x260   :  { %v5517_v35 = vsel %vm5269_vm10, %v5516_v18, %v5512_v48  ;;  %v5526_v19 = vrot.slane %v4480_v30, %v9752_v28  ;;  %4206 = vadd.xlane.f32.xlu1 %v10085_v63  ;;  %v11123_v18 = vld [vmem:[#allocation52_spill] sm:$0xff] }
 0x261   :  { %v5522_v49 = vsel %vm5276_vm11, %v5521_v8, %v5517_v35  ;;  %v4341_v7 = vpop.xlane.xlu1 %4340  ;;  %4194 = vadd.xlane.f32.xlu0 %v11118_v52  ;;  %v5541_v39 = vrot.slane %v4483_v4, %v9803_v29  ;;  %v6306_v30 = vrot.slane %v4638_v53, %v9737_v13  ;;  %v11125_v35 = vld [vmem:[#allocation32_spill] sm:$0xff]  ;;  %v11128_v4 = vld [vmem:[#allocation26_spill] sm:$0xff] }
 0x262   :  { %v5527_v47 = vsel %vm5283_vm12, %v5526_v19, %v5522_v49  ;;  %v4636_v40 = vmul.f32 0.00048828125, %v4341_v7  ;;  %v4031_v42 = vpop.xlane.xlu0 %4030  ;;  %v11126_v7 = vld [vmem:[#allocation68_spill] sm:$0xff] }
 0x263   :  { %v4481_v36 = vmul.f32 0.00048828125, %v4031_v42 }
 0x264   :  { %v6296_v22 = vrot.slane %v4636_v40, %v9681_v34  ;;  %4216 = vadd.xlane.f32.xlu1 %v10099_v43  ;;  %v11127_v40 = vld [vmem:[#allocation63_spill] sm:$0xff] }
 0x265   :  { %v5531_v63 = vrot.slane %v4481_v36, %v9795_v5  ;;  %v4347_v6 = vpop.xlane.xlu1 %4346  ;;  %4190 = vadd.xlane.f32.xlu0 %v11119_v55  ;;  %v7331_v55 = vld [vmem:[%s10957_s2 + $0x78] sm:$0xff]  }
 0x266   :  { %v6297_v23 = vsel %vm5255_vm8, %v6296_v22, %v6292_v37  ;;  %v4041_v41 = vpop.xlane.xlu0 %4040  ;;  %v4639_v38 = vmul.f32 0.00048828125, %v4347_v6  ;;  %v11129_v6 = vld [vmem:[#allocation82_spill] sm:$0xff]  ;;  %7936 = vmatprep.subr.bf16.mxu1 %v7331_v55 }
 0x267   :  { %v5532_v51 = vsel %vm5290_vm13, %v5531_v63, %v5527_v47 }
 0x268   :  { %4212 = vadd.xlane.f32.xlu1 %v11120_v16  ;;  %v5537_v2 = vsel %vm5297_vm14, %v5536_v24, %v5532_v51  ;;  %v6311_v8 = vrot.slane %v4639_v38, %v9743_v26  ;;  %v7323_v24 = vld [vmem:[%s10957_s2 + $0x38] sm:$0xff]   ;;  %v11131_v38 = vld [vmem:[#allocation19_spill] sm:$0xff] }
 0x269   :  { %v4343_v43 = vpop.xlane.xlu1 %4342  ;;  %4198 = vadd.xlane.f32.xlu0 %v11121_v9  ;;  %v5542_v45 = vsel %vm5304_vm15, %v5541_v39, %v5537_v2  ;;  %v11130_v16 = vld [vmem:[#allocation69_spill] sm:$0xff]  ;;  %7938 = vmatpush3.bf16.msra.mxu1 %v7323_v24 }
 0x26a   :  { %v4637_v21 = vmul.f32 0.00048828125, %v4343_v43  ;;  %v4037_v62 = vpop.xlane.xlu0 %4036  ;;  %v10311_v37 = vsel %vm6491_vm0, %v11122_v17, %v5542_v45 }
 0x26b   :  { %v4484_v63 = vmul.f32 0.00048828125, %v4037_v62 }
 0x26c   :  { %v6301_v10 = vrot.slane %v4637_v21, %v9733_v25  ;;  %4218 = vadd.xlane.f32.xlu1 %v11123_v18 }
 0x26d   :  { %v4353_v50 = vpop.xlane.xlu1 %4352  ;;  %4358 = vadd.xlane.f32.xlu0 %v11124_v14  ;;  %v5546_v9 = vrot.slane %v4484_v63, %v9551_v20 }
 0x26e   :  { %v6302_v48 = vsel %vm5262_vm9, %v6301_v10, %v6297_v23  ;;  %v4043_v1 = vpop.xlane.xlu0 %4042  ;;  %v4486_v23 = vmul.f32 0.00048828125, %v4041_v41  ;;  %v4642_v62 = vmul.f32 0.00048828125, %v4353_v50  ;;  %v11132_v10 = vld [vmem:[#allocation30_spill] sm:$0xff] }
 0x26f   :  { %v6307_v15 = vsel %vm5269_vm10, %v6306_v30, %v6302_v48  ;;  %v4487_v39 = vmul.f32 0.00048828125, %v4043_v1 }
 0x270   :  { %4214 = vadd.xlane.f32.xlu1 %v11125_v35  ;;  %v6312_v19 = vsel %vm5276_vm11, %v6311_v8, %v6307_v15  ;;  %v5555_v21 = vrot.slane %v4486_v23, %v9562_v46 }
 0x271   :  { %v4349_v49 = vpop.xlane.xlu1 %4348  ;;  %4104 = vadd.xlane.f32.xlu0 %v11126_v7  ;;  %v5560_v41 = vrot.slane %v4487_v39, %v9587_v58  ;;  %v11133_v7 = vld [vmem:[#allocation84_spill] sm:$0xff] }
 0x272   :  { %v4640_v52 = vmul.f32 0.00048828125, %v4349_v49  ;;  %v4049_v59 = vpop.xlane.xlu0 %4048 }
 0x273   :  { %v4490_v18 = vmul.f32 0.00048828125, %v4049_v59 }
 0x274   :  { %v6316_v47 = vrot.slane %v4640_v52, %v9752_v28  ;;  %4394 = vadd.xlane.f32.xlu1 %v11127_v40  ;;  %v6326_v52 = vrot.slane %v4642_v62, %v9798_v27  ;;  %v11138_v62 = vld [vmem:[#allocation73_spill] sm:$0xff] }
 0x275   :  { %v4355_v42 = vpop.xlane.xlu1 %4354  ;;  %4360 = vadd.xlane.f32.xlu0 %v11128_v4  ;;  %v5575_v4 = vrot.slane %v4490_v18, %v9670_v44  ;;  %v11139_v18 = vld [vmem:[#allocation21_spill] sm:$0xff] }
 0x276   :  { %v6317_v36 = vsel %vm5283_vm12, %v6316_v47, %v6312_v19  ;;  %v4045_v22 = vpop.xlane.xlu0 %4044  ;;  %v4643_v30 = vmul.f32 0.00048828125, %v4355_v42  ;;  %v11134_v42 = vld [vmem:[#allocation71_spill] sm:$0xff] }
 0x277   :  { %v4488_v43 = vmul.f32 0.00048828125, %v4045_v22 }
 0x278   :  { %4140 = vadd.xlane.f32.xlu1 %v11129_v6  ;;  %v6331_v22 = vrot.slane %v4643_v30, %v9803_v29 }
 0x279   :  { %v4039_v51 = vpop.xlane.xlu1 %4038  ;;  %4106 = vadd.xlane.f32.xlu0 %v11130_v16  ;;  %v5565_v1 = vrot.slane %v4488_v43, %v9608_v54 }
 0x27a   :  { %v4485_v2 = vmul.f32 0.00048828125, %v4039_v51  ;;  %v4051_v53 = vpop.xlane.xlu0 %4050  ;;  %v11135_v51 = vld [vmem:[#allocation23_spill] sm:$0xff] }
 0x27b   :  { %v4491_v35 = vmul.f32 0.00048828125, %v4051_v53  ;;  %v11136_v53 = vld [vmem:[#allocation37_spill] sm:$0xff] }
 0x27c   :  { %v5550_v45 = vrot.slane %v4485_v2, %v9557_v56  ;;  %4396 = vadd.xlane.f32.xlu1 %v11131_v38 }
 0x27d   :  { %v4351_v17 = vpop.xlane.xlu1 %4350  ;;  %4362 = vadd.xlane.f32.xlu0 %v11132_v10  ;;  %v5580_v55 = vrot.slane %v4491_v35, %v9676_v60  ;;  %v11141_v35 = vld [vmem:[#allocation83_spill] sm:$0xff] }
 0x27e   :  { %v5551_v14 = vsel %vm5206_vm1, %v5550_v45, %v5546_v9  ;;  %v4641_v8 = vmul.f32 0.00048828125, %v4351_v17  ;;  %v4047_v48 = vpop.xlane.xlu0 %4046  ;;  %v11137_v45 = vld [vmem:[#allocation81_spill] sm:$0xff] }
 0x27f   :  { %v5556_v15 = vsel %vm5213_vm2, %v5555_v21, %v5551_v14  ;;  %v4489_v19 = vmul.f32 0.00048828125, %v4047_v48  ;;  %v7340_v17 = vld [vmem:[%s10957_s2 + $0xc0] sm:$0xff]  }
 0x280   :  { %v6321_v49 = vrot.slane %v4641_v8, %v9795_v5  ;;  %v5561_v50 = vsel %vm5220_vm3, %v5560_v41, %v5556_v15  ;;  %4142 = vadd.xlane.f32.xlu1 %v11133_v7  ;;  %7940 = vmatprep.subr.bf16.mxu1 %v7340_v17  ;;  %v11140_v14 = vld [vmem:[#allocation42_spill] sm:$0xff] }
 0x281   :  { %v5566_v59 = vsel %vm5227_vm4, %v5565_v1, %v5561_v50  ;;  %v5570_v47 = vrot.slane %v4489_v19, %v9667_v12  ;;  %v10350_v40 = vpop.xlane.xlu1 %4356  ;;  %4108 = vadd.xlane.f32.xlu0 %v11134_v42  ;;  %v11142_v50 = vld [vmem:[#allocation70_spill] sm:$0xff] }
 0x282   :  { %v6322_v63 = vsel %vm5290_vm13, %v6321_v49, %v6317_v36  ;;  %v4057_v6 = vpop.xlane.xlu0 %4056 }
 0x283   :  { %v5571_v24 = vsel %vm5234_vm5, %v5570_v47, %v5566_v59  ;;  %v6327_v23 = vsel %vm5297_vm14, %v6326_v52, %v6322_v63  ;;  %v4494_v8 = vmul.f32 0.00048828125, %v4057_v6  ;;  %v11144_v63 = vld [vmem:[#allocation35_spill] sm:$0xff] }
 0x284   :  { %v5576_v39 = vsel %vm5241_vm6, %v5575_v4, %v5571_v24  ;;  %4398 = vadd.xlane.f32.xlu1 %v11135_v51  ;;  %v10362_v16 = vsel %vm5304_vm15, %v6331_v22, %v6327_v23  ;;  %v11143_v4 = vld [vmem:[#allocation24_spill] sm:$0xff]  ;;  %v11145_v23 = vld [vmem:[#allocation85_spill] sm:$0xff] }
 0x285   :  { %v10364_v2 = vpop.xlane.xlu1 %4074  ;;  %4364 = vadd.xlane.f32.xlu0 %v11136_v53  ;;  %v5581_v36 = vsel %vm5248_vm7, %v5580_v55, %v5576_v39  ;;  %v5595_v7 = vrot.slane %v4494_v8, %v9737_v13  ;;  %v11146_v53 = vld [vmem:[#allocation72_spill] sm:$0xff]  ;;  %v11149_v8 = vld [vmem:[#allocation75_spill] sm:$0xff] }
 0x286   :  { %v4053_v43 = vpop.xlane.xlu0 %4052 }
 0x287   :  { %v4492_v9 = vmul.f32 0.00048828125, %v4053_v43 }
 0x288   :  { %4144 = vadd.xlane.f32.xlu1 %v11137_v45  ;;  %v11147_v45 = vld [vmem:[#allocation39_spill] sm:$0xff] }
 0x289   :  { %v5585_v38 = vrot.slane %v4492_v9, %v9681_v34  ;;  %v4071_v21 = vpop.xlane.xlu1 %4070  ;;  %4110 = vadd.xlane.f32.xlu0 %v11138_v62 }
 0x28a   :  { %v4059_v41 = vpop.xlane.xlu0 %4058 }
 0x28b   :  { %v5586_v10 = vsel %vm5255_vm8, %v5585_v38, %v5581_v36  ;;  %v4495_v1 = vmul.f32 0.00048828125, %v4059_v41 }
 0x28c   :  { %4400 = vadd.xlane.f32.xlu1 %v11139_v18 }
 0x28d   :  { %v4081_v30 = vpop.xlane.xlu1 %4080  ;;  %4366 = vadd.xlane.f32.xlu0 %v11140_v14  ;;  %v5600_v59 = vrot.slane %v4495_v1, %v9743_v26 }
 0x28e   :  { %v4055_v48 = vpop.xlane.xlu0 %4054 }
 0x28f   :  { %v4493_v15 = vmul.f32 0.00048828125, %v4055_v48 }
 0x290   :  { %4146 = vadd.xlane.f32.xlu1 %v11141_v35 }
 0x291   :  { %v5590_v19 = vrot.slane %v4493_v15, %v9733_v25  ;;  %v4077_v49 = vpop.xlane.xlu1 %4076  ;;  %4112 = vadd.xlane.f32.xlu0 %v11142_v50 }
 0x292   :  { %v4065_v52 = vpop.xlane.xlu0 %4064 }
 0x293   :  { %v5591_v47 = vsel %vm5262_vm9, %v5590_v19, %v5586_v10  ;;  %v4498_v38 = vmul.f32 0.00048828125, %v4065_v52  ;;  %v11148_v10 = vld [vmem:[#allocation86_spill] sm:$0xff]  ;;  %v4501_v19 = vmul.f32 0.00048828125, %v4071_v21 }
 0x294   :  { %v5596_v42 = vsel %vm5269_vm10, %v5595_v7, %v5591_v47  ;;  %4402 = vadd.xlane.f32.xlu1 %v11143_v4  ;;  %v11150_v7 = vld [vmem:[#allocation46_spill] sm:$0xff]  ;;  %v4503_v4 = vmul.f32 0.00048828125, %v10364_v2 }
 0x295   :  { %v4083_v22 = vpop.xlane.xlu1 %4082  ;;  %4368 = vadd.xlane.f32.xlu0 %v11144_v63  ;;  %v5601_v6 = vsel %vm5276_vm11, %v5600_v59, %v5596_v42  ;;  %v5615_v48 = vrot.slane %v4498_v38, %v9798_v27 }
 0x296   :  { %v4061_v55 = vpop.xlane.xlu0 %4060  ;;  %v4507_v2 = vmul.f32 0.00048828125, %v4083_v22  ;;  %v11154_v22 = vld [vmem:[#allocation50_spill] sm:$0xff] }
 0x297   :  { %v4496_v24 = vmul.f32 0.00048828125, %v4061_v55  ;;  %v11151_v55 = vld [vmem:[#allocation8_spill] sm:$0xff] }
 0x298   :  { %4148 = vadd.xlane.f32.xlu1 %v11145_v23 }
 0x299   :  { %v5605_v39 = vrot.slane %v4496_v24, %v9752_v28  ;;  %v4079_v51 = vpop.xlane.xlu1 %4078  ;;  %4114 = vadd.xlane.f32.xlu0 %v11146_v53  ;;  %v11152_v53 = vld [vmem:[#allocation77_spill] sm:$0xff] }
 0x29a   :  { %v4067_v36 = vpop.xlane.xlu0 %4066  ;;  %v4505_v21 = vmul.f32 0.00048828125, %v4079_v51 }
 0x29b   :  { %v5606_v43 = vsel %vm5283_vm12, %v5605_v39, %v5601_v6  ;;  %v4499_v41 = vmul.f32 0.00048828125, %v4067_v36  ;;  %v4504_v6 = vmul.f32 0.00048828125, %v4077_v49  ;;  %v4506_v36 = vmul.f32 0.00048828125, %v4081_v30 }
 0x29c   :  { %4404 = vadd.xlane.f32.xlu1 %v10138_v32 }
 0x29d   :  { %v4391_v9 = vpop.xlane.xlu1 %4390  ;;  %4370 = vadd.xlane.f32.xlu0 %v11147_v45  ;;  %v5620_v15 = vrot.slane %v4499_v41, %v9803_v29  ;;  %v5639_v45 = vrot.slane %v4503_v4, %v9587_v58 }
 0x29e   :  { %v4063_v62 = vpop.xlane.xlu0 %4062  ;;  %v4661_v24 = vmul.f32 0.00048828125, %v4391_v9  ;;  %v11153_v9 = vld [vmem:[#allocation54_spill] sm:$0xff] }
 0x29f   :  { %v4497_v17 = vmul.f32 0.00048828125, %v4063_v62  ;;  %v5644_v62 = vrot.slane %v4504_v6, %v9608_v54 }
 0x2a0   :  { %4150 = vadd.xlane.f32.xlu1 %v11148_v10  ;;  %v6419_v30 = vrot.slane %v4661_v24, %v9557_v56 }
 0x2a1   :  { %v5610_v18 = vrot.slane %v4497_v17, %v9795_v5  ;;  %v4089_v14 = vpop.xlane.xlu1 %4088  ;;  %4116 = vadd.xlane.f32.xlu0 %v11149_v8  ;;  %v5649_v17 = vrot.slane %v4505_v21, %v9667_v12 }
 0x2a2   :  { %v4073_v1 = vpop.xlane.xlu0 %4072 }
 0x2a3   :  { %v5611_v32 = vsel %vm5290_vm13, %v5610_v18, %v5606_v43  ;;  %v4502_v59 = vmul.f32 0.00048828125, %v4073_v1  ;;  %v4510_v1 = vmul.f32 0.00048828125, %v4089_v14 }
 0x2a4   :  { %4406 = vadd.xlane.f32.xlu1 %v10148_v57  ;;  %v5616_v35 = vsel %vm5297_vm14, %v5615_v48, %v5611_v32  ;;  %v5629_v57 = vrot.slane %v4501_v19, %v9557_v56  ;;  %v5654_v48 = vrot.slane %v4506_v36, %v9670_v44  ;;  %v5659_v19 = vrot.slane %v4507_v2, %v9676_v60  ;;  %v11157_v36 = vld [vmem:[#allocation36_spill] sm:$0xff] }
 0x2a5   :  { %v4085_v50 = vpop.xlane.xlu1 %4084  ;;  %4372 = vadd.xlane.f32.xlu0 %v11150_v7  ;;  %v5621_v52 = vsel %vm5304_vm15, %v5620_v15, %v5616_v35  ;;  %v5634_v43 = vrot.slane %v4502_v59, %v9562_v46 }
 0x2a6   :  { %v4069_v47 = vpop.xlane.xlu0 %4068  ;;  %v10405_v42 = vsel %vm6491_vm0, %v10242_v0, %v5621_v52  ;;  %v4508_v41 = vmul.f32 0.00048828125, %v4085_v50 }
 0x2a7   :  { %v4500_v63 = vmul.f32 0.00048828125, %v4069_v47 }
 0x2a8   :  { %4152 = vadd.xlane.f32.xlu1 %v11151_v55  ;;  %v5664_v59 = vrot.slane %v4508_v41, %v9681_v34  ;;  %v11156_v55 = vld [vmem:[#allocation74_spill] sm:$0xff] }
 0x2a9   :  { %v5625_v23 = vrot.slane %v4500_v63, %v9551_v20  ;;  %v4091_v39 = vpop.xlane.xlu1 %4090  ;;  %4118 = vadd.xlane.f32.xlu0 %v11152_v53  ;;  %v11155_v63 = vld [vmem:[#allocation9_spill] sm:$0xff] }
 0x2aa   :  { %v4389_v0 = vpop.xlane.xlu0 %4388  ;;  %v4511_v50 = vmul.f32 0.00048828125, %v4091_v39 }
 0x2ab   :  { %v5630_v49 = vsel %vm5206_vm1, %v5629_v57, %v5625_v23  ;;  %v4660_v38 = vmul.f32 0.00048828125, %v4389_v0  ;;  %v5674_v57 = vrot.slane %v4510_v1, %v9737_v13 }
 0x2ac   :  { %v5635_v51 = vsel %vm5213_vm2, %v5634_v43, %v5630_v49  ;;  %4408 = vadd.xlane.f32.xlu1 %v11153_v9  ;;  %v5679_v23 = vrot.slane %v4511_v50, %v9743_v26 }
 0x2ad   :  { %v5640_v10 = vsel %vm5220_vm3, %v5639_v45, %v5635_v51  ;;  %v6415_v18 = vrot.slane %v4660_v38, %v9551_v20  ;;  %v4087_v8 = vpop.xlane.xlu1 %4086  ;;  %4374 = vadd.xlane.f32.xlu0 %v11154_v22  ;;  %v11158_v45 = vld [vmem:[#allocation44_spill] sm:$0xff] }
 0x2ae   :  { %v5645_v15 = vsel %vm5227_vm4, %v5644_v62, %v5640_v10  ;;  %v4509_v32 = vmul.f32 0.00048828125, %v4087_v8  ;;  %v4101_v35 = vpop.xlane.xlu0 %4100  ;;  %v11159_v62 = vld [vmem:[#allocation11_spill] sm:$0xff]  ;;  %v11160_v51 = vld [vmem:[#allocation76_spill] sm:$0xff] }
 0x2af   :  { %v10427_v7 = vsel %vm5206_vm1, %v6419_v30, %v6415_v18  ;;  %v5650_v52 = vsel %vm5234_vm5, %v5649_v17, %v5645_v15  ;;  %v11161_v18 = vld [vmem:[#allocation48_spill] sm:$0xff]  ;;  %v4516_v1 = vmul.f32 0.00048828125, %v4101_v35 }
 0x2b0   :  { %v5655_v47 = vsel %vm5241_vm6, %v5654_v48, %v5650_v52  ;;  %v5669_v4 = vrot.slane %v4509_v32, %v9733_v25  ;;  %4154 = vadd.xlane.f32.xlu1 %v11155_v63  ;;  %v11162_v32 = vld [vmem:[#allocation12_spill] sm:$0xff]  ;;  %v11163_v52 = vld [vmem:[#allocation79_spill] sm:$0xff] }
 0x2b1   :  { %v5660_v14 = vsel %vm5248_vm7, %v5659_v19, %v5655_v47  ;;  %v4097_v6 = vpop.xlane.xlu1 %4096  ;;  %4120 = vadd.xlane.f32.xlu0 %v11156_v55 }
 0x2b2   :  { %v5665_v21 = vsel %vm5255_vm8, %v5664_v59, %v5660_v14  ;;  %v4137_v24 = vpop.xlane.xlu0 %4136  ;;  %v4514_v30 = vmul.f32 0.00048828125, %v4097_v6  ;;  %v5704_v14 = vrot.slane %v4516_v1, %v9551_v20  ;;  %v11170_v1 = vld [vmem:[#allocation51_spill] sm:$0xff] }
 0x2b3   :  { %v5670_v39 = vsel %vm5262_vm9, %v5669_v4, %v5665_v21 }
 0x2b4   :  { %v5675_v53 = vsel %vm5269_vm10, %v5674_v57, %v5670_v39  ;;  %4410 = vadd.xlane.f32.xlu1 %v11157_v36  ;;  %v5694_v19 = vrot.slane %v4514_v30, %v9798_v27  ;;  %v4534_v57 = vmul.f32 0.00048828125, %v4137_v24  ;;  %v11168_v30 = vld [vmem:[#allocation13_spill] sm:$0xff] }
 0x2b5   :  { %v5680_v43 = vsel %vm5276_vm11, %v5679_v23, %v5675_v53  ;;  %v4093_v0 = vpop.xlane.xlu1 %4092  ;;  %4376 = vadd.xlane.f32.xlu0 %v11158_v45  ;;  %v11164_v23 = vld [vmem:[#allocation53_spill] sm:$0xff] }
 0x2b6   :  { %v4512_v2 = vmul.f32 0.00048828125, %v4093_v0  ;;  %v4133_v49 = vpop.xlane.xlu0 %4132  ;;  %v5792_v24 = vrot.slane %v4534_v57, %v9562_v46 }
 0x2b7   :  { %v4532_v35 = vmul.f32 0.00048828125, %v4133_v49  ;;  %v11166_v49 = vld [vmem:[#allocation80_spill] sm:$0xff] }
 0x2b8   :  { %v5684_v38 = vrot.slane %v4512_v2, %v9752_v28  ;;  %4156 = vadd.xlane.f32.xlu1 %v11159_v62 }
 0x2b9   :  { %v4099_v41 = vpop.xlane.xlu1 %4098  ;;  %4122 = vadd.xlane.f32.xlu0 %v11160_v51  ;;  %v5783_v0 = vrot.slane %v4532_v35, %v9551_v20  ;;  %v11167_v51 = vld [vmem:[#allocation58_spill] sm:$0xff] }
 0x2ba   :  { %v5685_v9 = vsel %vm5283_vm12, %v5684_v38, %v5680_v43  ;;  %v10448_v17 = vpop.xlane.xlu0 %4168  ;;  %v4515_v8 = vmul.f32 0.00048828125, %v4099_v41 }
 0x2bc   :  { %4412 = vadd.xlane.f32.xlu1 %v10203_v3  ;;  %v5699_v3 = vrot.slane %v4515_v8, %v9803_v29 }
 0x2bd   :  { %v4095_v10 = vpop.xlane.xlu1 %4094  ;;  %4378 = vadd.xlane.f32.xlu0 %v11161_v18  ;;  %v11169_v18 = vld [vmem:[#allocation6_spill] sm:$0xff] }
 0x2be   :  { %v4513_v22 = vmul.f32 0.00048828125, %v4095_v10  ;;  %v10452_v48 = vpop.xlane.xlu0 %4170 }
 0x2c0   :  { %v5689_v15 = vrot.slane %v4513_v22, %v9795_v5  ;;  %4158 = vadd.xlane.f32.xlu1 %v11162_v32  ;;  %v11171_v32 = vld [vmem:[#allocation55_spill] sm:$0xff] }
 0x2c1   :  { %v4103_v50 = vpop.xlane.xlu1 %4102  ;;  %4124 = vadd.xlane.f32.xlu0 %v11163_v52 }
 0x2c2   :  { %v5690_v59 = vsel %vm5290_vm13, %v5689_v15, %v5685_v9  ;;  %v4517_v47 = vmul.f32 0.00048828125, %v4103_v50  ;;  %v4167_v4 = vpop.xlane.xlu0 %4166 }
 0x2c3   :  { %v5695_v63 = vsel %vm5297_vm14, %v5694_v19, %v5690_v59  ;;  %v4549_v35 = vmul.f32 0.00048828125, %v4167_v4 }
 0x2c4   :  { %v5708_v6 = vrot.slane %v4517_v47, %v9557_v56  ;;  %4414 = vadd.xlane.f32.xlu1 %v10207_v61  ;;  %v5700_v55 = vsel %vm5304_vm15, %v5699_v3, %v5695_v63  ;;  %v11165_v61 = vld [vmem:[#allocation10_spill] sm:$0xff] }
 0x2c5   :  { %v4135_v21 = vpop.xlane.xlu1 %4134  ;;  %4380 = vadd.xlane.f32.xlu0 %v11164_v23  ;;  %v10468_v39 = vsel %vm6491_vm0, %v10362_v16, %v5700_v55 }
 0x2c6   :  { %v10471_v53 = vsel %vm5206_vm1, %v5708_v6, %v5704_v14  ;;  %v4533_v36 = vmul.f32 0.00048828125, %v4135_v21  ;;  %v4177_v43 = vpop.xlane.xlu0 %4176 }
 0x2c8   :  { %v5787_v45 = vrot.slane %v4533_v36, %v9557_v56  ;;  %4160 = vadd.xlane.f32.xlu1 %v11165_v61  ;;  %v4550_v36 = vmul.f32 0.00048828125, %v10448_v17 }
 0x2c9   :  { %v4165_v2 = vpop.xlane.xlu1 %4164  ;;  %4126 = vadd.xlane.f32.xlu0 %v11166_v49 }
 0x2ca   :  { %v5788_v38 = vsel %vm5206_vm1, %v5787_v45, %v5783_v0  ;;  %v4173_v16 = vpop.xlane.xlu0 %4172  ;;  %v4548_v47 = vmul.f32 0.00048828125, %v4165_v2  ;;  %v5866_v0 = vrot.slane %v4549_v35, %v9557_v56  ;;  %v5871_v4 = vrot.slane %v4550_v36, %v9562_v46 }
 0x2cb   :  { %v5793_v62 = vsel %vm5213_vm2, %v5792_v24, %v5788_v38  ;;  %v4552_v38 = vmul.f32 0.00048828125, %v4173_v16 }
 0x2cc   :  { %4416 = vadd.xlane.f32.xlu1 %v10200_v31  ;;  %v11172_v31 = vld [vmem:[#allocation7_spill] sm:$0xff]  ;;  %v5862_v57 = vrot.slane %v4548_v47, %v9551_v20 }
 0x2cd   :  { %v4201_v41 = vpop.xlane.xlu1 %4200  ;;  %4382 = vadd.xlane.f32.xlu0 %v11167_v51 }
 0x2ce   :  { %v4179_v9 = vpop.xlane.xlu0 %4178  ;;  %v5867_v61 = vsel %vm5206_vm1, %v5866_v0, %v5862_v57  ;;  %v4566_v57 = vmul.f32 0.00048828125, %v4201_v41 }
 0x2cf   :  { %v5872_v49 = vsel %vm5213_vm2, %v5871_v4, %v5867_v61  ;;  %v11175_v61 = vld [vmem:[#allocation43_spill] sm:$0xff] }
 0x2d0   :  { %4162 = vadd.xlane.f32.xlu1 %v11168_v30  ;;  %v10525_v4 = vmul.f32 0.00048828125, %v11175_v61 }
 0x2d1   :  { %v4197_v10 = vpop.xlane.xlu1 %4196  ;;  %4128 = vadd.xlane.f32.xlu0 %v11169_v18 }
 0x2d2   :  { %v4175_v8 = vpop.xlane.xlu0 %4174 }
 0x2d3   :  { %v4553_v2 = vmul.f32 0.00048828125, %v4175_v8 }
 0x2d4   :  { %4418 = vadd.xlane.f32.xlu1 %v10205_v11 }
 0x2d5   :  { %v4203_v22 = vpop.xlane.xlu1 %4202  ;;  %4384 = vadd.xlane.f32.xlu0 %v11170_v1  ;;  %v5886_v18 = vrot.slane %v4553_v2, %v9667_v12  ;;  %v4554_v1 = vmul.f32 0.00048828125, %v4177_v43  ;;  %v11176_v2 = vld [vmem:[#allocation49_spill] sm:$0xff] }
 0x2d6   :  { %v4185_v15 = vpop.xlane.xlu0 %4184 }
 0x2d7   :  { %v5891_v47 = vrot.slane %v4554_v1, %v9670_v44 }
 0x2d8   :  { %4386 = vadd.xlane.f32.xlu1 %v11171_v32 }
 0x2d9   :  { %v4393_v19 = vpop.xlane.xlu1 %4392  ;;  %4130 = vadd.xlane.f32.xlu0 %v11172_v31 }
 0x2da   :  { %v4662_v50 = vmul.f32 0.00048828125, %v4393_v19  ;;  %v4181_v52 = vpop.xlane.xlu0 %4180 }
 0x2db   :  { %v4556_v8 = vmul.f32 0.00048828125, %v4181_v52 }
 0x2dc   :  { %v6424_v3 = vrot.slane %v4662_v50, %v9562_v46  ;;  %v4555_v50 = vmul.f32 0.00048828125, %v4179_v9 }
 0x2dd   :  { %v4139_v59 = vpop.xlane.xlu1 %4138  ;;  %v5901_v0 = vrot.slane %v4556_v8, %v9681_v34 }
 0x2de   :  { %v10491_v63 = vsel %vm5213_vm2, %v6424_v3, %v10427_v7  ;;  %v4535_v11 = vmul.f32 0.00048828125, %v4139_v59  ;;  %v4187_v14 = vpop.xlane.xlu0 %4186  ;;  %v4551_v7 = vmul.f32 0.00048828125, %v10452_v48  ;;  %v5881_v48 = vrot.slane %v4552_v38, %v9608_v54 }
 0x2df   :  { %v4644_v59 = vmul.f32 0.00048828125, %v10350_v40  ;;  %v5896_v9 = vrot.slane %v4555_v50, %v9676_v60  ;;  %v4558_v38 = vmul.f32 0.00048828125, %v4185_v15  ;;  %v4559_v1 = vmul.f32 0.00048828125, %v4187_v14 }
 0x2e0   :  { %v5797_v6 = vrot.slane %v4535_v11, %v9587_v58 }
 0x2e1   :  { %v4209_v55 = vpop.xlane.xlu1 %4208  ;;  %v6336_v41 = vrot.slane %v4644_v59, %v9551_v20  ;;  %v5911_v15 = vrot.slane %v4558_v38, %v9737_v13 }
 0x2e2   :  { %v10496_v21 = vsel %vm5220_vm3, %v5797_v6, %v5793_v62  ;;  %v4183_v23 = vpop.xlane.xlu0 %4182  ;;  %v5876_v62 = vrot.slane %v4551_v7, %v9587_v58  ;;  %v11173_v6 = vld [vmem:[#allocation31_spill] sm:$0xff]  ;;  %v11174_v7 = vld [vmem:[#allocation34_spill] sm:$0xff] }
 0x2e3   :  { %v4557_v3 = vmul.f32 0.00048828125, %v4183_v23  ;;  %v10515_v43 = vmul.f32 0.00048828125, %v11173_v6  ;;  %v10520_v52 = vmul.f32 0.00048828125, %v11174_v7  ;;  %v4564_v23 = vmul.f32 0.00048828125, %v4197_v10 }
 0x2e4   :  { %v5877_v17 = vsel %vm5220_vm3, %v5876_v62, %v5872_v49  ;;  %v10528_v49 = vmul.f32 0.00048828125, %v11176_v2  ;;  %v5950_v10 = vrot.slane %v4566_v57, %v9562_v46  ;;  %v5916_v57 = vrot.slane %v4559_v1, %v9743_v26 }
 0x2e5   :  { %v4205_v45 = vpop.xlane.xlu1 %4204  ;;  %v5882_v31 = vsel %vm5227_vm4, %v5881_v48, %v5877_v17  ;;  %v5906_v40 = vrot.slane %v4557_v3, %v9733_v25  ;;  %v4567_v17 = vmul.f32 0.00048828125, %v4203_v22  ;;  %v4570_v48 = vmul.f32 0.00048828125, %v4209_v55 }
 0x2e6   :  { %v4193_v24 = vpop.xlane.xlu0 %4192  ;;  %v5887_v16 = vsel %vm5234_vm5, %v5886_v18, %v5882_v31  ;;  %v4568_v50 = vmul.f32 0.00048828125, %v4205_v45  ;;  %v5941_v3 = vrot.slane %v4564_v23, %v9551_v20 }
 0x2e7   :  { %v5892_v36 = vsel %vm5241_vm6, %v5891_v47, %v5887_v16  ;;  %v4562_v6 = vmul.f32 0.00048828125, %v4193_v24  ;;  %v5970_v45 = vrot.slane %v4570_v48, %v9670_v44 }
 0x2e8   :  { %v5897_v18 = vsel %vm5248_vm7, %v5896_v9, %v5892_v36  ;;  %v5955_v36 = vrot.slane %v4567_v17, %v9587_v58  ;;  %v5960_v24 = vrot.slane %v4568_v50, %v9608_v54 }
 0x2e9   :  { %v4211_v51 = vpop.xlane.xlu1 %4210  ;;  %v5902_v8 = vsel %vm5255_vm8, %v5901_v0, %v5897_v18 }
 0x2ea   :  { %v4189_v30 = vpop.xlane.xlu0 %4188  ;;  %v5907_v47 = vsel %vm5262_vm9, %v5906_v40, %v5902_v8  ;;  %v4571_v59 = vmul.f32 0.00048828125, %v4211_v51 }
 0x2eb   :  { %v4560_v22 = vmul.f32 0.00048828125, %v4189_v30  ;;  %v5912_v20 = vsel %vm5269_vm10, %v5911_v15, %v5907_v47  ;;  %v5931_v30 = vrot.slane %v4562_v6, %v9798_v27 }
 0x2ec   :  { %v5917_v47 = vsel %vm5276_vm11, %v5916_v57, %v5912_v20 }
 0x2ed   :  { %v4207_v32 = vpop.xlane.xlu1 %4206  ;;  %v5921_v2 = vrot.slane %v4560_v22, %v9752_v28 }
 0x2ee   :  { %v10508_v19 = vpop.xlane.xlu0 %4194  ;;  %v4569_v7 = vmul.f32 0.00048828125, %v4207_v32  ;;  %v5975_v32 = vrot.slane %v4571_v59, %v9676_v60 }
 0x2ef   :  { %v5922_v59 = vsel %vm5283_vm12, %v5921_v2, %v5917_v47  ;;  %v4563_v15 = vmul.f32 0.00048828125, %v10508_v19 }
 0x2f0   :  { %v5965_v38 = vrot.slane %v4569_v7, %v9667_v12 }
 0x2f1   :  { %v4217_v11 = vpop.xlane.xlu1 %4216 }
 0x2f2   :  { %v4191_v35 = vpop.xlane.xlu0 %4190  ;;  %v4574_v1 = vmul.f32 0.00048828125, %v4217_v11 }
 0x2f3   :  { %v4561_v0 = vmul.f32 0.00048828125, %v4191_v35 }
 0x2f5   :  { %v4213_v62 = vpop.xlane.xlu1 %4212  ;;  %v5926_v48 = vrot.slane %v4561_v0, %v9795_v5 }
 0x2f6   :  { %v4199_v31 = vpop.xlane.xlu0 %4198  ;;  %v4572_v40 = vmul.f32 0.00048828125, %v4213_v62 }
 0x2f7   :  { %v4565_v16 = vmul.f32 0.00048828125, %v4199_v31 }
 0x2f8   :  { %v5980_v6 = vrot.slane %v4572_v40, %v9681_v34  ;;  %v6005_v40 = vrot.slane %v10528_v49, %v9795_v5 }
 0x2f9   :  { %v5945_v14 = vrot.slane %v4565_v16, %v9557_v56  ;;  %v4219_v55 = vpop.xlane.xlu1 %4218 }
 0x2fa   :  { %v4359_v9 = vpop.xlane.xlu0 %4358  ;;  %v4575_v16 = vmul.f32 0.00048828125, %v4219_v55  ;;  %v5927_v55 = vsel %vm5290_vm13, %v5926_v48, %v5922_v59  ;;  %v11178_v59 = vld [vmem:[#allocation78_spill] sm:$0xff] }
 0x2fb   :  { %v5946_v51 = vsel %vm5206_vm1, %v5945_v14, %v5941_v3  ;;  %v4645_v23 = vmul.f32 0.00048828125, %v4359_v9  ;;  %v5990_v14 = vrot.slane %v4574_v1, %v9737_v13  ;;  %v6015_v1 = vrot.slane %v10525_v4, %v9803_v29 }
 0x2fc   :  { %v5951_v61 = vsel %vm5213_vm2, %v5950_v10, %v5946_v51  ;;  %v6000_v51 = vrot.slane %v10520_v52, %v9752_v28 }
 0x2fd   :  { %v5956_v35 = vsel %vm5220_vm3, %v5955_v36, %v5951_v61  ;;  %v6340_v17 = vrot.slane %v4645_v23, %v9557_v56  ;;  %v4215_v18 = vpop.xlane.xlu1 %4214  ;;  %v5932_v61 = vsel %vm5297_vm14, %v5931_v30, %v5927_v55 }
 0x2fe   :  { %v5961_v31 = vsel %vm5227_vm4, %v5960_v24, %v5956_v35  ;;  %v4573_v8 = vmul.f32 0.00048828125, %v4215_v18  ;;  %v4105_v50 = vpop.xlane.xlu0 %4104  ;;  %v6010_v24 = vrot.slane %v10515_v43, %v9798_v27  ;;  %v5936_v35 = vrot.slane %v4563_v15, %v9803_v29 }
 0x2ff   :  { %v6341_v62 = vsel %vm5206_vm1, %v6340_v17, %v6336_v41  ;;  %v5966_v10 = vsel %vm5234_vm5, %v5965_v38, %v5961_v31  ;;  %v4518_v3 = vmul.f32 0.00048828125, %v4105_v50 }
 0x300   :  { %v5971_v56 = vsel %vm5241_vm6, %v5970_v45, %v5966_v10  ;;  %v5985_v11 = vrot.slane %v4573_v8, %v9733_v25  ;;  %v5995_v45 = vrot.slane %v4575_v16, %v9743_v26  ;;  %v5937_v8 = vsel %vm5304_vm15, %v5936_v35, %v5932_v61  ;;  %v7343_v61 = vld [vmem:[%s10957_s2 + $0xd8] sm:$0xff]  }
 0x301   :  { %v5976_v22 = vsel %vm5248_vm7, %v5975_v32, %v5971_v56  ;;  %v5713_v7 = vrot.slane %v4518_v3, %v9562_v46  ;;  %v4395_v41 = vpop.xlane.xlu1 %4394  ;;  %v6492_v15 = vsel %vm6491_vm0, %v5937_v8, %v11178_v59  ;;  %v7336_v8 = vld [vmem:[%s10957_s2 + $0xa0] sm:$0xff]   ;;  %v7347_v59 = vld [vmem:[%s10957_s2 + $0xf8] sm:$0xff]  }
 0x302   :  { %v5981_v36 = vsel %vm5255_vm8, %v5980_v6, %v5976_v22  ;;  %v4663_v57 = vmul.f32 0.00048828125, %v4395_v41  ;;  %v4361_v0 = vpop.xlane.xlu0 %4360  ;;  %v7332_v6 = vld [vmem:[%s10957_s2 + $0x80] sm:$0xff]  }
 0x303   :  { %v5986_v9 = vsel %vm5262_vm9, %v5985_v11, %v5981_v36  ;;  %v5714_v19 = vsel %vm5213_vm2, %v5713_v7, %v10471_v53  ;;  %v4646_v20 = vmul.f32 0.00048828125, %v4361_v0 }
 0x304   :  { %v5991_v23 = vsel %vm5269_vm10, %v5990_v14, %v5986_v9  ;;  %v6429_v32 = vrot.slane %v4663_v57, %v9587_v58  ;;  %v7333_v57 = vld [vmem:[%s10957_s2 + $0x88] sm:$0xff]  }
 0x305   :  { %v5996_v2 = vsel %vm5276_vm11, %v5995_v45, %v5991_v23  ;;  %v6345_v53 = vrot.slane %v4646_v20, %v9562_v46  ;;  %v4141_v38 = vpop.xlane.xlu1 %4140  ;;  %v7334_v23 = vld [vmem:[%s10957_s2 + $0x90] sm:$0xff]  }
 0x306   :  { %v6430_v43 = vsel %vm5220_vm3, %v6429_v32, %v10491_v63  ;;  %v4536_v52 = vmul.f32 0.00048828125, %v4141_v38  ;;  %v4107_v17 = vpop.xlane.xlu0 %4106  ;;  %v6001_v18 = vsel %vm5283_vm12, %v6000_v51, %v5996_v2 }
 0x307   :  { %v6346_v49 = vsel %vm5213_vm2, %v6345_v53, %v6341_v62  ;;  %v4519_v30 = vmul.f32 0.00048828125, %v4107_v17  ;;  %v6006_v48 = vsel %vm5290_vm13, %v6005_v40, %v6001_v18  ;;  %v11177_v62 = vld [vmem:[#allocation22_spill] sm:$0xff]  ;;  %v7335_v17 = vld [vmem:[%s10957_s2 + $0x98] sm:$0xff]  }
 0x308   :  { %v5802_v46 = vrot.slane %v4536_v52, %v9608_v54  ;;  %v6011_v31 = vsel %vm5297_vm14, %v6010_v24, %v6006_v48 }
 0x309   :  { %v5718_v63 = vrot.slane %v4519_v30, %v9587_v58  ;;  %v4397_v50 = vpop.xlane.xlu1 %4396  ;;  %v6016_v16 = vsel %vm5304_vm15, %v6015_v1, %v6011_v31 }
 0x30a   :  { %v5803_v10 = vsel %vm5227_vm4, %v5802_v46, %v10496_v21  ;;  %v4664_v4 = vmul.f32 0.00048828125, %v4397_v50  ;;  %v4363_v3 = vpop.xlane.xlu0 %4362  ;;  %v6493_v47 = vsel %vm6491_vm0, %v6016_v16, %v11177_v62  ;;  %v7341_v21 = vld [vmem:[%s10957_s2 + $0xc8] sm:$0xff]  }
 0x30b   :  { %v5719_v56 = vsel %vm5220_vm3, %v5718_v63, %v5714_v19  ;;  %v4647_v11 = vmul.f32 0.00048828125, %v4363_v3  ;;  %6572 = vmatprep.mubr.f32.mxu1 %v6493_v47  ;;  %v7345_v16 = vld [vmem:[%s10957_s2 + $0xe8] sm:$0xff]  }
 0x30c   :  { %v6434_v22 = vrot.slane %v4664_v4, %v9608_v54  ;;  %6573 = vmatmul.mubr.f32.vlgmr.msra.gmra.mrb[100].mxu1 %v6492_v15  ;;  %v7337_v62 = vld [vmem:[%s10957_s2 + $0xa8] sm:$0xff]  }
 0x30d   :  { %v6350_v7 = vrot.slane %v4647_v11, %v9587_v58  ;;  %7942 = vmatpush3.bf16.msra.mxu1 %v7332_v6  ;;  %6642 = vmatprep.mubr.f32.mxu1 %v10311_v37  ;;  %v4143_v41 = vpop.xlane.xlu1 %4142  ;;  %v7342_v58 = vld [vmem:[%s10957_s2 + $0xd0] sm:$0xff]  }
 0x30e   :  { %v6435_v14 = vsel %vm5227_vm4, %v6434_v22, %v6430_v43  ;;  %v4537_v55 = vmul.f32 0.00048828125, %v4143_v41  ;;  %v4109_v36 = vpop.xlane.xlu0 %4108  ;;  %7944 = vmatprep.subr.bf16.mxu1 %v7341_v21  ;;  %v7346_v6 = vld [vmem:[%s10957_s2 + $0xf0] sm:$0xff]   ;;  %v7339_v22 = vld [vmem:[%s10957_s2 + $0xb8] sm:$0xff]  }
 0x30f   :  { %v6351_v0 = vsel %vm5220_vm3, %v6350_v7, %v6346_v49  ;;  %v4520_v45 = vmul.f32 0.00048828125, %v4109_v36  ;;  %v7344_v49 = vld [vmem:[%s10957_s2 + $0xe0] sm:$0xff]   ;;  %v7338_v11 = vld [vmem:[%s10957_s2 + $0xb0] sm:$0xff]   ;;  %v7357_v36 = vld [vmem:[%s10957_s2 + $0x148] sm:$0xff]  }
 0x310   :  { %v5807_v9 = vrot.slane %v4537_v55, %v9667_v12  ;;  %v7356_v7 = vld [vmem:[%s10957_s2 + $0x140] sm:$0xff]  }
 0x311   :  { %v5723_v37 = vrot.slane %v4520_v45, %v9608_v54  ;;  %7946 = vmatpush3.bf16.msra.mxu1 %v7333_v57  ;;  %v4399_v19 = vpop.xlane.xlu1 %4398  ;;  %v7348_v55 = vld [vmem:[%s10957_s2 + $0x100] sm:$0xff]   ;;  %v7349_v45 = vld [vmem:[%s10957_s2 + $0x108] sm:$0xff]  }
 0x312   :  { %v5808_v20 = vsel %vm5234_vm5, %v5807_v9, %v5803_v10  ;;  %v4665_v24 = vmul.f32 0.00048828125, %v4399_v19  ;;  %v4365_v51 = vpop.xlane.xlu0 %4364  ;;  %7948 = vmatprep.subr.bf16.mxu1 %v7342_v58  ;;  %v7358_v58 = vld [vmem:[%s10957_s2 + $0x150] sm:$0xff]  }
 0x313   :  { %v5724_v32 = vsel %vm5227_vm4, %v5723_v37, %v5719_v56  ;;  %v4648_v40 = vmul.f32 0.00048828125, %v4365_v51  ;;  %v7359_v37 = vld [vmem:[%s10957_s2 + $0x158] sm:$0xff]   ;;  %v7360_v51 = vld [vmem:[%s10957_s2 + $0x160] sm:$0xff]  }
 0x314   :  { %v6439_v2 = vrot.slane %v4665_v24, %v9667_v12  ;;  %v7351_v24 = vld [vmem:[%s10957_s2 + $0x118] sm:$0xff]  }
 0x315   :  { %v6355_v53 = vrot.slane %v4648_v40, %v9608_v54  ;;  %7950 = vmatpush3.bf16.msra.mxu1 %v7334_v23  ;;  %v4145_v38 = vpop.xlane.xlu1 %4144  ;;  %v7352_v40 = vld [vmem:[%s10957_s2 + $0x120] sm:$0xff]  }
 0x316   :  { %v10631_v35 = vsel %vm5234_vm5, %v6439_v2, %v6435_v14  ;;  %v4538_v43 = vmul.f32 0.00048828125, %v4145_v38  ;;  %v4111_v52 = vpop.xlane.xlu0 %4110  ;;  %7952 = vmatprep.subr.bf16.mxu1 %v7343_v61  ;;  %v7361_v61 = vld [vmem:[%s10957_s2 + $0x168] sm:$0xff]  }
 0x317   :  { %v6356_v18 = vsel %vm5227_vm4, %v6355_v53, %v6351_v0  ;;  %v4521_v1 = vmul.f32 0.00048828125, %v4111_v52  ;;  %v7353_v38 = vld [vmem:[%s10957_s2 + $0x128] sm:$0xff]  }
 0x318   :  { %v5812_v54 = vrot.slane %v4538_v43, %v9670_v44  ;;  %v7362_v43 = vld [vmem:[%s10957_s2 + $0x170] sm:$0xff]  }
 0x319   :  { %v5728_v30 = vrot.slane %v4521_v1, %v9667_v12  ;;  %7954 = vmatpush3.bf16.msra.mxu1 %v7335_v17  ;;  %v10642_v48 = vpop.xlane.xlu1 %4400  ;;  %v7363_v1 = vld [vmem:[%s10957_s2 + $0x178] sm:$0xff]  }
 0x31a   :  { %v10645_v46 = vsel %vm5241_vm6, %v5812_v54, %v5808_v20  ;;  %v4367_v31 = vpop.xlane.xlu0 %4366  ;;  %7956 = vmatprep.subr.bf16.mxu1 %v7344_v49 }
 0x31b   :  { %v10651_v63 = vsel %vm5234_vm5, %v5728_v30, %v5724_v32  ;;  %v4649_v50 = vmul.f32 0.00048828125, %v4367_v31  ;;  %v7355_v30 = vld [vmem:[%s10957_s2 + $0x138] sm:$0xff]   ;;  %v7372_v31 = vld [vmem:[%s10957_s2 + $0x1c0] sm:$0xff]  }
 0x31d   :  { %v6360_v10 = vrot.slane %v4649_v50, %v9667_v12  ;;  %7958 = vmatpush3.bf16.msra.mxu1 %v7336_v8  ;;  %v10657_v4 = vpop.xlane.xlu1 %4146  ;;  %v4666_v8 = vmul.f32 0.00048828125, %v10642_v48  ;;  %v7373_v48 = vld [vmem:[%s10957_s2 + $0x1c8] sm:$0xff]  }
 0x31e   :  { %v10659_v3 = vpop.xlane.xlu0 %4112  ;;  %7960 = vmatprep.subr.bf16.mxu1 %v7345_v16  ;;  %v4539_v50 = vmul.f32 0.00048828125, %v10657_v4 }
 0x31f   :  { %v10665_v47 = vsel %vm5234_vm5, %v6360_v10, %v6356_v18  ;;  %v7354_v18 = vld [vmem:[%s10957_s2 + $0x130] sm:$0xff]   ;;  %v4522_v10 = vmul.f32 0.00048828125, %v10659_v3  ;;  %v6444_v4 = vrot.slane %v4666_v8, %v9670_v44 }
 0x320   :  { %v5817_v3 = vrot.slane %v4539_v50, %v9676_v60 }
 0x321   :  { %7962 = vmatpush3.bf16.msra.mxu1 %v7337_v62  ;;  %v10670_v56 = vpop.xlane.xlu1 %4402 }
 0x322   :  { %v10672_v12 = vpop.xlane.xlu0 %4368  ;;  %7964 = vmatprep.subr.bf16.mxu1 %v7346_v6  ;;  %v4667_v62 = vmul.f32 0.00048828125, %v10670_v56 }
 0x325   :  { %7966 = vmatpush3.bf16.msra.mxu1 %v7338_v11  ;;  %v10680_v15 = vpop.xlane.xlu1 %4148  ;;  %v7364_v11 = vld [vmem:[%s10957_s2 + $0x180] sm:$0xff]  }
 0x326   :  { %v10682_v21 = vpop.xlane.xlu0 %4114  ;;  %7968 = vmatprep.subr.bf16.mxu1 %v7347_v59  ;;  %v4650_v59 = vmul.f32 0.00048828125, %v10672_v12  ;;  %v4540_v56 = vmul.f32 0.00048828125, %v10680_v15 }
 0x327   :  { %v4523_v12 = vmul.f32 0.00048828125, %v10682_v21 }
 0x329   :  { %7970 = vmatpush3.bf16.msra.mxu1 %v7339_v22  ;;  %v10690_v41 = vpop.xlane.xlu1 %4404 }
 0x32a   :  { %v10692_v14 = vpop.xlane.xlu0 %4370  ;;  %7972 = vmatprep.subr.bf16.mxu1 %v7356_v7  ;;  %v5733_v7 = vrot.slane %v4522_v10, %v9670_v44  ;;  %v4668_v15 = vmul.f32 0.00048828125, %v10690_v41 }
 0x32b   :  { %v4651_v21 = vmul.f32 0.00048828125, %v10692_v14 }
 0x32c   :  { %6643 = vmatmul.mubr.f32.vlgmr.msra.gmra.mrb[102].mxu1 %v10175_v33 }
 0x32d   :  { %7974 = vmatpush3.bf16.msra.mxu1 %v7348_v55  ;;  %6712 = vmatprep.mubr.f32.mxu1 %v10468_v39  ;;  %v10702_v57 = vpop.xlane.xlu1 %4150  ;;  %v7350_v39 = vld [vmem:[%s10957_s2 + $0x110] sm:$0xff]   ;;  %v6449_v55 = vrot.slane %v4667_v62, %v9676_v60 }
 0x32e   :  { %v10704_v0 = vpop.xlane.xlu0 %4116  ;;  %7976 = vmatprep.subr.bf16.mxu1 %v7357_v36 }
 0x331   :  { %7978 = vmatpush3.bf16.msra.mxu1 %v7349_v45  ;;  %v10712_v9 = vpop.xlane.xlu1 %4406  ;;  %v6365_v45 = vrot.slane %v4650_v59, %v9670_v44  ;;  %v5822_v44 = vrot.slane %v4540_v56, %v9681_v34 }
 0x332   :  { %v10714_v33 = vpop.xlane.xlu0 %4372  ;;  %7980 = vmatprep.subr.bf16.mxu1 %v7358_v58  ;;  %v7374_v58 = vld [vmem:[%s10957_s2 + $0x1d0] sm:$0xff]   ;;  %v4669_v41 = vmul.f32 0.00048828125, %v10712_v9 }
 0x333   :  { %v6366_v9 = vsel %vm5241_vm6, %v6365_v45, %v10665_v47 }
 0x334   :  { %v6459_v8 = vrot.slane %v4669_v41, %v9733_v25  ;;  %v7377_v41 = vld [vmem:[%s10957_s2 + $0x1e8] sm:$0xff]  }
 0x335   :  { %7982 = vmatpush3.bf16.msra.mxu1 %v7350_v39  ;;  %v10722_v19 = vpop.xlane.xlu1 %4152  ;;  %v6445_v39 = vsel %vm5241_vm6, %v6444_v4, %v10631_v35  ;;  %v5734_v35 = vsel %vm5241_vm6, %v5733_v7, %v10651_v63 }
 0x336   :  { %v10724_v20 = vpop.xlane.xlu0 %4118  ;;  %7984 = vmatprep.subr.bf16.mxu1 %v7359_v37  ;;  %v4541_v37 = vmul.f32 0.00048828125, %v10702_v57  ;;  %v6450_v14 = vsel %vm5248_vm7, %v6449_v55, %v6445_v39  ;;  %v5738_v57 = vrot.slane %v4523_v12, %v9676_v60 }
 0x337   :  { %v4525_v63 = vmul.f32 0.00048828125, %v10724_v20 }
 0x338   :  { %v5739_v10 = vsel %vm5248_vm7, %v5738_v57, %v5734_v35 }
 0x339   :  { %7986 = vmatpush3.bf16.msra.mxu1 %v7351_v24  ;;  %v10732_v23 = vpop.xlane.xlu1 %4408  ;;  %v4524_v24 = vmul.f32 0.00048828125, %v10704_v0  ;;  %v4542_v0 = vmul.f32 0.00048828125, %v10722_v19  ;;  %v7375_v19 = vld [vmem:[%s10957_s2 + $0x1d8] sm:$0xff]  }
 0x33a   :  { %v10734_v32 = vpop.xlane.xlu0 %4374  ;;  %7988 = vmatprep.subr.bf16.mxu1 %v7360_v51  ;;  %v5818_v51 = vsel %vm5248_vm7, %v5817_v3, %v10645_v46  ;;  %v7366_v46 = vld [vmem:[%s10957_s2 + $0x190] sm:$0xff]  }
 0x33b   :  { %v5823_v47 = vsel %vm5255_vm8, %v5822_v44, %v5818_v51 }
 0x33d   :  { %7990 = vmatpush3.bf16.msra.mxu1 %v7352_v40  ;;  %v10742_v2 = vpop.xlane.xlu1 %4154  ;;  %v4652_v40 = vmul.f32 0.00048828125, %v10714_v33  ;;  %v6454_v33 = vrot.slane %v4668_v15, %v9681_v34 }
 0x33e   :  { %v10744_v53 = vpop.xlane.xlu0 %4120  ;;  %7992 = vmatprep.subr.bf16.mxu1 %v7361_v61 }
 0x33f   :  { %v6375_v20 = vrot.slane %v4652_v40, %v9681_v34  ;;  %v4526_v62 = vmul.f32 0.00048828125, %v10744_v53  ;;  %v7376_v53 = vld [vmem:[%s10957_s2 + $0x1e0] sm:$0xff]  }
 0x341   :  { %7994 = vmatpush3.bf16.msra.mxu1 %v7353_v38  ;;  %v10752_v52 = vpop.xlane.xlu1 %4410 }
 0x342   :  { %v10754_v17 = vpop.xlane.xlu0 %4376  ;;  %7996 = vmatprep.subr.bf16.mxu1 %v7362_v43  ;;  %v4670_v43 = vmul.f32 0.00048828125, %v10732_v23  ;;  %v4543_v23 = vmul.f32 0.00048828125, %v10742_v2  ;;  %v5748_v2 = vrot.slane %v4525_v63, %v9733_v25 }
 0x343   :  { %v4654_v4 = vmul.f32 0.00048828125, %v10754_v17 }
 0x345   :  { %7998 = vmatpush3.bf16.msra.mxu1 %v7354_v18  ;;  %v10762_v49 = vpop.xlane.xlu1 %4156  ;;  %v6370_v18 = vrot.slane %v4651_v21, %v9676_v60  ;;  %v5832_v60 = vrot.slane %v4542_v0, %v9737_v13  ;;  %v6385_v51 = vrot.slane %v4654_v4, %v9737_v13 }
 0x346   :  { %v10764_v54 = vpop.xlane.xlu0 %4122  ;;  %8000 = vmatprep.subr.bf16.mxu1 %v7363_v1  ;;  %v5827_v1 = vrot.slane %v4541_v37, %v9733_v25  ;;  %v4544_v17 = vmul.f32 0.00048828125, %v10762_v49 }
 0x347   :  { %v4527_v40 = vmul.f32 0.00048828125, %v10764_v54  ;;  %v7369_v54 = vld [vmem:[%s10957_s2 + $0x1a8] sm:$0xff]  }
 0x348   :  { %v5828_v3 = vsel %vm5262_vm9, %v5827_v1, %v5823_v47  ;;  %v5842_v0 = vrot.slane %v4544_v17, %v9752_v28 }
 0x349   :  { %8002 = vmatpush3.bf16.msra.mxu1 %v7355_v30  ;;  %v10774_v16 = vpop.xlane.xlu1 %4412  ;;  %v5743_v30 = vrot.slane %v4524_v24, %v9681_v34  ;;  %v6455_v34 = vsel %vm5255_vm8, %v6454_v33, %v6450_v14  ;;  %v5833_v15 = vsel %vm5269_vm10, %v5832_v60, %v5828_v3 }
 0x34a   :  { %v10778_v6 = vpop.xlane.xlu0 %4378  ;;  %8004 = vmatprep.subr.bf16.mxu1 %v7372_v31  ;;  %v4653_v31 = vmul.f32 0.00048828125, %v10734_v32  ;;  %v7367_v32 = vld [vmem:[%s10957_s2 + $0x198] sm:$0xff]   ;;  %v6460_v55 = vsel %vm5262_vm9, %v6459_v8, %v6455_v34  ;;  %v4672_v21 = vmul.f32 0.00048828125, %v10774_v16  ;;  %v7370_v34 = vld [vmem:[%s10957_s2 + $0x1b0] sm:$0xff]  }
 0x34b   :  { %v5744_v56 = vsel %vm5255_vm8, %v5743_v30, %v5739_v10  ;;  %v4655_v44 = vmul.f32 0.00048828125, %v10778_v6  ;;  %v7378_v30 = vld [vmem:[%s10957_s2 + $0x1f0] sm:$0xff]  }
 0x34c   :  { %6713 = vmatmul.mubr.f32.vlgmr.msra.gmra.mrb[104].mxu1 %v10405_v42  ;;  %v7365_v42 = vld [vmem:[%s10957_s2 + $0x188] sm:$0xff]   ;;  %v6380_v7 = vrot.slane %v4653_v31, %v9733_v25  ;;  %v7368_v25 = vld [vmem:[%s10957_s2 + $0x1a0] sm:$0xff]   ;;  %v5749_v24 = vsel %vm5262_vm9, %v5748_v2, %v5744_v56  ;;  %v6474_v63 = vrot.slane %v4672_v21, %v9752_v28  ;;  %v5758_v31 = vrot.slane %v4527_v40, %v9743_v26 }
 0x34d   :  { %v10791_v22 = vpop.xlane.xlu1 %4158  ;;  %8006 = vmatpush3.bf16.msra.mxu1 %v7364_v11  ;;  %v4671_v11 = vmul.f32 0.00048828125, %v10752_v52  ;;  %v6371_v52 = vsel %vm5248_vm7, %v6370_v18, %v6366_v9 }
 0x34e   :  { %v10796_v36 = vpop.xlane.xlu0 %4124  ;;  %8008 = vmatprep.subr.bf16.mxu1 %v7373_v48  ;;  %v6464_v48 = vrot.slane %v4670_v43, %v9737_v13  ;;  %v6376_v12 = vsel %vm5255_vm8, %v6375_v20, %v6371_v52  ;;  %v4545_v35 = vmul.f32 0.00048828125, %v10791_v22 }
 0x34f   :  { %v6469_v39 = vrot.slane %v4671_v11, %v9743_v26  ;;  %v6381_v16 = vsel %vm5262_vm9, %v6380_v7, %v6376_v12  ;;  %v4528_v18 = vmul.f32 0.00048828125, %v10796_v36 }
 0x350   :  { %v6465_v49 = vsel %vm5269_vm10, %v6464_v48, %v6460_v55  ;;  %v6386_v22 = vsel %vm5269_vm10, %v6385_v51, %v6381_v16  ;;  %v5847_v47 = vrot.slane %v4545_v35, %v9795_v5 }
 0x351   :  { %v4415_v61 = vpop.xlane.xlu1 %4414  ;;  %8010 = vmatpush3.bf16.msra.mxu1 %v7365_v42  ;;  %v5837_v42 = vrot.slane %v4543_v23, %v9743_v26  ;;  %v6470_v33 = vsel %vm5276_vm11, %v6469_v39, %v6465_v49 }
 0x352   :  { %v10821_v38 = vpop.xlane.xlu0 %4380  ;;  %8012 = vmatprep.subr.bf16.mxu1 %v7374_v58  ;;  %v5753_v58 = vrot.slane %v4526_v62, %v9737_v13  ;;  %v4673_v14 = vmul.f32 0.00048828125, %v4415_v61  ;;  %v6390_v61 = vrot.slane %v4655_v44, %v9743_v26 }
 0x353   :  { %v5838_v57 = vsel %vm5276_vm11, %v5837_v42, %v5833_v15  ;;  %v4656_v1 = vmul.f32 0.00048828125, %v10821_v38  ;;  %v6475_v38 = vsel %vm5283_vm12, %v6474_v63, %v6470_v33 }
 0x354   :  { %v5754_v6 = vsel %vm5269_vm10, %v5753_v58, %v5749_v24  ;;  %v6479_v8 = vrot.slane %v4673_v14, %v9795_v5  ;;  %v5843_v23 = vsel %vm5283_vm12, %v5842_v0, %v5838_v57  ;;  %v6391_v2 = vsel %vm5276_vm11, %v6390_v61, %v6386_v22 }
 0x355   :  { %v4161_v50 = vpop.xlane.xlu1 %4160  ;;  %8014 = vmatpush3.bf16.msra.mxu1 %v7366_v46  ;;  %v6395_v48 = vrot.slane %v4656_v1, %v9752_v28  ;;  %v5848_v52 = vsel %vm5290_vm13, %v5847_v47, %v5843_v23 }
 0x356   :  { %v4127_v59 = vpop.xlane.xlu0 %4126  ;;  %8016 = vmatprep.subr.bf16.mxu1 %v7375_v19  ;;  %v4546_v46 = vmul.f32 0.00048828125, %v4161_v50  ;;  %v6480_v3 = vsel %vm5290_vm13, %v6479_v8, %v6475_v38 }
 0x357   :  { %v4529_v10 = vmul.f32 0.00048828125, %v4127_v59  ;;  %v5763_v59 = vrot.slane %v4528_v18, %v9752_v28 }
 0x358   :  { %v5852_v50 = vrot.slane %v4546_v46, %v9798_v27 }
 0x359   :  { %v4417_v45 = vpop.xlane.xlu1 %4416  ;;  %8018 = vmatpush3.bf16.msra.mxu1 %v7367_v32  ;;  %v5768_v55 = vrot.slane %v4529_v10, %v9795_v5 }
 0x35a   :  { %v4383_v37 = vpop.xlane.xlu0 %4382  ;;  %8020 = vmatprep.subr.bf16.mxu1 %v7376_v53  ;;  %v4674_v9 = vmul.f32 0.00048828125, %v4417_v45  ;;  %v7379_v53 = vld [vmem:[%s10957_s2 + $0x1f8] sm:$0xff]   ;;  %v5853_v28 = vsel %vm5297_vm14, %v5852_v50, %v5848_v52 }
 0x35b   :  { %v4657_v20 = vmul.f32 0.00048828125, %v4383_v37  ;;  %v5759_v37 = vsel %vm5276_vm11, %v5758_v31, %v5754_v6  ;;  %v7060_v6 = vld [vmem:[%s10958_s3] ss:$0 sm:$0xff] }
 0x35c   :  { %v6484_v36 = vrot.slane %v4674_v9, %v9798_v27 }
 0x35d   :  { %v4163_v13 = vpop.xlane.xlu1 %4162  ;;  %8022 = vmatpush3.bf16.msra.mxu1 %v7368_v25  ;;  %v6400_v56 = vrot.slane %v4657_v20, %v9795_v5  ;;  %v7371_v5 = vld [vmem:[%s10957_s2 + $0x1b8] sm:$0xff]   ;;  %v6396_v25 = vsel %vm5283_vm12, %v6395_v48, %v6391_v2 }
 0x35e   :  { %v4547_v43 = vmul.f32 0.00048828125, %v4163_v13  ;;  %v4129_v19 = vpop.xlane.xlu0 %4128  ;;  %8024 = vmatprep.subr.bf16.mxu1 %v7377_v41  ;;  %v6485_v17 = vsel %vm5297_vm14, %v6484_v36, %v6480_v3 }
 0x35f   :  { %v4530_v11 = vmul.f32 0.00048828125, %v4129_v19  ;;  %v6401_v51 = vsel %vm5290_vm13, %v6400_v56, %v6396_v25 }
 0x360   :  { %v5857_v62 = vrot.slane %v4547_v43, %v9803_v29 }
 0x361   :  { %v4419_v60 = vpop.xlane.xlu1 %4418  ;;  %8026 = vmatpush3.bf16.msra.mxu1 %v7369_v54  ;;  %v5773_v45 = vrot.slane %v4530_v11, %v9798_v27 }
 0x362   :  { %v4675_v26 = vmul.f32 0.00048828125, %v4419_v60  ;;  %v4385_v32 = vpop.xlane.xlu0 %4384  ;;  %8028 = vmatprep.subr.bf16.mxu1 %v7378_v30  ;;  %v5858_v39 = vsel %vm5304_vm15, %v5857_v62, %v5853_v28 }
 0x363   :  { %v4658_v4 = vmul.f32 0.00048828125, %v4385_v32 }
 0x364   :  { %v6489_v7 = vrot.slane %v4675_v26, %v9803_v29 }
 0x365   :  { %v6405_v12 = vrot.slane %v4658_v4, %v9798_v27  ;;  %v4387_v42 = vpop.xlane.xlu1 %4386  ;;  %8030 = vmatpush3.bf16.msra.mxu1 %v7370_v34  ;;  %v5764_v27 = vsel %vm5283_vm12, %v5763_v59, %v5759_v37 }
 0x366   :  { %v4659_v15 = vmul.f32 0.00048828125, %v4387_v42  ;;  %v4131_v58 = vpop.xlane.xlu0 %4130  ;;  %v6490_v21 = vsel %vm5304_vm15, %v6489_v7, %v6485_v17  ;;  %8032 = vmatprep.subr.bf16.mxu1 %v7379_v53  ;;  %v5769_v41 = vsel %vm5290_vm13, %v5768_v55, %v5764_v27 }
 0x367   :  { %v4531_v24 = vmul.f32 0.00048828125, %v4131_v58  ;;  %v6499_v49 = vsel %vm6491_vm0, %v6490_v21, %v5858_v39  ;;  %v6406_v16 = vsel %vm5297_vm14, %v6405_v12, %v6401_v51  ;;  %v5774_v35 = vsel %vm5297_vm14, %v5773_v45, %v5769_v41 }
 0x368   :  { %v6410_v44 = vrot.slane %v4659_v15, %v9803_v29  ;;  %6782 = vmatprep.mubr.f32.mxu1 %v6499_v49 }
 0x369   :  { %v5778_v40 = vrot.slane %v4531_v24, %v9803_v29  ;;  %8034 = vmatpush3.bf16.msra.mxu1 %v7371_v5 }
 0x36a   :  { %v6411_v14 = vsel %vm5304_vm15, %v6410_v44, %v6406_v16 }
 0x36b   :  { %v5779_v57 = vsel %vm5304_vm15, %v5778_v40, %v5774_v35 }
 0x36c   :  { %v6498_v0 = vsel %vm6491_vm0, %v6411_v14, %v5779_v57 }
 0x36d   :  { %6783 = vmatmul.mubr.f32.vlgmr.msra.gmra.mrb[106].mxu1 %v6498_v0 }
 0x3df   :  { %v7541_v46 = vpop.f32.mrb[100].mxu1 }
 0x3e0   :  { %v7542_v9 = vpop.f32.mrb[101].mxu1 }
 0x3e1   :  { %v7543_v13 = vadd.f32 %v7542_v9, %v7541_v46 }
 0x3e3   :  { %v6575_v29 = vadd.f32 %v7543_v13, %v7060_v6 }
 0x3ff   :  { %v7576_v33 = vpop.f32.mrb[102].mxu1 }
 0x400   :  { %v7577_v63 = vpop.f32.mrb[103].mxu1 }
 0x401   :  { %v7578_v43 = vadd.f32 %v7577_v63, %v7576_v33 }
 0x403   :  { %v6645_v19 = vadd.f32 %v7578_v43, %v6575_v29 }
 0x41f   :  { %v7611_v54 = vpop.f32.mrb[104].mxu1 }
 0x420   :  { %v7612_v22 = vpop.f32.mrb[105].mxu1 }
 0x421   :  { %v7613_v61 = vadd.f32 %v7612_v22, %v7611_v54 }
 0x423   :  { %v6715_v18 = vadd.f32 %v7613_v61, %v6645_v19 }
 0x440   :  { %v7646_v1 = vpop.f32.mrb[106].mxu1 }
 0x441   :  { %v7647_v30 = vpop.f32.mrb[107].mxu1 }
 0x442   :  { %v7648_v31 = vadd.f32 %v7647_v30, %v7646_v1 }
 0x444   :  { %v6785_v47 = vadd.f32 %v7648_v31, %v6715_v18 }
 0x446   :  { %6788 = vst [vmem:[#allocation3] sm:$0x3] %v6785_v47 }
 0x447   :  { %8051 = shalt.err (!%p8048_p4)
}
 0x448   :  { %s8052_s9 = scalar_lea.hbm %s10959_s4, 32 }
 0x449   :  { %p8053_p5 = scmp.ne.s32.totalorder %s10959_s4, %s8052_s9  ;;  %p8056_p6 = scmp.lt.u32.totalorder %s8052_s9, %s10959_s4 }
 0x44b   :  { %p8058_p7 = pnand %p8056_p6, %p8053_p5 }
 0x44d   :  { %8061 = shalt.err (!%p8058_p7)
}
 0x44e   :  { %6798 = dma.vmem_to_hbm [thread:$0]  %s6796_s6, 32, %s10959_s4, [#allocation4]  }
 0x44f   :  { %8062 = dma.done.wait [#allocation4], 32  }
 0x450   :  { %8063 = vsyncadd [#allocation4], 4294967264 }
 0x451   :  { %6802 = vsyncpa [#allocation4], 1 }

</bundles_post_ra>
